<compile_context>
chip_gen: v7x
topology: tpu7x:2x2x1
jax: 0.10.0
libtpu: 0.0.40
codegen_flags: <defaults>
</compile_context>

<pallas_src>
import functools

import jax
import jax.numpy as jnp
from jax import lax
from jax.experimental import pallas as pl
from jax.experimental.pallas import tpu as pltpu

C1 = 0.01 ** 2
C2 = 0.03 ** 2
_HIGHEST = lax.Precision.HIGHEST


def _avg3_reflect_matrix(n):
    """(n, n) operator A with A[o, i] = number of taps of the 3-tap window
    centred at o (reflect(1) border) that read input index i. Rows sum to 3."""
    idx = jnp.arange(n)
    a = jnp.zeros((n, n), jnp.float32)
    for d in (-1, 0, 1):
        src = idx + d
        src = jnp.where(src < 0, -src, src)                    # -1 -> 1
        src = jnp.where(src > n - 1, 2 * (n - 1) - src, src)   # n  -> n-2
        a = a.at[idx, src].add(1.0)
    return a


def _ssim_map(mu_x, mu_y, ex2, ey2, exy, approx_recip):
    # sigma = E[p^2] - mu^2 matches the PyTorch module; cancellation-prone for
    # large-magnitude inputs but fine for [0, 1] images.
    sigma_x = ex2 - mu_x * mu_x
    sigma_y = ey2 - mu_y * mu_y
    sigma_xy = exy - mu_x * mu_y
    ssim_n = (2.0 * mu_x * mu_y + C1) * (2.0 * sigma_xy + C2)
    ssim_d = (mu_x * mu_x + mu_y * mu_y + C1) * (sigma_x + sigma_y + C2)
    if approx_recip:
        r = pl.reciprocal(ssim_d, approx=True)   # EUP slot
        r = r * (2.0 - ssim_d * r)               # one Newton step -> ~f32 exact
        ratio = ssim_n * r
    else:
        ratio = ssim_n / ssim_d                  # exact divide
    return jnp.clip((1.0 - ratio) * 0.5, 0.0, 1.0)


def _ssim_kernel_kron(x_ref, y_ref, k_ref, o_ref, *, approx_recip):
    # x_ref / y_ref / o_ref: (1, B, HW); k_ref: (HW, HW) resident constant.
    x = x_ref[0].astype(jnp.float32)
    y = y_ref[0].astype(jnp.float32)
    k = k_ref[...]

    def pool(p):   # 3x3 reflect avg-pool == one MXU matmul (1/9 folded into k)
        return jnp.dot(p, k, preferred_element_type=jnp.float32,
                       precision=_HIGHEST)

    mu_x, mu_y = pool(x), pool(y)
    ex2, ey2, exy = pool(x * x), pool(y * y), pool(x * y)
    o_ref[0] = _ssim_map(mu_x, mu_y, ex2, ey2, exy, approx_recip).astype(o_ref.dtype)


def _ssim_kernel_sep(x_ref, y_ref, ah_ref, aw_ref, o_ref, *, approx_recip):
    # x_ref / y_ref / o_ref: (1, B, H, W); ah_ref: (H, H); aw_ref: (W, W).
    x = x_ref[0].astype(jnp.float32)
    y = y_ref[0].astype(jnp.float32)
    b, h, w = x.shape
    # Broadcast the banded (1/3-scaled) operators over the plane batch so both
    # contractions are plain batched MXU matmuls (no transposes, no rolls).
    aw_b = jnp.broadcast_to(aw_ref[...], (b, w, w))
    ah_b = jnp.broadcast_to(ah_ref[...], (b, h, h))

    def pool(p):
        t = jnp.einsum("bhw,bow->bho", p, aw_b,
                       preferred_element_type=jnp.float32, precision=_HIGHEST)
        return jnp.einsum("boh,bhw->bow", ah_b, t,
                          preferred_element_type=jnp.float32, precision=_HIGHEST)

    mu_x, mu_y = pool(x), pool(y)
    ex2, ey2, exy = pool(x * x), pool(y * y), pool(x * y)
    o_ref[0] = _ssim_map(mu_x, mu_y, ex2, ey2, exy, approx_recip).astype(o_ref.dtype)


def _vmem_capacity_bytes():
    try:
        return int(pltpu.get_tpu_info().vmem_capacity_bytes)
    except Exception:
        return 64 * 1024 * 1024          # v7x floor; safe on every generation


def _planes_per_block(nc, hw, vmem_cap):
    plane_bytes = hw * 4
    # Target ~0.5-1 MiB of input per grid step (HBM roofline), capped by a VMEM
    # budget accounting for ~24 live per-plane f32 intermediates + double
    # buffered in/out blocks.
    target_b = max(1, (768 * 1024) // plane_bytes)
    budget_b = max(1, (vmem_cap // 4) // (plane_bytes * 24))
    b_max = max(1, min(target_b, budget_b, nc))
    divisors = [d for d in range(1, b_max + 1) if nc % d == 0]
    even_grid = [d for d in divisors if (nc // d) % 2 == 0]   # balance v7x 2 TCs
    multi_step = [d for d in divisors if nc // d >= 2]
    pool = even_grid or multi_step or divisors
    return max(pool)


def _vmem_limit_bytes(block_bytes, const_bytes, vmem_cap):
    # 2 in + 1 out blocks double-buffered, ~16 live per-plane intermediates,
    # resident pooling operator(s), ~1 MiB compiler-scratch headroom.
    need = 6 * block_bytes + 16 * block_bytes + 2 * const_bytes + (1 << 20)
    return int(min(max(need, 32 << 20), (vmem_cap * 3) // 4))


def ssim_pallas(x, y, *, approx_recip=True, planes_per_block=None,
                ship_bf16=False, kron_max_hw=1024):
    """SSIM loss map with the same semantics as the PyTorch SSIM module.

    x, y: (N, C, H, W). Returns (N, C, H, W) float32 clamp((1 - SSIM)/2, 0, 1).
    """
    assert x.shape == y.shape and x.ndim == 4
    N, C, H, W = x.shape
    assert H >= 2 and W >= 2, "reflect(1) padding needs H, W >= 2"
    NC, HW = N * C, H * W

    vmem_cap = _vmem_capacity_bytes()
    b = planes_per_block if planes_per_block is not None else _planes_per_block(NC, HW, vmem_cap)
    # b must divide N*C so no HBM-side zero-pad copy is ever materialised.
    assert NC % b == 0, "planes_per_block must divide N*C"
    G = NC // b

    # bf16 shipping halves HBM reads (mainly a v5e/v6e win); compute stays f32.
    in_dtype = jnp.bfloat16 if ship_bf16 else jnp.float32
    xf = x.astype(in_dtype)
    yf = y.astype(in_dtype)

    if HW <= kron_max_hw:
        # pooled_flat = flat_plane @ K,  K = kron(A_H, A_W)^T / 9  (HW, HW).
        k_const = (jnp.kron(_avg3_reflect_matrix(H), _avg3_reflect_matrix(W)).T
                   * jnp.float32(1.0 / 9.0))
        x_in = xf.reshape(G, b, HW)
        y_in = yf.reshape(G, b, HW)
        kernel = functools.partial(_ssim_kernel_kron, approx_recip=approx_recip)
        in_specs = [
            pl.BlockSpec((1, b, HW), lambda g: (g, 0, 0)),
            pl.BlockSpec((1, b, HW), lambda g: (g, 0, 0)),
            pl.BlockSpec((HW, HW), lambda g: (0, 0)),     # stays resident
        ]
        out_specs = pl.BlockSpec((1, b, HW), lambda g: (g, 0, 0))
        out_shape = jax.ShapeDtypeStruct((G, b, HW), jnp.float32)
        consts = (k_const,)
        const_bytes = HW * HW * 4
    else:
        ah = _avg3_reflect_matrix(H) * jnp.float32(1.0 / 3.0)
        aw = _avg3_reflect_matrix(W) * jnp.float32(1.0 / 3.0)
        x_in = xf.reshape(G, b, H, W)
        y_in = yf.reshape(G, b, H, W)
        kernel = functools.partial(_ssim_kernel_sep, approx_recip=approx_recip)
        in_specs = [
            pl.BlockSpec((1, b, H, W), lambda g: (g, 0, 0, 0)),
            pl.BlockSpec((1, b, H, W), lambda g: (g, 0, 0, 0)),
            pl.BlockSpec((H, H), lambda g: (0, 0)),
            pl.BlockSpec((W, W), lambda g: (0, 0)),
        ]
        out_specs = pl.BlockSpec((1, b, H, W), lambda g: (g, 0, 0, 0))
        out_shape = jax.ShapeDtypeStruct((G, b, H, W), jnp.float32)
        consts = (ah, aw)
        const_bytes = (H * H + W * W) * 4

    block_bytes = b * HW * 4
    # TODO(synk): if DMA is still exposed on v5e after enlarging b, raise input
    # pipelining depth with pipeline_mode=pl.Buffered(3) on the two in_specs.
    out = pl.pallas_call(
        kernel,
        out_shape=out_shape,
        grid_spec=pltpu.PrefetchScalarGridSpec(
            num_scalar_prefetch=0,
            grid=(G,),
            in_specs=in_specs,
            out_specs=out_specs,
        ),
        compiler_params=pltpu.CompilerParams(
            dimension_semantics=("parallel",),
            vmem_limit_bytes=_vmem_limit_bytes(block_bytes, const_bytes, vmem_cap),
        ),
    )(x_in, y_in, *consts)

    return out.reshape(N, C, H, W)


def ref_ssim(x, y):
    """Pure-JAX reference of the exact PyTorch SSIM math (reflect pad + pool)."""
    N, C, H, W = x.shape
    pad = ((0, 0), (0, 0), (1, 1), (1, 1))
    xp = jnp.pad(x, pad, mode="reflect")
    yp = jnp.pad(y, pad, mode="reflect")

    def pool(a):
        acc = jnp.zeros((N, C, H, W), jnp.float32)
        for di in range(3):
            for dj in range(3):
                acc = acc + a[:, :, di:di + H, dj:dj + W]
        return acc / 9.0

    mu_x, mu_y = pool(xp), pool(yp)
    sig_x = pool(xp * xp) - mu_x ** 2
    sig_y = pool(yp * yp) - mu_y ** 2
    sig_xy = pool(xp * yp) - mu_x * mu_y
    n = (2 * mu_x * mu_y + C1) * (2 * sig_xy + C2)
    d = (mu_x ** 2 + mu_y ** 2 + C1) * (sig_x + sig_y + C2)
    return jnp.clip((1 - n / d) / 2, 0.0, 1.0)


if __name__ == "__main__":
    key = jax.random.PRNGKey(0)
    kx, ky = jax.random.split(key)
    N, C, H, W = 2, 4, 16, 16
    x = jax.random.uniform(kx, (N, C, H, W), dtype=jnp.float32)
    y = jax.random.uniform(ky, (N, C, H, W), dtype=jnp.float32)

    ref = ref_ssim(x, y)

    # Kronecker/MXU path (small planes), exact divide.
    out_exact = ssim_pallas(x, y, approx_recip=False)
    jax.block_until_ready(out_exact)
    assert out_exact.shape == (N, C, H, W)
    err = float(jnp.max(jnp.abs(out_exact - ref)))
    assert err < 2e-5, f"exact kron path error {err}"

    # Default fast path: EUP approx reciprocal + one Newton step.
    out_fast = ssim_pallas(x, y)
    jax.block_until_ready(out_fast)
    err = float(jnp.max(jnp.abs(out_fast - ref)))
    assert err < 1e-4, f"fast path error {err}"

    # Separable banded-matmul path (used for large planes), forced here at a
    # small shape purely to validate it compiles and matches the reference.
    out_sep = ssim_pallas(x, y, approx_recip=False, kron_max_hw=0)
    jax.block_until_ready(out_sep)
    err = float(jnp.max(jnp.abs(out_sep - ref)))
    assert err < 2e-5, f"exact separable path error {err}"

    print("KERNEL_OK")
</pallas_src>

<mosaic_0001>
module attributes {stable_mosaic.version = 11 : i64} {
  func.func @_ssim_kernel_kron(%arg0: i32, %arg1: memref<1x4x256xf32, #tpu.memory_space<vmem>>, %arg2: memref<1x4x256xf32, #tpu.memory_space<vmem>>, %arg3: memref<256x256xf32, #tpu.memory_space<vmem>>, %arg4: memref<1x4x256xf32, #tpu.memory_space<vmem>>) attributes {dimension_semantics = [#tpu.dimension_semantics<parallel>], iteration_bounds = array<i64: 2>, scalar_prefetch = 0 : i64, scratch_operands = 0 : i64, tpu.core_type = #tpu.core_type<tc>, window_params = [{transform_indices = @transform_0, window_bounds = array<i64: 1, 4, 256>}, {transform_indices = @transform_1, window_bounds = array<i64: 1, 4, 256>}, {pipeline_mode = #tpu.pipeline_mode<synchronous>, transform_indices = @transform_2, window_bounds = array<i64: 256, 256>}, {transform_indices = @transform_3, window_bounds = array<i64: 1, 4, 256>}]} {
    %c0 = arith.constant 0 : index
    %c0_0 = arith.constant 0 : index
    %c0_1 = arith.constant 0 : index
    %0 = vector.load %arg1[%c0, %c0_0, %c0_1] : memref<1x4x256xf32, #tpu.memory_space<vmem>>, vector<1x4x256xf32>
    %1 = vector.shape_cast %0 : vector<1x4x256xf32> to vector<4x256xf32>
    %c0_2 = arith.constant 0 : index
    %c0_3 = arith.constant 0 : index
    %c0_4 = arith.constant 0 : index
    %2 = vector.load %arg2[%c0_2, %c0_3, %c0_4] : memref<1x4x256xf32, #tpu.memory_space<vmem>>, vector<1x4x256xf32>
    %3 = vector.shape_cast %2 : vector<1x4x256xf32> to vector<4x256xf32>
    %c0_5 = arith.constant 0 : index
    %c0_6 = arith.constant 0 : index
    %4 = vector.load %arg3[%c0_5, %c0_6] : memref<256x256xf32, #tpu.memory_space<vmem>>, vector<256x256xf32>
    %cst = arith.constant dense<0.000000e+00> : vector<4x256xf32>
    %5 = tpu.matmul %1, %4, %cst {dimension_numbers = #tpu.dot_dimension_numbers<[1], [0], [0], [1], [0, 0, 1, 1], [], []>, precision = #tpu.contract_precision<fp32>} : vector<4x256xf32>, vector<256x256xf32>, vector<4x256xf32> -> vector<4x256xf32>
    %cst_7 = arith.constant dense<0.000000e+00> : vector<4x256xf32>
    %6 = tpu.matmul %3, %4, %cst_7 {dimension_numbers = #tpu.dot_dimension_numbers<[1], [0], [0], [1], [0, 0, 1, 1], [], []>, precision = #tpu.contract_precision<fp32>} : vector<4x256xf32>, vector<256x256xf32>, vector<4x256xf32> -> vector<4x256xf32>
    %7 = arith.mulf %1, %1 : vector<4x256xf32>
    %cst_8 = arith.constant dense<0.000000e+00> : vector<4x256xf32>
    %8 = tpu.matmul %7, %4, %cst_8 {dimension_numbers = #tpu.dot_dimension_numbers<[1], [0], [0], [1], [0, 0, 1, 1], [], []>, precision = #tpu.contract_precision<fp32>} : vector<4x256xf32>, vector<256x256xf32>, vector<4x256xf32> -> vector<4x256xf32>
    %9 = arith.mulf %3, %3 : vector<4x256xf32>
    %cst_9 = arith.constant dense<0.000000e+00> : vector<4x256xf32>
    %10 = tpu.matmul %9, %4, %cst_9 {dimension_numbers = #tpu.dot_dimension_numbers<[1], [0], [0], [1], [0, 0, 1, 1], [], []>, precision = #tpu.contract_precision<fp32>} : vector<4x256xf32>, vector<256x256xf32>, vector<4x256xf32> -> vector<4x256xf32>
    %11 = arith.mulf %1, %3 : vector<4x256xf32>
    %cst_10 = arith.constant dense<0.000000e+00> : vector<4x256xf32>
    %12 = tpu.matmul %11, %4, %cst_10 {dimension_numbers = #tpu.dot_dimension_numbers<[1], [0], [0], [1], [0, 0, 1, 1], [], []>, precision = #tpu.contract_precision<fp32>} : vector<4x256xf32>, vector<256x256xf32>, vector<4x256xf32> -> vector<4x256xf32>
    %13 = arith.mulf %5, %5 : vector<4x256xf32>
    %14 = arith.subf %8, %13 : vector<4x256xf32>
    %15 = arith.mulf %6, %6 : vector<4x256xf32>
    %16 = arith.subf %10, %15 : vector<4x256xf32>
    %17 = arith.mulf %5, %6 : vector<4x256xf32>
    %18 = arith.subf %12, %17 : vector<4x256xf32>
    %cst_11 = arith.constant 2.000000e+00 : f32
    %19 = vector.broadcast %cst_11 : f32 to vector<4x256xf32>
    %20 = arith.mulf %19, %5 : vector<4x256xf32>
    %21 = arith.mulf %20, %6 : vector<4x256xf32>
    %cst_12 = arith.constant 9.99999974E-5 : f32
    %22 = vector.broadcast %cst_12 : f32 to vector<4x256xf32>
    %23 = arith.addf %21, %22 : vector<4x256xf32>
    %cst_13 = arith.constant 2.000000e+00 : f32
    %24 = vector.broadcast %cst_13 : f32 to vector<4x256xf32>
    %25 = arith.mulf %24, %18 : vector<4x256xf32>
    %cst_14 = arith.constant 8.99999984E-4 : f32
    %26 = vector.broadcast %cst_14 : f32 to vector<4x256xf32>
    %27 = arith.addf %25, %26 : vector<4x256xf32>
    %28 = arith.mulf %23, %27 : vector<4x256xf32>
    %29 = arith.mulf %5, %5 : vector<4x256xf32>
    %30 = arith.mulf %6, %6 : vector<4x256xf32>
    %31 = arith.addf %29, %30 : vector<4x256xf32>
    %cst_15 = arith.constant 9.99999974E-5 : f32
    %32 = vector.broadcast %cst_15 : f32 to vector<4x256xf32>
    %33 = arith.addf %31, %32 : vector<4x256xf32>
    %34 = arith.addf %14, %16 : vector<4x256xf32>
    %cst_16 = arith.constant 8.99999984E-4 : f32
    %35 = vector.broadcast %cst_16 : f32 to vector<4x256xf32>
    %36 = arith.addf %34, %35 : vector<4x256xf32>
    %37 = arith.mulf %33, %36 : vector<4x256xf32>
    %38 = arith.divf %28, %37 : vector<4x256xf32>
    %cst_17 = arith.constant 1.000000e+00 : f32
    %39 = vector.broadcast %cst_17 : f32 to vector<4x256xf32>
    %40 = arith.subf %39, %38 : vector<4x256xf32>
    %cst_18 = arith.constant 5.000000e-01 : f32
    %41 = vector.broadcast %cst_18 : f32 to vector<4x256xf32>
    %42 = arith.mulf %40, %41 : vector<4x256xf32>
    %cst_19 = arith.constant 0.000000e+00 : f32
    %cst_20 = arith.constant 1.000000e+00 : f32
    %43 = vector.broadcast %cst_19 : f32 to vector<4x256xf32>
    %44 = arith.maximumf %43, %42 : vector<4x256xf32>
    %45 = vector.broadcast %cst_20 : f32 to vector<4x256xf32>
    %46 = arith.minimumf %45, %44 : vector<4x256xf32>
    %c0_21 = arith.constant 0 : index
    %c0_22 = arith.constant 0 : index
    %c0_23 = arith.constant 0 : index
    %47 = vector.load %arg4[%c0_21, %c0_22, %c0_23] : memref<1x4x256xf32, #tpu.memory_space<vmem>>, vector<1x4x256xf32>
    %48 = vector.shape_cast %47 : vector<1x4x256xf32> to vector<4x256xf32>
    %49 = vector.shape_cast %46 : vector<4x256xf32> to vector<1x4x256xf32>
    tpu.vector_store %arg4[%c0_21, %c0_22, %c0_23], %49 {strides = array<i32>} : memref<1x4x256xf32, #tpu.memory_space<vmem>>, vector<1x4x256xf32>,
    return
  }
  func.func @transform_0(%arg0: i32) -> (i32, i32, i32) {
    %c0_i32 = arith.constant 0 : i32
    %c0_i32_0 = arith.constant 0 : i32
    %c0_i32_1 = arith.constant 0 : i32
    return %arg0, %c0_i32, %c0_i32_0 : i32, i32, i32
  }
  func.func @transform_1(%arg0: i32) -> (i32, i32, i32) {
    %c0_i32 = arith.constant 0 : i32
    %c0_i32_0 = arith.constant 0 : i32
    %c0_i32_1 = arith.constant 0 : i32
    return %arg0, %c0_i32, %c0_i32_0 : i32, i32, i32
  }
  func.func @transform_2(%arg0: i32) -> (i32, i32) {
    %c0_i32 = arith.constant 0 : i32
    %c0_i32_0 = arith.constant 0 : i32
    %c0_i32_1 = arith.constant 0 : i32
    return %c0_i32, %c0_i32_0 : i32, i32
  }
  func.func @transform_3(%arg0: i32) -> (i32, i32, i32) {
    %c0_i32 = arith.constant 0 : i32
    %c0_i32_0 = arith.constant 0 : i32
    %c0_i32_1 = arith.constant 0 : i32
    return %arg0, %c0_i32, %c0_i32_0 : i32, i32, i32
  }
}

</mosaic_0001>

<bundles_post_ra>
// kernel: tpu_custom_call.1
= control target key start
LH: loop header
LB: loop body
LE: loop exit
PB: predicated region body
PF: predicated region fallthrough
CT: control target
= control target key end

     0   :  { %8 = vsyncpa [#allocation3], 0  ;;  %s11723_s0 = inlined_call_operand.hbm [shape: f32[2,4,256], index: 0, kind: input, shape index: {}]   ;;  %s11724_s1 = inlined_call_operand.hbm [shape: f32[2,4,256], index: 1, kind: input, shape index: {}]   ;;  %s11725_s2 = inlined_call_operand.hbm [shape: f32[256,256], index: 2, kind: input, shape index: {}]   ;;  %s11726_s3 = inlined_call_operand.hbm [shape: f32[2,4,256], index: 3, kind: output, shape index: {}]  }
   0x1   :  { %10 = vsyncpa [#allocation3 + $0x1], 0 }
   0x2   :  { %11 = vsyncpa [#allocation6], 0 }
   0x3   :  { %13 = vsyncpa [#allocation6 + $0x1], 0 }
   0x4   :  { %14 = vsyncpa [#allocation4], 0 }
   0x5   :  { %16 = vsyncpa [#allocation4 + $0x1], 0  ;;  %s9165_s12 = smov 0   ;;  %s9167_s13 = smov 0  }
   0x6   :  { %s9169_s14 = smov 0   ;;  %s9171_s15 = smov 0  }
   0x7 LB: > { %s9186_s16 = sadd.s32 4294967295, %s9137_s15   ;;  %s6911_s17 = sadd.s32 4294967294, %s9137_s15   ;;  %s9137_s15 = sphi %s9171_s15, %s12805_s15   ;;  %s9133_s14 = sphi %s9169_s14, %s12804_s14   ;;  %s9129_s13 = sphi %s9167_s13, %s12803_s13   ;;  %s9125_s12 = sphi %s9165_s12, %s12802_s12  }
   0x8   : > { %p42_p0 = scmp.ne.s32.totalorder %s9129_s13, %s9125_s12  ;;  %p11727_p1 = scmp.eq.s32.totalorder %s9186_s16, 0 }
   0x9   : > { %p119_p3 = scmp.eq.s32.totalorder %s6911_s17, 1  ;;  %p6912_p5 = scmp.ge.s32.totalorder %s9137_s15, 1 }
   0xa   : > { %p9195_p4 = por %p11727_p1, %p42_p0  ;;  %p126_p7 = scmp.lt.s32.totalorder %s9137_s15, 3 }
   0xb   : > { %p9200_p6 = por %p119_p3, %p42_p0  ;;  %s9139_s21 = smov [#allocation7]  }
   0xc   : > { %s12196_s18 = scalar_select %p9195_p4, 1, 0 }
   0xd   : > { %s12197_s19 = scalar_select %p9200_p6, 1, 0 }
   0xe   : > { %p9205_p8 = pnand %p6912_p5, %p126_p7  ;;  %s138_s22 = sshll.u32 %s9139_s21, 4  ;;  %s9209_s22 = int_to_ptr.vmem [resolvable:$true] %s138_s22 }
   0xf   : > { %s9221_s24 = sadd.s32 1, %s9137_s15   ;;  %s29_s25 = sadd.s32 1, %s9133_s14 }
  0x10   : > { %s12198_s20 = scalar_select %p9205_p8, 1, 0 }
  0x11   : > { %p8914_p9 = pneg %p9205_p8  ;;  %s26_s26 = ssub.s32 %s9137_s15, %s9221_s24 }
  0x12   : > { %s8975_s29 = scalar_lea.hbm %s11725_s2, 8192 }
  0x13   : > { %p9216_p11 = pnand %p8914_p9, %p11727_p1  ;;  %p8976_p12 = scmp.ne.s32.totalorder %s11725_s2, %s8975_s29 }
  0x14   : > { %p8982_p5 = scmp.lt.u32.totalorder %s8975_s29, %s11725_s2 }
  0x15   : > { %p8977_p13 = pneg %p9216_p11 }
  0x17   : > { %p8978_p0 = pnand %p8977_p13, %p8976_p12 }
  0x19   : > { %p8979_p3 = pneg %p8978_p0 }
  0x1b   : > { %p8984_p7 = pnand %p8982_p5, %p8979_p3 }
  0x1d   : > { %8987 = shalt.err (!%p8984_p7)
}
  0x1e   : > { %s8988_s7 = scalar_lea.vmem %s9209_s22, 8192  ;;  %p8996_p2 = scmp.lt.s32.totalorder %s9209_s22, %s9209_s22 }
  0x1f   : > { %p8989_p9 = scmp.ne.s32.totalorder %s9209_s22, %s8988_s7  ;;  %p8997_p6 = scmp.lt.s32.totalorder %s8988_s7, %s8988_s7 }
  0x21   : > { %p8991_p10 = pnand %p8989_p9, %p8977_p13  ;;  %p8998_p4 = por %p8997_p6, %p8996_p2 }
  0x23   : > { %p8992_p1 = pneg %p8991_p10 }
  0x25   : > { %p8999_p8 = pnand %p8998_p4, %p8992_p1 }
  0x27   : > { %9002 = shalt.err (!%p8999_p8)
}
  0x28   : > { %s9140_s8 = smov 256   ;;  %s9141_s9 = smov 16  }
  0x29   : > { %8917 = dma.hbm_to_vmem [thread:$0]  (!%p9216_p11), %s11725_s2, 8192, %s9209_s22, [#allocation6], %s9140_s8, %s9140_s8, %s9141_s9  }
  0x2a   : > { %p27_p2 = scmp.eq.s32.totalorder %s26_s26, 0  ;;  %p36_p1 = scmp.ne.s32.totalorder %s9133_s14, %s9129_s13 }
  0x2b   : > { %p37_p4 = scmp.eq.s32.totalorder %s9137_s15, 0  ;;  %p8930_p6 = scmp.lt.s32.totalorder %s9137_s15, 2 }
  0x2c   : > { %s9252_s17 = scalar_select %p27_p2, %s9133_s14, %s29_s25  }
  0x2d   : > { %p38_p8 = por %p37_p4, %p36_p1  ;;  %p12200_p10 = scmp.eq.s32.totalorder %s9186_s16, 1 }
  0x2e   : > { %s152_s27 = sand.u32 1, %s9133_s14   ;;  %s6931_s28 = sshll.u32 %s9137_s15, 7 }
  0x2f   : > { %p9256_p12 = por %p12200_p10, %p36_p1  ;;  %s9262_s29 = sshll.u32 %s152_s27, 3 }
  0x30   : > { %s9267_s22 = scalar_lea.hbm %s11723_s0, %s6931_s28  ;;  %s156_s25 = scalar_lea.vmem [#allocation2], %s9262_s29 }
  0x31   : > { %s12201_s21 = scalar_select %p9256_p12, 1, 0 }
  0x32   : > { %s164_s26 = sshll.u32 %s156_s25, 4  ;;  %p9270_p11 = pnand %p8930_p6, %p38_p8  ;;  %s9274_s26 = int_to_ptr.vmem [resolvable:$true] %s164_s26 }
  0x33   : > { %s9279_s7 = scalar_lea.hbm %s11724_s1, %s6931_s28  ;;  %s153_s8 = scalar_lea.sflag [#allocation3], %s152_s27 }
  0x34   : > { %s9003_s9 = scalar_lea.hbm %s9267_s22, 128  ;;  %p9005_p0 = pneg %p9270_p11 }
  0x35   : > { %p9004_p13 = scmp.ne.s32.totalorder %s9267_s22, %s9003_s9  ;;  %s9008_s23 = scalar_lea.hbm %s11723_s0, 256 }
  0x36   : > { %p9009_p7 = scmp.lt.u32.totalorder %s9267_s22, %s11723_s0  ;;  %p9010_p9 = scmp.lt.u32.totalorder %s9008_s23, %s9003_s9 }
  0x37   : > { %p9006_p3 = pnand %p9005_p0, %p9004_p13  ;;  %p9012_p1 = scmp.lt.u32.totalorder %s9003_s9, %s9267_s22 }
  0x38   : > { %p9011_p2 = por %p9010_p9, %p9009_p7 }
  0x39   : > { %p9007_p5 = pneg %p9006_p3 }
  0x3a   : > { %p9013_p4 = por %p9012_p1, %p9011_p2 }
  0x3c   : > { %p9014_p6 = pnand %p9013_p4, %p9007_p5 }
  0x3e   : > { %9017 = shalt.err (!%p9014_p6)
}
  0x3f   : > { %s9018_s27 = scalar_lea.vmem %s9274_s26, 128  ;;  %s9142_s28 = smov [#allocation2]  }
  0x40   : > { %p9019_p8 = scmp.ne.s32.totalorder %s9274_s26, %s9018_s27  ;;  %s9023_s5 = sshll.u32 %s9142_s28, 4  ;;  %s9024_s5 = int_to_ptr.vmem [resolvable:$false] %s9023_s5 }
  0x41   : > { %s9025_s6 = scalar_lea.vmem %s9024_s5, 256  ;;  %p9026_p3 = scmp.lt.s32.totalorder %s9274_s26, %s9024_s5 }
  0x42   : > { %p9021_p10 = pnand %p9019_p8, %p9005_p0  ;;  %p9027_p7 = scmp.lt.s32.totalorder %s9025_s6, %s9018_s27 }
  0x44   : > { %p9022_p13 = pneg %p9021_p10  ;;  %p9028_p9 = por %p9027_p7, %p9026_p3 }
  0x46   : > { %p9029_p2 = pnand %p9028_p9, %p9022_p13 }
  0x48   : > { %9032 = shalt.err (!%p9029_p2)
}
  0x49   : > { %8921 = dma.hbm_to_vmem [thread:$0]  (!%p9270_p11), %s9267_s22, 128, %s9274_s26, %s153_s8  }
  0x4a   : > { %s171_s9 = sand.u32 1, %s9137_s15   ;;  %s175_s10 = scalar_lea.vmem [#allocation5], %s9262_s29 }
  0x4b   : > { %s183_s11 = sshll.u32 %s175_s10, 4  ;;  %s172_s23 = scalar_lea.sflag [#allocation6], %s171_s9  ;;  %s184_s11 = int_to_ptr.vmem [resolvable:$true] %s183_s11 }
  0x4c   : > { %s9033_s30 = scalar_lea.hbm %s9279_s7, 128  ;;  %s9038_s28 = scalar_lea.hbm %s11724_s1, 256 }
  0x4d   : > { %p9034_p5 = scmp.ne.s32.totalorder %s9279_s7, %s9033_s30  ;;  %p9039_p6 = scmp.lt.u32.totalorder %s9279_s7, %s11724_s1 }
  0x4e   : > { %p9040_p8 = scmp.lt.u32.totalorder %s9038_s28, %s9033_s30  ;;  %p9042_p13 = scmp.lt.u32.totalorder %s9033_s30, %s9279_s7 }
  0x4f   : > { %p9036_p1 = pnand %p9034_p5, %p9005_p0 }
  0x50   : > { %p9041_p10 = por %p9040_p8, %p9039_p6 }
  0x51   : > { %p9037_p4 = pneg %p9036_p1 }
  0x52   : > { %p9043_p3 = por %p9042_p13, %p9041_p10 }
  0x54   : > { %p9044_p7 = pnand %p9043_p3, %p9037_p4 }
  0x56   : > { %9047 = shalt.err (!%p9044_p7)
}
  0x57   : > { %s9048_s29 = scalar_lea.vmem %s184_s11, 128  ;;  %s9143_s22 = smov [#allocation5]  }
  0x58   : > { %p9049_p9 = scmp.ne.s32.totalorder %s184_s11, %s9048_s29  ;;  %s9053_s26 = sshll.u32 %s9143_s22, 4  ;;  %s9054_s26 = int_to_ptr.vmem [resolvable:$false] %s9053_s26 }
  0x59   : > { %s9055_s8 = scalar_lea.vmem %s9054_s26, 256  ;;  %p9056_p1 = scmp.lt.s32.totalorder %s184_s11, %s9054_s26 }
  0x5a   : > { %p9051_p2 = pnand %p9049_p9, %p9005_p0  ;;  %p9057_p12 = scmp.lt.s32.totalorder %s9055_s8, %s9048_s29 }
  0x5c   : > { %p9052_p5 = pneg %p9051_p2  ;;  %p9058_p6 = por %p9057_p12, %p9056_p1 }
  0x5e   : > { %p9059_p8 = pnand %p9058_p6, %p9052_p5 }
  0x60   : > { %9062 = shalt.err (!%p9059_p8)
}
  0x61   : > { %8924 = dma.hbm_to_vmem [thread:$0]  (!%p9270_p11), %s9279_s7, 128, %s184_s11, %s172_s23  }
  0x62   : > { %p12203_p4 = scmp.ne.s32.totalorder %s12198_s20, 0 }
  0x64   : > { %192 = sbr.rel (%p12203_p4) target bundleno = 1357 (0x54d), region = 32 }
  0x6b   : > { %s9330_s9 = sand.u32 1, %s9129_s13   ;;  %p12204_p12 = scmp.ne.s32.totalorder %s12196_s18, 0 }
  0x6c   : > { %s9333_s10 = sshll.u32 %s9330_s9, 3  ;;  %s195_s30 = scalar_lea.sflag [#allocation3], %s9330_s9 }
  0x6d   : > { %s198_s25 = scalar_lea.vmem [#allocation2], %s9333_s10 }
  0x6e   : > { %9108 = dma.done.wait (%p12204_p12), %s195_s30, 128  }
  0x6f   : > { %9110 = vsyncadd (%p12204_p12), %s195_s30, 4294967168  ;;  %s203_s20 = sand.u32 1, %s9186_s16   ;;  %s207_s7 = scalar_lea.vmem [#allocation5], %s9333_s10 }
  0x70   : > { %s204_s4 = scalar_lea.sflag [#allocation6], %s203_s20 }
  0x71   : > { %9112 = dma.done.wait (%p12204_p12), %s204_s4, 128  }
  0x72   : > { %9114 = vsyncadd (%p12204_p12), %s204_s4, 4294967168  ;;  %p12205_p11 = scmp.eq.s32.totalorder %s9186_s16, 0 }
  0x74   : > { %9116 = dma.done.wait (%p12205_p11), [#allocation6], 8192   ;;  %p12206_p0 = pmov %p12205_p11 }
  0x75   : > { %v9351_v0 = vld [vmem:[#allocation7 + $0x8] sm:$0xff]  ;;  %v9353_v1 = vld [vmem:[#allocation7 + $0x18] sm:$0xff]  ;;  %v9355_v2 = vld [vmem:[#allocation7] sm:$0xff]  ;;  %s6933_s18 = sshll.u32 %s9186_s16, 7  ;;  %s238_s11 = scalar_lea.vmem [#allocation8], %s9333_s10 }
  0x76   : > { %9118 = vsyncadd (%p12206_p0), [#allocation6], 4294959104  ;;  %v11748_v3 = vand.u32 4294901760, %v9351_v0  ;;  %v11747_v4 = vand.u32 4294901760, %v9353_v1  ;;  %v9359_v5 = vld [vmem:[#allocation7 + $0x10] sm:$0xff]  ;;  %v11746_v6 = vand.u32 4294901760, %v9355_v2  ;;  %s11679_s5 = scalar_lea.hbm %s11726_s3, %s6933_s18 }
  0x77   : > { %v9362_v7 = vld [vmem:[#allocation7 + $0x28] sm:$0xff]  ;;  %v9364_v8 = vld [vmem:[#allocation7 + $0x38] sm:$0xff]  ;;  %v11745_v9 = vand.u32 4294901760, %v9359_v5  ;;  %v9369_v12 = vld [vmem:[#allocation7 + $0x20] sm:$0xff]  ;;  %s6809_s23 = sshll.u32 %s238_s11, 4  ;;  %s6795_s6 = scalar_lea.sflag [#allocation4], %s9330_s9  ;;  %s11681_s23 = int_to_ptr.vmem [resolvable:$true] %s6809_s23 }
  0x78   : > { %v11744_v10 = vand.u32 4294901760, %v9362_v7  ;;  %v11743_v11 = vand.u32 4294901760, %v9364_v8  ;;  %v9371_v13 = vld [vmem:[#allocation7 + $0x30] sm:$0xff]  ;;  %v9373_v14 = vld [vmem:[#allocation7 + $0x48] sm:$0xff]  ;;  %v9379_v15 = vpack.c.bf16 %v11747_v4, %v11748_v3  ;;  %v11742_v16 = vand.u32 4294901760, %v9369_v12  ;;  %v9383_v18 = vld [vmem:[#allocation7 + $0x58] sm:$0xff] }
  0x79   : > { %v11741_v17 = vand.u32 4294901760, %v9371_v13  ;;  %v11738_v19 = vand.u32 4294901760, %v9373_v14  ;;  %v9386_v20 = vld [vmem:[#allocation7 + $0x40] sm:$0xff]  ;;  %v9388_v21 = vld [vmem:[#allocation7 + $0x50] sm:$0xff]  ;;  %v9394_v22 = vpack.c.bf16 %v11745_v9, %v11746_v6  ;;  %v11737_v24 = vand.u32 4294901760, %v9383_v18  ;;  %v9403_v25 = vld [vmem:[#allocation7 + $0x68] sm:$0xff] }
  0x7a   : > { %12207 = vst [vmem:[#allocation13_spill] sm:$0xff] %v9379_v15  ;;  %v9400_v23 = vpack.c.bf16 %v11743_v11, %v11744_v10  ;;  %v9405_v26 = vld [vmem:[#allocation7 + $0x78] sm:$0xff]  ;;  %6935 = vmatprep.subr.bf16.mxu1 %v9379_v15  ;;  %7127 = vmatprep.subr.bf16.mxu0 %v9379_v15  ;;  %v11736_v28 = vand.u32 4294901760, %v9386_v20  ;;  %v11735_v29 = vand.u32 4294901760, %v9388_v21  ;;  %v9419_v30 = vld [vmem:[#allocation7 + $0x60] sm:$0xff]  ;;  %v9421_v31 = vld [vmem:[#allocation7 + $0x70] sm:$0xff] }
  0x7b   : > { %12208 = vst [vmem:[#allocation14_spill] sm:$0xff] %v9394_v22  ;;  %6937 = vmatpush1.bf16.msra.mxu1 %v9394_v22  ;;  %7129 = vmatpush1.bf16.msra.mxu0 %v9394_v22  ;;  %v9415_v27 = vpack.c.bf16 %v11741_v17, %v11742_v16  ;;  %v9429_v32 = vpack.c.bf16 %v11737_v24, %v11738_v19  ;;  %v11734_v33 = vand.u32 4294901760, %v9403_v25  ;;  %v11733_v34 = vand.u32 4294901760, %v9405_v26  ;;  %v9433_v35 = vld [vmem:[#allocation7 + $0x88] sm:$0xff]  ;;  %v9435_v36 = vld [vmem:[#allocation7 + $0x98] sm:$0xff]  ;;  %v9447_v40 = vld [vmem:[#allocation7 + $0x80] sm:$0xff] }
  0x7c   : > { %12209 = vst [vmem:[#allocation15_spill] sm:$0xff] %v9400_v23  ;;  %6939 = vmatprep.subr.bf16.mxu1 %v9400_v23  ;;  %7131 = vmatprep.subr.bf16.mxu0 %v9400_v23  ;;  %v11732_v37 = vand.u32 4294901760, %v9419_v30  ;;  %v11731_v38 = vand.u32 4294901760, %v9421_v31  ;;  %v9445_v39 = vpack.c.bf16 %v11735_v29, %v11736_v28  ;;  %v9449_v41 = vld [vmem:[#allocation7 + $0x90] sm:$0xff]  ;;  %v9451_v42 = vld [vmem:[#allocation7 + $0xa8] sm:$0xff]  ;;  %v11740_v44 = vand.u32 4294901760, %v9433_v35 }
  0x7d   : > { %12210 = vst [vmem:[#allocation16_spill] sm:$0xff] %v9415_v27  ;;  %12211 = vst [vmem:[#allocation17_spill] sm:$0xff] %v9429_v32  ;;  %v9459_v43 = vpack.c.bf16 %v11733_v34, %v11734_v33  ;;  %v11739_v45 = vand.u32 4294901760, %v9435_v36  ;;  %v9463_v46 = vld [vmem:[#allocation7 + $0xb8] sm:$0xff]  ;;  %v9465_v47 = vld [vmem:[#allocation7 + $0xa0] sm:$0xff]  ;;  %v11754_v52 = vand.u32 4294901760, %v9447_v40 }
  0x7e   : > { %12212 = vst [vmem:[#allocation18_spill] sm:$0xff] %v9445_v39  ;;  %v9467_v48 = vld [vmem:[#allocation7 + $0xb0] sm:$0xff]  ;;  %v9469_v49 = vld [vmem:[#allocation7 + $0xc8] sm:$0xff]  ;;  %v9471_v50 = vld [vmem:[#allocation7 + $0xd8] sm:$0xff]  ;;  %v9477_v51 = vpack.c.bf16 %v11731_v38, %v11732_v37  ;;  %v11749_v53 = vand.u32 4294901760, %v9449_v41  ;;  %v11753_v56 = vand.u32 4294901760, %v9451_v42 }
  0x7f   : > { %6941 = vmatpush1.bf16.msra.mxu1 %v9415_v27  ;;  %7133 = vmatpush1.bf16.msra.mxu0 %v9415_v27  ;;  %12213 = vst [vmem:[#allocation19_spill] sm:$0xff] %v9459_v43  ;;  %12214 = vst [vmem:[#allocation20_spill] sm:$0xff] %v9471_v50  ;;  %v9481_v54 = vld [vmem:[#allocation7 + $0xc0] sm:$0xff]  ;;  %v9483_v55 = vld [vmem:[#allocation7 + $0xd0] sm:$0xff]  ;;  %v11750_v57 = vand.u32 4294901760, %v9463_v46  ;;  %v11752_v58 = vand.u32 4294901760, %v9465_v47  ;;  %v9501_v62 = vpack.c.bf16 %v11739_v45, %v11740_v44 }
  0x80   : > { %6943 = vmatprep.subr.bf16.mxu1 %v9429_v32  ;;  %7135 = vmatprep.subr.bf16.mxu0 %v9429_v32  ;;  %12215 = vst [vmem:[#allocation21_spill] sm:$0xff] %v9477_v51  ;;  %12216 = vst [vmem:[#allocation22_spill] sm:$0xff] %v9481_v54  ;;  %v11751_v59 = vand.u32 4294901760, %v9467_v48  ;;  %v9491_v60 = vld [vmem:[#allocation7 + $0xe8] sm:$0xff]  ;;  %v9493_v61 = vld [vmem:[#allocation7 + $0xf8] sm:$0xff]  ;;  %v11760_v63 = vand.u32 4294901760, %v9469_v49  ;;  %v9533_v9 = vpack.c.bf16 %v11749_v53, %v11754_v52 }
  0x81   : > { %12217 = vst [vmem:[#allocation23_spill] sm:$0xff] %v9483_v55  ;;  %12218 = vst [vmem:[#allocation24_spill] sm:$0xff] %v9491_v60  ;;  %v11759_v38 = vand.u32 4294901760, %v9471_v50  ;;  %v9505_v37 = vld [vmem:[#allocation7 + $0xe0] sm:$0xff]  ;;  %v9507_v34 = vld [vmem:[#allocation7 + $0xf0] sm:$0xff]  ;;  %v11769_v29 = vand.u32 4294901760, %v9481_v54  ;;  %v9539_v6 = vpack.c.bf16 %v11750_v57, %v11753_v56 }
  0x82   : > { %12219 = vst [vmem:[#allocation25_spill] sm:$0xff] %v9493_v61  ;;  %12220 = vst [vmem:[#allocation26_spill] sm:$0xff] %v9501_v62  ;;  %v9509_v33 = vld [vmem:[#allocation7 + $0x108] sm:$0xff]  ;;  %v9513_v24 = vld [vmem:[#allocation7 + $0x118] sm:$0xff]  ;;  %v9545_v4 = vpack.c.bf16 %v11751_v59, %v11752_v58  ;;  %v12244_v32 = vand.u32 4294901760, %v9493_v61  ;;  %s9063_s29 = scalar_lea.vmem %s11681_s23, 128 }
  0x83   : > { %6945 = vmatpush1.bf16.msra.mxu1 %v9445_v39  ;;  %7137 = vmatpush1.bf16.msra.mxu0 %v9445_v39  ;;  %12221 = vst [vmem:[#allocation27_spill] sm:$0xff] %v9505_v37  ;;  %12222 = vst [vmem:[#allocation28_spill] sm:$0xff] %v9507_v34  ;;  %v9515_v19 = vld [vmem:[#allocation7 + $0x100] sm:$0xff]  ;;  %v9517_v45 = vld [vmem:[#allocation7 + $0x110] sm:$0xff]  ;;  %v9560_v57 = vpack.c.bf16 %v11759_v38, %v11760_v63  ;;  %v12243_v39 = vand.u32 4294901760, %v9491_v60  ;;  %v12254_v22 = vand.u32 4294901760, %v9513_v24  ;;  %p9064_p10 = scmp.ne.s32.totalorder %s11681_s23, %s9063_s29 }
  0x84   : > { %6947 = vmatprep.subr.bf16.mxu1 %v9459_v43  ;;  %7139 = vmatprep.subr.bf16.mxu0 %v9459_v43  ;;  %12223 = vst [vmem:[#allocation29_spill] sm:$0xff] %v9509_v33  ;;  %12224 = vst [vmem:[#allocation30_spill] sm:$0xff] %v9517_v45  ;;  %v9521_v16 = vld [vmem:[#allocation7 + $0x128] sm:$0xff]  ;;  %v9523_v11 = vld [vmem:[#allocation7 + $0x138] sm:$0xff]  ;;  %p12799_p13 = scmp.ne.s32.totalorder %s12201_s21, 0  ;;  %s9144_s16 = smov [#allocation8]  }
  0x85   : > { %12225 = vst [vmem:[#allocation31_spill] sm:$0xff] %v9521_v16  ;;  %12226 = vst [vmem:[#allocation32_spill] sm:$0xff] %v9523_v11  ;;  %v9525_v10 = vld [vmem:[#allocation7 + $0x120] sm:$0xff]  ;;  %v9548_v17 = vld [vmem:[#allocation7 + $0x130] sm:$0xff]  ;;  %v9590_v27 = vpack.c.bf16 %v12244_v32, %v12243_v39  ;;  %v12260_v63 = vand.u32 4294901760, %v9523_v11  ;;  %s9067_s22 = sshll.u32 %s9144_s16, 4  ;;  %s9068_s22 = int_to_ptr.vmem [resolvable:$false] %s9067_s22 }
  0x86   : > { %12227 = vst [vmem:[#allocation33_spill] sm:$0xff] %v9525_v10  ;;  %12228 = vst [vmem:[#allocation34_spill] sm:$0xff] %v9533_v9  ;;  %v9550_v44 = vld [vmem:[#allocation7 + $0x148] sm:$0xff]  ;;  %v9552_v53 = vld [vmem:[#allocation7 + $0x158] sm:$0xff]  ;;  %v12262_v54 = vand.u32 4294901760, %v9525_v10  ;;  %p9065_p3 = pnand %p9064_p10, %p12799_p13  ;;  %s9069_s26 = scalar_lea.vmem %s9068_s22, 256 }
  0x87   : > { %6949 = vmatpush1.bf16.msra.mxu1 %v9477_v51  ;;  %7141 = vmatpush1.bf16.msra.mxu0 %v9477_v51  ;;  %12229 = vst [vmem:[#allocation35_spill] sm:$0xff] %v9539_v6  ;;  %12230 = vst [vmem:[#allocation36_spill] sm:$0xff] %v9545_v4  ;;  %v9565_v52 = vld [vmem:[#allocation7 + $0x140] sm:$0xff]  ;;  %v9567_v3 = vld [vmem:[#allocation7 + $0x150] sm:$0xff]  ;;  %p9070_p9 = scmp.lt.s32.totalorder %s11681_s23, %s9068_s22  ;;  %p9071_p2 = scmp.lt.s32.totalorder %s9069_s26, %s9063_s29 }
  0x88   : > { %12231 = vst [vmem:[#allocation37_spill] sm:$0xff] %v9548_v17  ;;  %12232 = vst [vmem:[#allocation38_spill] sm:$0xff] %v9550_v44  ;;  %6951 = vmatprep.subr.bf16.mxu1 %v9501_v62  ;;  %7143 = vmatprep.subr.bf16.mxu0 %v9501_v62  ;;  %v9569_v28 = vld [vmem:[#allocation7 + $0x168] sm:$0xff]  ;;  %v12238_v62 = vand.u32 4294901760, %v9483_v55  ;;  %v9580_v56 = vld [vmem:[#allocation7 + $0x178] sm:$0xff]  ;;  %p9066_p7 = pneg %p9065_p3 }
  0x89   : > { %12233 = vst [vmem:[#allocation39_spill] sm:$0xff] %v9552_v53  ;;  %12234 = vst [vmem:[#allocation40_spill] sm:$0xff] %v9560_v57  ;;  %v9582_v59 = vld [vmem:[#allocation7 + $0x160] sm:$0xff]  ;;  %v9584_v43 = vld [vmem:[#allocation7 + $0x170] sm:$0xff]  ;;  %p9072_p5 = por %p9071_p2, %p9070_p9 }
  0x8a   : > { %12235 = vst [vmem:[#allocation41_spill] sm:$0xff] %v9565_v52  ;;  %12236 = vst [vmem:[#allocation42_spill] sm:$0xff] %v9567_v3  ;;  %v9575_v51 = vpack.c.bf16 %v12238_v62, %v11769_v29  ;;  %v9595_v38 = vld [vmem:[#allocation7 + $0x188] sm:$0xff]  ;;  %v9597_v58 = vld [vmem:[#allocation7 + $0x198] sm:$0xff]  ;;  %v12250_v62 = vand.u32 4294901760, %v9505_v37  ;;  %v12251_v29 = vand.u32 4294901760, %v9507_v34 }
  0x8b   : > { %12237 = vst [vmem:[#allocation43_spill] sm:$0xff] %v9569_v28  ;;  %12240 = vst [vmem:[#allocation45_spill] sm:$0xff] %v9580_v56  ;;  %v9601_v23 = vld [vmem:[%s198_s25] sm:$0xff]  ;;  %6953 = vmatpush1.bf16.msra.mxu1 %v9533_v9  ;;  %7145 = vmatpush1.bf16.msra.mxu0 %v9533_v9  ;;  %v9617_v32 = vld [vmem:[#allocation7 + $0x190] sm:$0xff]  ;;  %v12253_v9 = vand.u32 4294901760, %v9509_v33  ;;  %v12256_v37 = vand.u32 4294901760, %v9515_v19  ;;  %p9073_p1 = pnand %p9072_p5, %p9066_p7 }
  0x8c   : > { %12239 = vst [vmem:[#allocation44_spill] sm:$0xff] %v9575_v51  ;;  %12241 = vst [vmem:[#allocation46_spill] sm:$0xff] %v9582_v59  ;;  %6955 = vmatprep.subr.bf16.mxu1 %v9539_v6  ;;  %7147 = vmatprep.subr.bf16.mxu0 %v9539_v6  ;;  %v9615_v61 = vld [vmem:[#allocation7 + $0x180] sm:$0xff]  ;;  %v9623_v39 = vpack.c.bf16 %v12251_v29, %v12250_v62  ;;  %v9627_v60 = vld [vmem:[#allocation7 + $0x1a8] sm:$0xff]  ;;  %v306_v15 = vcombine.high %v9601_v23, %v9601_v23  ;;  %v12257_v29 = vand.u32 4294901760, %v9517_v45 }
  0x8d   : > { %12242 = vst [vmem:[#allocation47_spill] sm:$0xff] %v9584_v43  ;;  %12245 = vst [vmem:[#allocation48_spill] sm:$0xff] %v9590_v27  ;;  %v9635_v55 = vpack.c.bf16 %v12254_v22, %v12253_v9  ;;  %v12259_v6 = vand.u32 4294901760, %v9521_v16  ;;  %v12263_v33 = vand.u32 4294901760, %v9548_v17  ;;  %v9655_v9 = vld [vmem:[#allocation7 + $0x1b8] sm:$0xff]  ;;  %v12265_v22 = vand.u32 4294901760, %v9550_v44 }
  0x8e   : > { %12246 = vst [vmem:[#allocation49_spill] sm:$0xff] %v9595_v38  ;;  %12247 = vst [vmem:[#allocation50_spill] sm:$0xff] %v9597_v58  ;;  %v9641_v62 = vpack.c.bf16 %v12257_v29, %v12256_v37  ;;  %v12266_v37 = vand.u32 4294901760, %v9552_v53  ;;  %v9667_v10 = vld [vmem:[#allocation7 + $0x1a0] sm:$0xff]  ;;  %v9673_v17 = vand.u32 4294901760, %v306_v15  ;;  %v12278_v44 = vand.u32 4294901760, %v9582_v59 }
  0x8f   : > { %12248 = vst [vmem:[#allocation51_spill] sm:$0xff] %v9615_v61  ;;  %12249 = vst [vmem:[#allocation52_spill] sm:$0xff] %v9617_v32  ;;  %v9647_v34 = vpack.c.bf16 %v12260_v63, %v12259_v6  ;;  %v9653_v50 = vpack.c.bf16 %v12263_v33, %v12262_v54  ;;  %6957 = vmatpush1.bf16.msra.mxu1 %v9545_v4  ;;  %7149 = vmatpush1.bf16.msra.mxu0 %v9545_v4  ;;  %v9669_v33 = vld [vmem:[#allocation7 + $0x1b0] sm:$0xff]  ;;  %v9671_v54 = vld [vmem:[#allocation7 + $0x1c8] sm:$0xff]  ;;  %v12272_v4 = vand.u32 4294901760, %v9565_v52 }
  0x90   : > { %12252 = vst [vmem:[#allocation53_spill] sm:$0xff] %v9623_v39  ;;  %12255 = vst [vmem:[#allocation54_spill] sm:$0xff] %v9635_v55  ;;  %v9663_v29 = vpack.c.bf16 %v12266_v37, %v12265_v22  ;;  %6959 = vmatprep.subr.bf16.mxu1 %v9560_v57  ;;  %7151 = vmatprep.subr.bf16.mxu0 %v9560_v57  ;;  %v12273_v22 = vand.u32 4294901760, %v9567_v3  ;;  %v12275_v63 = vand.u32 4294901760, %v9569_v28  ;;  %v12276_v6 = vand.u32 4294901760, %v9580_v56  ;;  %v9696_v45 = vld [vmem:[#allocation7 + $0x1d8] sm:$0xff] }
  0x91   : > { %12258 = vst [vmem:[#allocation55_spill] sm:$0xff] %v9641_v62  ;;  %12261 = vst [vmem:[#allocation56_spill] sm:$0xff] %v9647_v34  ;;  %v12279_v11 = vand.u32 4294901760, %v9584_v43  ;;  %v12282_v3 = vand.u32 4294901760, %v9595_v38  ;;  %v9710_v43 = vsub.f32 %v306_v15, %v9673_v17  ;;  %v12292_v15 = vand.u32 4294901760, %v9615_v61  ;;  %v9756_v61 = vld [vmem:[#allocation7 + $0x1e0] sm:$0xff] }
  0x92   : > { %12264 = vst [vmem:[#allocation57_spill] sm:$0xff] %v9653_v50  ;;  %12267 = vst [vmem:[#allocation58_spill] sm:$0xff] %v9663_v29  ;;  %v9681_v37 = vpack.c.bf16 %v12273_v22, %v12272_v4  ;;  %v9687_v53 = vpack.c.bf16 %v12276_v6, %v12275_v63  ;;  %v12283_v4 = vand.u32 4294901760, %v9597_v58  ;;  %v9705_v6 = vld [vmem:[#allocation7 + $0x1c0] sm:$0xff]  ;;  %v9707_v63 = vld [vmem:[#allocation7 + $0x1d0] sm:$0xff]  ;;  %v9738_v38 = vand.u32 4294901760, %v9601_v23 }
  0x93   : > { %12268 = vst [vmem:[#allocation59_spill] sm:$0xff] %v9667_v10  ;;  %12269 = vst [vmem:[#allocation60_spill] sm:$0xff] %v9669_v33  ;;  %v9693_v16 = vpack.c.bf16 %v12279_v11, %v12278_v44  ;;  %v12288_v11 = vand.u32 4294901760, %v9351_v0  ;;  %6961 = vmatpush1.bf16.msra.mxu1 %v9575_v51  ;;  %7153 = vmatpush1.bf16.msra.mxu0 %v9575_v51  ;;  %v9734_v58 = vld [vmem:[#allocation7 + $0x1e8] sm:$0xff]  ;;  %v9744_v51 = vld [vmem:[#allocation7 + $0x1f8] sm:$0xff]  ;;  %v12300_v57 = vand.u32 4294901760, %v9359_v5 }
  0x94   : > { %12270 = vst [vmem:[#allocation61_spill] sm:$0xff] %v9671_v54  ;;  %12271 = vst [vmem:[#allocation62_spill] sm:$0xff] %v9673_v17  ;;  %v9702_v22 = vpack.c.bf16 %v12283_v4, %v12282_v3  ;;  %v12290_v4 = vand.u32 4294901760, %v9353_v1  ;;  %v438_v3 = vand.u32 4294901760, %v9710_v43  ;;  %6963 = vmatprep.subr.bf16.mxu1 %v9590_v27  ;;  %7155 = vmatprep.subr.bf16.mxu0 %v9590_v27  ;;  %v9758_v59 = vld [vmem:[#allocation7 + $0x1f0] sm:$0xff]  ;;  %v12304_v27 = vand.u32 4294901760, %v9362_v7 }
  0x95   : > { %12274 = vst [vmem:[#allocation63_spill] sm:$0xff] %v9681_v37  ;;  %12277 = vst [vmem:[#allocation64_spill] sm:$0xff] %v9687_v53  ;;  %v9715_v44 = vsub.f32 %v9351_v0, %v12288_v11  ;;  %v12293_v0 = vand.u32 4294901760, %v9617_v32  ;;  %v9754_v32 = vsub.f32 %v9359_v5, %v12300_v57  ;;  %v12308_v5 = vand.u32 4294901760, %v9627_v60 }
  0x96   : > { %12280 = vst [vmem:[#allocation65_spill] sm:$0xff] %v9693_v16  ;;  %12281 = vst [vmem:[#allocation66_spill] sm:$0xff] %v9696_v45  ;;  %v9723_v56 = vsub.f32 %v9353_v1, %v12290_v4  ;;  %v439_v1 = vsub.f32 %v9710_v43, %v438_v3  ;;  %1180 = vmatprep.mubr.f32.mxu0 %v438_v3  ;;  %v9765_v28 = vsub.f32 %v9362_v7, %v12304_v27 }
  0x97   : > { %12284 = vst [vmem:[#allocation67_spill] sm:$0xff] %v9702_v22  ;;  %12285 = vst [vmem:[#allocation68_spill] sm:$0xff] %v9705_v6  ;;  %v9731_v11 = vpack.c.bf16 %v12293_v0, %v12292_v15  ;;  %v12298_v15 = vand.u32 4294901760, %v9355_v2  ;;  %v455_v4 = vand.u32 4294901760, %v9715_v44  ;;  %v12309_v57 = vand.u32 4294901760, %v9655_v9  ;;  %6965 = vmatpush1.bf16.msra.mxu1 %v9623_v39  ;;  %7157 = vmatpush1.bf16.msra.mxu0 %v9623_v39 }
  0x98   : > { %12286 = vst [vmem:[#allocation69_spill] sm:$0xff] %v9707_v63  ;;  %12287 = vst [vmem:[#allocation70_spill] sm:$0xff] %v9710_v43  ;;  %v12311_v43 = vand.u32 4294901760, %v9667_v10  ;;  %v12312_v3 = vand.u32 4294901760, %v9669_v33  ;;  %v467_v27 = vand.u32 4294901760, %v9723_v56  ;;  %v440_v10 = vand.u32 4294901760, %v439_v1  ;;  %6967 = vmatprep.subr.bf16.mxu1 %v9635_v55  ;;  %7159 = vmatprep.subr.bf16.mxu0 %v9635_v55 }
  0x99   : > { %12289 = vst [vmem:[#allocation71_spill] sm:$0xff] %v9715_v44  ;;  %12291 = vst [vmem:[#allocation72_spill] sm:$0xff] %v9723_v56  ;;  %v9749_v0 = vsub.f32 %v9355_v2, %v12298_v15  ;;  %v12306_v2 = vand.u32 4294901760, %v9364_v8  ;;  %v9776_v52 = vpack.c.bf16 %v12309_v57, %v12308_v5  ;;  %v12319_v1 = vand.u32 4294901760, %v9707_v63 }
  0x9a   : > { %12294 = vst [vmem:[#allocation73_spill] sm:$0xff] %v9731_v11  ;;  %12295 = vst [vmem:[#allocation74_spill] sm:$0xff] %v9734_v58  ;;  %v9782_v17 = vpack.c.bf16 %v12312_v3, %v12311_v43  ;;  %v9797_v43 = vsub.f32 %v9601_v23, %v9738_v38  ;;  %441 = vmatprep.mubr.f32.mxu1 %v440_v10  ;;  %v456_v23 = vsub.f32 %v9715_v44, %v455_v4 }
  0x9b   : > { %12296 = vst [vmem:[#allocation75_spill] sm:$0xff] %v9738_v38  ;;  %12297 = vst [vmem:[#allocation76_spill] sm:$0xff] %v9744_v51  ;;  %v9770_v15 = vsub.f32 %v9364_v8, %v12306_v2  ;;  %v12314_v8 = vand.u32 4294901760, %v9671_v54  ;;  %v12315_v2 = vand.u32 4294901760, %v9696_v45  ;;  %v461_v39 = vand.u32 4294901760, %v9749_v0  ;;  %6969 = vmatpush1.bf16.msra.mxu1 %v9641_v62  ;;  %7161 = vmatpush1.bf16.msra.mxu0 %v9641_v62 }
  0x9c   : > { %12299 = vst [vmem:[#allocation77_spill] sm:$0xff] %v9749_v0  ;;  %12301 = vst [vmem:[#allocation78_spill] sm:$0xff] %v9754_v32  ;;  %v479_v38 = vand.u32 4294901760, %v9765_v28  ;;  %v468_v3 = vsub.f32 %v9723_v56, %v467_v27  ;;  %v12321_v7 = vand.u32 4294901760, %v9369_v12  ;;  %v12325_v10 = vand.u32 4294901760, %v9373_v14  ;;  %6971 = vmatprep.subr.bf16.mxu1 %v9647_v34  ;;  %7163 = vmatprep.subr.bf16.mxu0 %v9647_v34 }
  0x9d   : > { %12302 = vst [vmem:[#allocation79_spill] sm:$0xff] %v9756_v61  ;;  %12303 = vst [vmem:[#allocation80_spill] sm:$0xff] %v9758_v59  ;;  %v9792_v5 = vpack.c.bf16 %v12315_v2, %v12314_v8  ;;  %v473_v8 = vand.u32 4294901760, %v9754_v32  ;;  %v12318_v2 = vand.u32 4294901760, %v9705_v6  ;;  %v491_v55 = vand.u32 4294901760, %v9770_v15 }
  0x9e   : > { %12305 = vst [vmem:[#allocation81_spill] sm:$0xff] %v9765_v28  ;;  %12307 = vst [vmem:[#allocation82_spill] sm:$0xff] %v9770_v15  ;;  %v9818_v45 = vsub.f32 %v9369_v12, %v12321_v7  ;;  %v12323_v6 = vand.u32 4294901760, %v9371_v13  ;;  %v12328_v56 = vand.u32 4294901760, %v9744_v51  ;;  %v462_v62 = vsub.f32 %v9749_v0, %v461_v39 }
  0x9f   : > { %12310 = vst [vmem:[#allocation83_spill] sm:$0xff] %v9776_v52  ;;  %12313 = vst [vmem:[#allocation84_spill] sm:$0xff] %v9782_v17  ;;  %v9809_v57 = vpack.c.bf16 %v12319_v1, %v12318_v2  ;;  %v9828_v2 = vsub.f32 %v9373_v14, %v12325_v10  ;;  %v12327_v1 = vand.u32 4294901760, %v9734_v58  ;;  %v12332_v14 = vand.u32 4294901760, %v9386_v20  ;;  %6973 = vmatpush1.bf16.msra.mxu1 %v9653_v50 }
  0xa0   : > { %12316 = vst [vmem:[#allocation85_spill] sm:$0xff] %v9792_v5  ;;  %12317 = vst [vmem:[#allocation86_spill] sm:$0xff] %v9797_v43  ;;  %v9823_v63 = vsub.f32 %v9371_v13, %v12323_v6  ;;  %v12330_v13 = vand.u32 4294901760, %v9383_v18  ;;  %v492_v34 = vsub.f32 %v9770_v15, %v491_v55  ;;  %v469_v51 = vand.u32 4294901760, %v468_v3  ;;  %7165 = vmatpush1.bf16.msra.mxu0 %v9653_v50 }
  0xa1   : > { %12320 = vst [vmem:[#allocation87_spill] sm:$0xff] %v9809_v57  ;;  %12322 = vst [vmem:[#allocation88_spill] sm:$0xff] %v9818_v45  ;;  %v9836_v12 = vpack.c.bf16 %v12328_v56, %v12327_v1  ;;  %v9847_v10 = vsub.f32 %v9386_v20, %v12332_v14  ;;  %v474_v56 = vsub.f32 %v9754_v32, %v473_v8  ;;  %v12334_v1 = vand.u32 4294901760, %v9388_v21 }
  0xa2   : > { %12324 = vst [vmem:[#allocation89_spill] sm:$0xff] %v9823_v63  ;;  %12326 = vst [vmem:[#allocation90_spill] sm:$0xff] %v9828_v2  ;;  %v9842_v6 = vsub.f32 %v9383_v18, %v12330_v13  ;;  %v12336_v18 = vand.u32 4294901760, %v9756_v61  ;;  %v12337_v13 = vand.u32 4294901760, %v9758_v59  ;;  %v457_v20 = vand.u32 4294901760, %v456_v23  ;;  %6975 = vmatprep.subr.bf16.mxu1 %v9663_v29  ;;  %7167 = vmatprep.subr.bf16.mxu0 %v9663_v29 }
  0xa3   : > { %12329 = vst [vmem:[#allocation91_spill] sm:$0xff] %v9836_v12  ;;  %12333 = vst [vmem:[#allocation93_spill] sm:$0xff] %v9847_v10  ;;  %v9856_v7 = vsub.f32 %v9388_v21, %v12334_v1  ;;  %v480_v14 = vsub.f32 %v9765_v28, %v479_v38  ;;  %v485_v0 = vand.u32 4294901760, %v9818_v45  ;;  %v497_v32 = vand.u32 4294901760, %v9823_v63  ;;  %6977 = vmatpush1.bf16.msra.mxu1 %v9681_v37 }
  0xa4   : > { %12331 = vst [vmem:[#allocation92_spill] sm:$0xff] %v9842_v6  ;;  %v9862_v44 = vpack.c.bf16 %v12337_v13, %v12336_v18  ;;  %v503_v58 = vand.u32 4294901760, %v9828_v2  ;;  %v9871_v21 = vpack.c.bf16 %v467_v27, %v455_v4  ;;  %v12340_v1 = vand.u32 4294901760, %v9797_v43  ;;  %7169 = vmatpush1.bf16.msra.mxu0 %v9681_v37  ;;  %6979 = vmatprep.subr.bf16.mxu1 %v9687_v53 }
  0xa5   : > { %12335 = vst [vmem:[#allocation94_spill] sm:$0xff] %v9856_v7  ;;  %v515_v18 = vand.u32 4294901760, %v9842_v6  ;;  %v509_v3 = vand.u32 4294901760, %v9847_v10  ;;  %v463_v13 = vand.u32 4294901760, %v462_v62  ;;  %v475_v15 = vand.u32 4294901760, %v474_v56  ;;  %7171 = vmatprep.subr.bf16.mxu0 %v9687_v53 }
  0xa6   : > { %12338 = vst [vmem:[#allocation95_spill] sm:$0xff] %v9862_v44  ;;  %12339 = vst [vmem:[#allocation96_spill] sm:$0xff] %v9871_v21  ;;  %v9876_v23 = vsub.f32 %v9797_v43, %v12340_v1  ;;  %v521_v28 = vand.u32 4294901760, %v9856_v7  ;;  %v12341_v4 = vand.u32 4294901760, %v9403_v25  ;;  %v9888_v50 = vpack.c.bf16 %v473_v8, %v461_v39 }
  0xa7   : > { %v481_v1 = vand.u32 4294901760, %v480_v14  ;;  %v493_v59 = vand.u32 4294901760, %v492_v34  ;;  %v12344_v61 = vand.u32 4294901760, %v9405_v26  ;;  %v9895_v33 = vpack.c.bf16 %v469_v51, %v457_v20  ;;  %6981 = vmatpush1.bf16.msra.mxu1 %v9693_v16 }
  0xa8   : > { %v9886_v27 = vsub.f32 %v9403_v25, %v12341_v4  ;;  %12343 = vst [vmem:[#allocation98_spill] sm:$0xff] %v9888_v50  ;;  %v486_v62 = vsub.f32 %v9818_v45, %v485_v0  ;;  %v498_v56 = vsub.f32 %v9823_v63, %v497_v32  ;;  %v504_v29 = vsub.f32 %v9828_v2, %v503_v58 }
  0xa9   : > { %v9893_v54 = vsub.f32 %v9405_v26, %v12344_v61  ;;  %12346 = vst [vmem:[#allocation100_spill] sm:$0xff] %v9895_v33  ;;  %v516_v34 = vsub.f32 %v9842_v6, %v515_v18  ;;  %v510_v39 = vsub.f32 %v9847_v10, %v509_v3  ;;  %v12347_v26 = vand.u32 4294901760, %v9419_v30  ;;  %7173 = vmatpush1.bf16.msra.mxu0 %v9693_v16 }
  0xaa   : > { %12342 = vst [vmem:[#allocation97_spill] sm:$0xff] %v9886_v27  ;;  %v9912_v61 = vpack.c.bf16 %v475_v15, %v463_v13  ;;  %v522_v8 = vsub.f32 %v9856_v7, %v521_v28  ;;  %v527_v20 = vand.u32 4294901760, %v9886_v27  ;;  %v12350_v14 = vand.u32 4294901760, %v9421_v31  ;;  %6983 = vmatprep.subr.bf16.mxu1 %v9702_v22  ;;  %7175 = vmatprep.subr.bf16.mxu0 %v9702_v22 }
  0xab   : > { %12345 = vst [vmem:[#allocation99_spill] sm:$0xff] %v9893_v54  ;;  %v9908_v51 = vsub.f32 %v9419_v30, %v12347_v26  ;;  %v9921_v25 = vpack.c.bf16 %v493_v59, %v481_v1  ;;  %v9923_v37 = vpack.c.bf16 %v491_v55, %v479_v38  ;;  %v9925_v30 = vpack.c.bf16 %v497_v32, %v485_v0 }
  0xac   : > { %12349 = vst [vmem:[#allocation102_spill] sm:$0xff] %v9912_v61  ;;  %v9919_v4 = vsub.f32 %v9421_v31, %v12350_v14  ;;  %v539_v26 = vand.u32 4294901760, %v9893_v54  ;;  %v487_v53 = vand.u32 4294901760, %v486_v62  ;;  %v499_v15 = vand.u32 4294901760, %v498_v56  ;;  %6985 = vmatpush1.bf16.msra.mxu1 %v9731_v11 }
  0xad   : > { %12348 = vst [vmem:[#allocation101_spill] sm:$0xff] %v9908_v51  ;;  %12352 = vst [vmem:[#allocation104_spill] sm:$0xff] %v9921_v25  ;;  %v505_v13 = vand.u32 4294901760, %v504_v29  ;;  %v9928_v10 = vpack.c.bf16 %v515_v18, %v503_v58  ;;  %v517_v7 = vand.u32 4294901760, %v516_v34  ;;  %v511_v31 = vand.u32 4294901760, %v510_v39  ;;  %7177 = vmatpush1.bf16.msra.mxu0 %v9731_v11  ;;  %6987 = vmatprep.subr.bf16.mxu1 %v9776_v52 }
  0xae   : > { %12351 = vst [vmem:[#allocation103_spill] sm:$0xff] %v9919_v4  ;;  %12353 = vst [vmem:[#allocation105_spill] sm:$0xff] %v9923_v37  ;;  %v533_v59 = vand.u32 4294901760, %v9908_v51  ;;  %v12356_v38 = vand.u32 4294901760, %v9433_v35  ;;  %v523_v32 = vand.u32 4294901760, %v522_v8  ;;  %v528_v58 = vsub.f32 %v9886_v27, %v527_v20  ;;  %7179 = vmatprep.subr.bf16.mxu0 %v9776_v52 }
  0xaf   : > { %12354 = vst [vmem:[#allocation106_spill] sm:$0xff] %v9925_v30  ;;  %12355 = vst [vmem:[#allocation107_spill] sm:$0xff] %v9928_v10  ;;  %v545_v29 = vand.u32 4294901760, %v9919_v4  ;;  %v12358_v0 = vand.u32 4294901760, %v9435_v36  ;;  %v9947_v1 = vpack.c.bf16 %v521_v28, %v509_v3  ;;  %v540_v62 = vsub.f32 %v9893_v54, %v539_v26 }
  0xb0   : > { %v9936_v55 = vsub.f32 %v9433_v35, %v12356_v38  ;;  %v12361_v35 = vand.u32 4294901760, %v9447_v40  ;;  %v12362_v34 = vand.u32 4294901760, %v9449_v41  ;;  %v9960_v8 = vpack.c.bf16 %v499_v15, %v487_v53  ;;  %6989 = vmatpush1.bf16.msra.mxu1 %v9782_v17 }
  0xb1   : > { %v9945_v18 = vsub.f32 %v9435_v36, %v12358_v0  ;;  %12360 = vst [vmem:[#allocation110_spill] sm:$0xff] %v9947_v1  ;;  %v12364_v14 = vand.u32 4294901760, %v9451_v42  ;;  %v12365_v28 = vand.u32 4294901760, %v9463_v46  ;;  %v534_v53 = vsub.f32 %v9908_v51, %v533_v59  ;;  %7181 = vmatpush1.bf16.msra.mxu0 %v9782_v17  ;;  %6991 = vmatprep.subr.bf16.mxu1 %v9792_v5  ;;  %v12375_v17 = vld [vmem:[#allocation20_spill] sm:$0xff]  ;;  %v12384_v51 = vld [vmem:[#allocation25_spill] sm:$0xff] }
  0xb2   : > { %12357 = vst [vmem:[#allocation108_spill] sm:$0xff] %v9936_v55  ;;  %v9953_v56 = vsub.f32 %v9447_v40, %v12361_v35  ;;  %v9958_v39 = vsub.f32 %v9449_v41, %v12362_v34  ;;  %12363 = vst [vmem:[#allocation111_spill] sm:$0xff] %v9960_v8  ;;  %v12366_v40 = vand.u32 4294901760, %v9465_v47  ;;  %v9979_v41 = vpack.c.bf16 %v517_v7, %v505_v13 }
  0xb3   : > { %12359 = vst [vmem:[#allocation109_spill] sm:$0xff] %v9945_v18  ;;  %v9965_v36 = vsub.f32 %v9451_v42, %v12364_v14  ;;  %v9970_v3 = vsub.f32 %v9463_v46, %v12365_v28  ;;  %v551_v42 = vand.u32 4294901760, %v9936_v55  ;;  %v12368_v15 = vand.u32 4294901760, %v9467_v48  ;;  %7183 = vmatprep.subr.bf16.mxu0 %v9792_v5 }
  0xb4   : > { %v9975_v38 = vsub.f32 %v9465_v47, %v12366_v40  ;;  %12367 = vst [vmem:[#allocation112_spill] sm:$0xff] %v9979_v41  ;;  %v9990_v47 = vpack.c.bf16 %v523_v32, %v511_v31  ;;  %v529_v0 = vand.u32 4294901760, %v528_v58  ;;  %v546_v35 = vsub.f32 %v9919_v4, %v545_v29  ;;  %6993 = vmatpush1.bf16.msra.mxu1 %v9809_v57 }
  0xb5   : > { %v9986_v46 = vsub.f32 %v9467_v48, %v12368_v15  ;;  %v563_v7 = vand.u32 4294901760, %v9945_v18  ;;  %v541_v13 = vand.u32 4294901760, %v540_v62  ;;  %v9994_v34 = vpack.c.bf16 %v539_v26, %v527_v20  ;;  %7185 = vmatpush1.bf16.msra.mxu0 %v9809_v57  ;;  %6995 = vmatprep.subr.bf16.mxu1 %v9836_v12 }
  0xb6   : > { %12370 = vst [vmem:[#allocation114_spill] sm:$0xff] %v9990_v47  ;;  %v557_v14 = vand.u32 4294901760, %v9953_v56  ;;  %v569_v28 = vand.u32 4294901760, %v9958_v39  ;;  %v9998_v48 = vpack.c.bf16 %v545_v29, %v533_v59  ;;  %v575_v40 = vand.u32 4294901760, %v9965_v36  ;;  %7187 = vmatprep.subr.bf16.mxu0 %v9836_v12 }
  0xb7   : > { %12369 = vst [vmem:[#allocation113_spill] sm:$0xff] %v9986_v46  ;;  %12371 = vst [vmem:[#allocation115_spill] sm:$0xff] %v9994_v34  ;;  %v587_v15 = vand.u32 4294901760, %v9970_v3  ;;  %v581_v31 = vand.u32 4294901760, %v9975_v38  ;;  %v535_v32 = vand.u32 4294901760, %v534_v53  ;;  %v552_v20 = vsub.f32 %v9936_v55, %v551_v42 }
  0xb8   : > { %12372 = vst [vmem:[#allocation116_spill] sm:$0xff] %v9998_v48  ;;  %v593_v26 = vand.u32 4294901760, %v9986_v46  ;;  %v12373_v58 = vand.u32 4294901760, %v9469_v49  ;;  %v547_v29 = vand.u32 4294901760, %v546_v35  ;;  %v564_v62 = vsub.f32 %v9945_v18, %v563_v7  ;;  %v12380_v18 = vld [vmem:[#allocation23_spill] sm:$0xff]  ;;  %6997 = vmatpush1.bf16.msra.mxu1 %v9862_v44 }
  0xb9   : > { %v10015_v52 = vpack.c.bf16 %v563_v7, %v551_v42  ;;  %v12376_v53 = vand.u32 4294901760, %v12375_v17  ;;  %v10022_v22 = vpack.c.bf16 %v541_v13, %v529_v0  ;;  %v558_v16 = vsub.f32 %v9953_v56, %v557_v14  ;;  %7189 = vmatpush1.bf16.msra.mxu0 %v9862_v44  ;;  %6999 = vmatprep.subr.bf16.mxu1 %v9895_v33 }
  0xba   : > { %v10010_v59 = vsub.f32 %v9469_v49, %v12373_v58  ;;  %v570_v49 = vsub.f32 %v9958_v39, %v569_v28  ;;  %v12378_v58 = vld [vmem:[#allocation22_spill] sm:$0xff]  ;;  %v576_v35 = vsub.f32 %v9965_v36, %v575_v40  ;;  %v588_v42 = vsub.f32 %v9970_v3, %v587_v15  ;;  %7191 = vmatprep.subr.bf16.mxu0 %v9871_v21 }
  0xbb   : > { %12374 = vst [vmem:[#allocation117_spill] sm:$0xff] %v10015_v52  ;;  %v10020_v11 = vsub.f32 %v12375_v17, %v12376_v53  ;;  %12377 = vst [vmem:[#allocation20_spill] sm:$0xff] %v10022_v22  ;;  %v12379_v55 = vand.u32 4294901760, %v12378_v58  ;;  %v582_v7 = vsub.f32 %v9975_v38, %v581_v31  ;;  %v12381_v17 = vand.u32 4294901760, %v12380_v18  ;;  %v12382_v53 = vld [vmem:[#allocation24_spill] sm:$0xff] }
  0xbc   : > { %v594_v13 = vsub.f32 %v9986_v46, %v593_v26  ;;  %v12385_v54 = vand.u32 4294901760, %v12384_v51  ;;  %v565_v57 = vand.u32 4294901760, %v564_v62  ;;  %v559_v2 = vand.u32 4294901760, %v558_v16  ;;  %v12390_v62 = vld [vmem:[#allocation27_spill] sm:$0xff] }
  0xbd   : > { %v10029_v5 = vsub.f32 %v12378_v58, %v12379_v55  ;;  %v10037_v0 = vsub.f32 %v12380_v18, %v12381_v17  ;;  %v599_v55 = vand.u32 4294901760, %v10010_v59  ;;  %v12383_v58 = vand.u32 4294901760, %v12382_v53 }
  0xbe   : > { %v10051_v27 = vsub.f32 %v12384_v51, %v12385_v54  ;;  %v10055_v18 = vpack.c.bf16 %v547_v29, %v535_v32  ;;  %v553_v17 = vand.u32 4294901760, %v552_v20  ;;  %v611_v6 = vand.u32 4294901760, %v10020_v11 }
  0xbf   : > { %v10046_v4 = vsub.f32 %v12382_v53, %v12383_v58  ;;  %v571_v63 = vand.u32 4294901760, %v570_v49  ;;  %v10058_v45 = vpack.c.bf16 %v569_v28, %v557_v14  ;;  %v605_v53 = vand.u32 4294901760, %v10029_v5 }
  0xc0   : > { %12386 = vst [vmem:[#allocation22_spill] sm:$0xff] %v10051_v27  ;;  %12387 = vst [vmem:[#allocation23_spill] sm:$0xff] %v10055_v18  ;;  %v577_v58 = vand.u32 4294901760, %v576_v35  ;;  %v589_v46 = vand.u32 4294901760, %v588_v42  ;;  %v583_v54 = vand.u32 4294901760, %v582_v7  ;;  %v617_v51 = vand.u32 4294901760, %v10037_v0 }
  0xc1   : > { %12388 = vst [vmem:[#allocation24_spill] sm:$0xff] %v10058_v45  ;;  %v595_v32 = vand.u32 4294901760, %v594_v13  ;;  %v600_v20 = vsub.f32 %v10010_v59, %v599_v55  ;;  %v623_v29 = vand.u32 4294901760, %v10046_v4  ;;  %v635_v16 = vand.u32 4294901760, %v10051_v27 }
  0xc2   : > { %v10069_v14 = vpack.c.bf16 %v565_v57, %v553_v17  ;;  %v612_v28 = vsub.f32 %v10020_v11, %v611_v6  ;;  %v12391_v49 = vand.u32 4294901760, %v12390_v62  ;;  %v10077_v42 = vpack.c.bf16 %v571_v63, %v559_v2 }
  0xc3   : > { %v10079_v7 = vpack.c.bf16 %v587_v15, %v575_v40  ;;  %v10081_v13 = vpack.c.bf16 %v593_v26, %v581_v31  ;;  %v606_v44 = vsub.f32 %v10029_v5, %v605_v53  ;;  %v12396_v33 = vand.u32 4294901760, %v9876_v23  ;;  %v12404_v26 = vld [vmem:[#allocation29_spill] sm:$0xff] }
  0xc4   : > { %12389 = vst [vmem:[#allocation25_spill] sm:$0xff] %v10069_v14  ;;  %v10075_v35 = vsub.f32 %v12390_v62, %v12391_v49  ;;  %12393 = vst [vmem:[#allocation118_spill] sm:$0xff] %v10077_v42  ;;  %v12397_v57 = vand.u32 4294901760, %v9797_v43  ;;  %v10088_v17 = vpack.c.bf16 %v589_v46, %v577_v58  ;;  %v10090_v21 = vpack.c.bf16 %v611_v6, %v599_v55  ;;  %v12401_v46 = vld [vmem:[#allocation28_spill] sm:$0xff] }
  0xc5   : > { %12394 = vst [vmem:[#allocation119_spill] sm:$0xff] %v10079_v7  ;;  %12395 = vst [vmem:[#allocation120_spill] sm:$0xff] %v10081_v13  ;;  %447 = vmatmul.mubr.f32.vlgmr.msra.gmra.mrb[0].mxu1 %v12396_v33  ;;  %v618_v62 = vsub.f32 %v10037_v0, %v617_v51  ;;  %v10095_v63 = vpack.c.bf16 %v595_v32, %v583_v54  ;;  %v601_v2 = vand.u32 4294901760, %v600_v20  ;;  %v613_v23 = vand.u32 4294901760, %v612_v28 }
  0xc6   : > { %12392 = vst [vmem:[#allocation27_spill] sm:$0xff] %v10075_v35  ;;  %1184 = vmatmul.mubr.f32.vlgmr.msra.gmra.mrb[0].mxu0 %v12397_v57  ;;  %12398 = vst [vmem:[#allocation121_spill] sm:$0xff] %v10088_v17  ;;  %7001 = vmatpush1.bf16.msra.mxu1 %v9912_v61  ;;  %v624_v40 = vsub.f32 %v10046_v4, %v623_v29  ;;  %v636_v33 = vsub.f32 %v10051_v27, %v635_v16  ;;  %v629_v6 = vand.u32 4294901760, %v10075_v35  ;;  %v12411_v57 = vld [vmem:[#allocation30_spill] sm:$0xff] }
  0xc7   : > { %12399 = vst [vmem:[#allocation122_spill] sm:$0xff] %v10090_v21  ;;  %7193 = vmatpush1.bf16.msra.mxu0 %v9888_v50  ;;  %12400 = vst [vmem:[#allocation123_spill] sm:$0xff] %v10095_v63  ;;  %7003 = vmatprep.subr.bf16.mxu1 %v9921_v25  ;;  %v12402_v15 = vand.u32 4294901760, %v12401_v46  ;;  %v12405_v55 = vand.u32 4294901760, %v12404_v26  ;;  %v607_v54 = vand.u32 4294901760, %v606_v44  ;;  %v12407_v32 = vand.u32 4294901760, %v9513_v24 }
  0xc8   : > { %7195 = vmatprep.subr.bf16.mxu0 %v9923_v37  ;;  %v12409_v28 = vand.u32 4294901760, %v9515_v19  ;;  %v12412_v37 = vand.u32 4294901760, %v12411_v57  ;;  %v619_v44 = vand.u32 4294901760, %v618_v62  ;;  %v12419_v50 = vld [vmem:[#allocation32_spill] sm:$0xff]  ;;  %v12422_v25 = vld [vmem:[#allocation33_spill] sm:$0xff] }
  0xc9   : > { %v10105_v31 = vsub.f32 %v12401_v46, %v12402_v15  ;;  %v10110_v58 = vsub.f32 %v12404_v26, %v12405_v55  ;;  %v10115_v20 = vsub.f32 %v9513_v24, %v12407_v32  ;;  %v12414_v15 = vld [vmem:[#allocation62_spill] sm:$0xff]  ;;  %v10129_v26 = vpack.c.bf16 %v617_v51, %v605_v53  ;;  %v12416_v55 = vld [vmem:[#allocation31_spill] sm:$0xff]  ;;  %v12425_v51 = vld [vmem:[#allocation37_spill] sm:$0xff] }
  0xca   : > { %v10120_v49 = vsub.f32 %v9515_v19, %v12409_v28  ;;  %v10125_v46 = vsub.f32 %v12411_v57, %v12412_v37  ;;  %838 = vmatprep.mubr.f32.mxu1 %v12414_v15  ;;  %1447 = vmatprep.mubr.f32.mxu0 %v12414_v15  ;;  %v12417_v24 = vand.u32 4294901760, %v12416_v55  ;;  %v12420_v19 = vand.u32 4294901760, %v12419_v50 }
  0xcb   : > { %12403 = vst [vmem:[#allocation28_spill] sm:$0xff] %v10105_v31  ;;  %12406 = vst [vmem:[#allocation29_spill] sm:$0xff] %v10110_v58  ;;  %7005 = vmatpush1.bf16.msra.mxu1 %v9960_v8  ;;  %7197 = vmatpush1.bf16.msra.mxu0 %v9925_v30  ;;  %v625_v37 = vand.u32 4294901760, %v624_v40  ;;  %v637_v57 = vand.u32 4294901760, %v636_v33  ;;  %v12423_v62 = vand.u32 4294901760, %v12422_v25  ;;  %v12426_v61 = vand.u32 4294901760, %v12425_v51 }
  0xcc   : > { %12408 = vst [vmem:[#allocation124_spill] sm:$0xff] %v10115_v20  ;;  %12410 = vst [vmem:[#allocation125_spill] sm:$0xff] %v10120_v49  ;;  %v10134_v32 = vsub.f32 %v12416_v55, %v12417_v24  ;;  %v10139_v28 = vsub.f32 %v12419_v50, %v12420_v19  ;;  %7007 = vmatprep.subr.bf16.mxu1 %v9979_v41  ;;  %7199 = vmatprep.subr.bf16.mxu0 %v9928_v10  ;;  %v641_v33 = vand.u32 4294901760, %v10105_v31 }
  0xcd   : > { %12413 = vst [vmem:[#allocation30_spill] sm:$0xff] %v10125_v46  ;;  %12415 = vst [vmem:[#allocation126_spill] sm:$0xff] %v10129_v26  ;;  %v10146_v53 = vsub.f32 %v12422_v25, %v12423_v62  ;;  %v10151_v55 = vsub.f32 %v12425_v51, %v12426_v61  ;;  %v10155_v50 = vpack.c.bf16 %v613_v23, %v601_v2  ;;  %v647_v25 = vand.u32 4294901760, %v10110_v58 }
  0xce   : > { %12418 = vst [vmem:[#allocation31_spill] sm:$0xff] %v10134_v32  ;;  %12421 = vst [vmem:[#allocation32_spill] sm:$0xff] %v10139_v28  ;;  %v10157_v24 = vpack.c.bf16 %v635_v16, %v623_v29  ;;  %v630_v40 = vsub.f32 %v10075_v35, %v629_v6  ;;  %v659_v19 = vand.u32 4294901760, %v10115_v20  ;;  %v653_v62 = vand.u32 4294901760, %v10120_v49  ;;  %v12431_v29 = vld [vmem:[#allocation38_spill] sm:$0xff] }
  0xcf   : > { %12424 = vst [vmem:[#allocation33_spill] sm:$0xff] %v10146_v53  ;;  %12427 = vst [vmem:[#allocation37_spill] sm:$0xff] %v10151_v55  ;;  %v665_v61 = vand.u32 4294901760, %v10125_v46  ;;  %v10165_v51 = vpack.c.bf16 %v619_v44, %v607_v54  ;;  %v671_v10 = vand.u32 4294901760, %v10134_v32  ;;  %v683_v2 = vand.u32 4294901760, %v10139_v28  ;;  %7009 = vmatpush1.bf16.msra.mxu1 %v9990_v47  ;;  %7201 = vmatpush1.bf16.msra.mxu0 %v9947_v1  ;;  %v12434_v44 = vld [vmem:[#allocation39_spill] sm:$0xff] }
  0xd0   : > { %12428 = vst [vmem:[#allocation127_spill] sm:$0xff] %v10155_v50  ;;  %12429 = vst [vmem:[#allocation128_spill] sm:$0xff] %v10157_v24  ;;  %v12432_v16 = vand.u32 4294901760, %v12431_v29  ;;  %v10176_v30 = vpack.c.bf16 %v637_v57, %v625_v37  ;;  %v677_v41 = vand.u32 4294901760, %v10146_v53  ;;  %v689_v54 = vand.u32 4294901760, %v10151_v55  ;;  %7011 = vmatprep.subr.bf16.mxu1 %v10022_v22  ;;  %7203 = vmatprep.subr.bf16.mxu0 %v9994_v34  ;;  %v12437_v37 = vld [vmem:[#allocation41_spill] sm:$0xff] }
  0xd1   : > { %12430 = vst [vmem:[#allocation129_spill] sm:$0xff] %v10165_v51  ;;  %v12435_v8 = vand.u32 4294901760, %v12434_v44  ;;  %v10188_v47 = vpack.c.bf16 %v641_v33, %v629_v6  ;;  %v12438_v57 = vand.u32 4294901760, %v12437_v37  ;;  %v648_v12 = vsub.f32 %v10110_v58, %v647_v25 }
  0xd2   : > { %v10172_v23 = vsub.f32 %v12431_v29, %v12432_v16  ;;  %12433 = vst [vmem:[#allocation38_spill] sm:$0xff] %v10176_v30  ;;  %v631_v29 = vand.u32 4294901760, %v630_v40  ;;  %v642_v16 = vsub.f32 %v10105_v31, %v641_v33  ;;  %v660_v15 = vsub.f32 %v10115_v20, %v659_v19  ;;  %v12439_v33 = vld [vmem:[#allocation42_spill] sm:$0xff] }
  0xd3   : > { %v10183_v43 = vsub.f32 %v12434_v44, %v12435_v8  ;;  %12436 = vst [vmem:[#allocation39_spill] sm:$0xff] %v10188_v47  ;;  %v10193_v1 = vsub.f32 %v12437_v37, %v12438_v57  ;;  %v654_v8 = vsub.f32 %v10120_v49, %v653_v62  ;;  %v666_v44 = vsub.f32 %v10125_v46, %v665_v61 }
  0xd4   : > { %v672_v34 = vsub.f32 %v10134_v32, %v671_v10  ;;  %v684_v40 = vsub.f32 %v10139_v28, %v683_v2  ;;  %v695_v6 = vand.u32 4294901760, %v10172_v23  ;;  %v12440_v22 = vand.u32 4294901760, %v12439_v33  ;;  %7013 = vmatpush1.bf16.msra.mxu1 %v10055_v18  ;;  %7205 = vmatpush1.bf16.msra.mxu0 %v9998_v48 }
  0xd5   : > { %v10209_v37 = vpack.c.bf16 %v659_v19, %v647_v25  ;;  %v678_v57 = vsub.f32 %v10146_v53, %v677_v41  ;;  %v690_v46 = vsub.f32 %v10151_v55, %v689_v54  ;;  %v707_v32 = vand.u32 4294901760, %v10183_v43  ;;  %7015 = vmatprep.subr.bf16.mxu1 %v10069_v14  ;;  %7207 = vmatprep.subr.bf16.mxu0 %v10015_v52  ;;  %v12444_v25 = vld [vmem:[#allocation45_spill] sm:$0xff] }
  0xd6   : > { %v10205_v31 = vsub.f32 %v12439_v33, %v12440_v22  ;;  %v643_v28 = vand.u32 4294901760, %v642_v16  ;;  %v701_v22 = vand.u32 4294901760, %v10193_v1  ;;  %v12442_v33 = vld [vmem:[#allocation43_spill] sm:$0xff]  ;;  %v12445_v19 = vand.u32 4294901760, %v12444_v25 }
  0xd7   : > { %12441 = vst [vmem:[#allocation41_spill] sm:$0xff] %v10209_v37  ;;  %v12443_v49 = vand.u32 4294901760, %v12442_v33  ;;  %v649_v55 = vand.u32 4294901760, %v648_v12  ;;  %v661_v53 = vand.u32 4294901760, %v660_v15  ;;  %v655_v20 = vand.u32 4294901760, %v654_v8 }
  0xd8   : > { %v10225_v48 = vsub.f32 %v12444_v25, %v12445_v19  ;;  %v667_v58 = vand.u32 4294901760, %v666_v44  ;;  %v673_v14 = vand.u32 4294901760, %v672_v34  ;;  %v685_v35 = vand.u32 4294901760, %v684_v40  ;;  %7017 = vmatpush1.bf16.msra.mxu1 %v10077_v42  ;;  %7209 = vmatpush1.bf16.msra.mxu0 %v10058_v45  ;;  %v12488_v42 = vld [vmem:[#allocation68_spill] sm:$0xff] }
  0xd9   : > { %v10220_v18 = vsub.f32 %v12442_v33, %v12443_v49  ;;  %v696_v16 = vsub.f32 %v10172_v23, %v695_v6  ;;  %v713_v52 = vand.u32 4294901760, %v10205_v31  ;;  %v10231_v49 = vpack.c.bf16 %v665_v61, %v653_v62  ;;  %7019 = vmatprep.subr.bf16.mxu1 %v10088_v17  ;;  %7211 = vmatprep.subr.bf16.mxu0 %v10079_v7 }
  0xda   : > { %v679_v33 = vand.u32 4294901760, %v678_v57  ;;  %v691_v27 = vand.u32 4294901760, %v690_v46  ;;  %v708_v25 = vsub.f32 %v10183_v43, %v707_v32  ;;  %v10236_v12 = vpack.c.bf16 %v643_v28, %v631_v29 }
  0xdb   : > { %12446 = vst [vmem:[#allocation42_spill] sm:$0xff] %v10231_v49  ;;  %v702_v34 = vsub.f32 %v10193_v1, %v701_v22  ;;  %v719_v15 = vand.u32 4294901760, %v10220_v18  ;;  %v731_v8 = vand.u32 4294901760, %v10225_v48  ;;  %v10241_v44 = vpack.c.bf16 %v661_v53, %v649_v55 }
  0xdc   : > { %12447 = vst [vmem:[#allocation43_spill] sm:$0xff] %v10236_v12  ;;  %v10243_v62 = vpack.c.bf16 %v667_v58, %v655_v20  ;;  %v10245_v61 = vpack.c.bf16 %v683_v2, %v671_v10  ;;  %v10247_v46 = vpack.c.bf16 %v689_v54, %v677_v41  ;;  %v10249_v40 = vpack.c.bf16 %v685_v35, %v673_v14  ;;  %v12454_v58 = vld [vmem:[#allocation46_spill] sm:$0xff]  ;;  %v12456_v41 = vld [vmem:[#allocation47_spill] sm:$0xff]  ;;  %v12459_v2 = vld [vmem:[#allocation49_spill] sm:$0xff] }
  0xdd   : > { %12448 = vst [vmem:[#allocation45_spill] sm:$0xff] %v10241_v44  ;;  %v697_v57 = vand.u32 4294901760, %v696_v16  ;;  %v10251_v19 = vpack.c.bf16 %v707_v32, %v695_v6  ;;  %v714_v28 = vsub.f32 %v10205_v31, %v713_v52  ;;  %7021 = vmatpush1.bf16.msra.mxu1 %v10095_v63  ;;  %7213 = vmatpush1.bf16.msra.mxu0 %v10081_v13  ;;  %v709_v53 = vand.u32 4294901760, %v708_v25  ;;  %v12462_v16 = vld [vmem:[#allocation50_spill] sm:$0xff] }
  0xde   : > { %12449 = vst [vmem:[#allocation130_spill] sm:$0xff] %v10243_v62  ;;  %12450 = vst [vmem:[#allocation131_spill] sm:$0xff] %v10245_v61  ;;  %v10256_v29 = vpack.c.bf16 %v691_v27, %v679_v33  ;;  %v12455_v20 = vand.u32 4294901760, %v12454_v58  ;;  %v12457_v14 = vand.u32 4294901760, %v12456_v41  ;;  %7023 = vmatprep.subr.bf16.mxu1 %v10155_v50  ;;  %7215 = vmatprep.subr.bf16.mxu0 %v10090_v21  ;;  %v703_v32 = vand.u32 4294901760, %v702_v34  ;;  %v12468_v34 = vld [vmem:[#allocation52_spill] sm:$0xff] }
  0xdf   : > { %12451 = vst [vmem:[#allocation132_spill] sm:$0xff] %v10247_v46  ;;  %12452 = vst [vmem:[#allocation133_spill] sm:$0xff] %v10249_v40  ;;  %v720_v55 = vsub.f32 %v10220_v18, %v719_v15  ;;  %v732_v27 = vsub.f32 %v10225_v48, %v731_v8  ;;  %v12460_v54 = vand.u32 4294901760, %v12459_v2  ;;  %v12463_v33 = vand.u32 4294901760, %v12462_v16 }
  0xe0   : > { %12453 = vst [vmem:[#allocation134_spill] sm:$0xff] %v10251_v19  ;;  %v10261_v10 = vsub.f32 %v12454_v58, %v12455_v20  ;;  %v10266_v35 = vsub.f32 %v12456_v41, %v12457_v14  ;;  %v12465_v58 = vld [vmem:[#allocation51_spill] sm:$0xff]  ;;  %v12469_v14 = vand.u32 4294901760, %v12468_v34  ;;  %v12471_v13 = vand.u32 4294901760, %v9627_v60 }
  0xe1   : > { %v10275_v6 = vsub.f32 %v12459_v2, %v12460_v54  ;;  %v10280_v25 = vsub.f32 %v12462_v16, %v12463_v33  ;;  %v12466_v20 = vand.u32 4294901760, %v12465_v58  ;;  %v715_v54 = vand.u32 4294901760, %v714_v28  ;;  %v12475_v33 = vld [vmem:[#allocation59_spill] sm:$0xff]  ;;  %7025 = vmatpush1.bf16.msra.mxu1 %v10165_v51  ;;  %7217 = vmatpush1.bf16.msra.mxu0 %v10129_v26 }
  0xe2   : > { %12458 = vst [vmem:[#allocation46_spill] sm:$0xff] %v10266_v35  ;;  %v10290_v21 = vsub.f32 %v12468_v34, %v12469_v14  ;;  %v10295_v2 = vsub.f32 %v9627_v60, %v12471_v13  ;;  %v12473_v7 = vand.u32 4294901760, %v9655_v9  ;;  %v12476_v45 = vand.u32 4294901760, %v12475_v33  ;;  %7027 = vmatprep.subr.bf16.mxu1 %v10176_v30  ;;  %7219 = vmatprep.subr.bf16.mxu0 %v10157_v24 }
  0xe3   : > { %12461 = vst [vmem:[#allocation47_spill] sm:$0xff] %v10275_v6  ;;  %12464 = vst [vmem:[#allocation49_spill] sm:$0xff] %v10280_v25  ;;  %v10285_v41 = vsub.f32 %v12465_v58, %v12466_v20  ;;  %v12478_v20 = vld [vmem:[#allocation60_spill] sm:$0xff]  ;;  %v10314_v60 = vpack.c.bf16 %v709_v53, %v697_v57  ;;  %v10316_v13 = vpack.c.bf16 %v713_v52, %v701_v22  ;;  %v733_v28 = vand.u32 4294901760, %v732_v27  ;;  %v12483_v27 = vld [vmem:[#allocation61_spill] sm:$0xff] }
  0xe4   : > { %12470 = vst [vmem:[#allocation51_spill] sm:$0xff] %v10290_v21  ;;  %12472 = vst [vmem:[#allocation52_spill] sm:$0xff] %v10295_v2  ;;  %v10300_v16 = vsub.f32 %v9655_v9, %v12473_v7  ;;  %v10305_v58 = vsub.f32 %v12475_v33, %v12476_v45  ;;  %v12479_v50 = vand.u32 4294901760, %v12478_v20  ;;  %v725_v9 = vand.u32 4294901760, %v10261_v10 }
  0xe5   : > { %12467 = vst [vmem:[#allocation50_spill] sm:$0xff] %v10285_v41  ;;  %12481 = vst [vmem:[#allocation136_spill] sm:$0xff] %v10316_v13  ;;  %v737_v7 = vand.u32 4294901760, %v10266_v35  ;;  %v721_v45 = vand.u32 4294901760, %v720_v55  ;;  %v743_v14 = vand.u32 4294901760, %v10275_v6  ;;  %v755_v33 = vand.u32 4294901760, %v10280_v25  ;;  %7029 = vmatpush1.bf16.msra.mxu1 %v10236_v12  ;;  %7221 = vmatpush1.bf16.msra.mxu0 %v10188_v47 }
  0xe6   : > { %12474 = vst [vmem:[#allocation135_spill] sm:$0xff] %v10300_v16  ;;  %12477 = vst [vmem:[#allocation59_spill] sm:$0xff] %v10305_v58  ;;  %v10310_v34 = vsub.f32 %v12478_v20, %v12479_v50  ;;  %v10322_v50 = vpack.c.bf16 %v731_v8, %v719_v15  ;;  %v749_v57 = vand.u32 4294901760, %v10285_v41  ;;  %v761_v52 = vand.u32 4294901760, %v10290_v21  ;;  %7031 = vmatprep.subr.bf16.mxu1 %v10241_v44 }
  0xe7   : > { %v767_v22 = vand.u32 4294901760, %v10295_v2  ;;  %v10329_v53 = vpack.c.bf16 %v715_v54, %v703_v32  ;;  %v779_v20 = vand.u32 4294901760, %v10300_v16  ;;  %v773_v24 = vand.u32 4294901760, %v10305_v58  ;;  %7223 = vmatprep.subr.bf16.mxu0 %v10209_v37 }
  0xe8   : > { %12480 = vst [vmem:[#allocation60_spill] sm:$0xff] %v10310_v34  ;;  %12482 = vst [vmem:[#allocation137_spill] sm:$0xff] %v10322_v50  ;;  %v785_v55 = vand.u32 4294901760, %v10310_v34  ;;  %v726_v15 = vsub.f32 %v10261_v10, %v725_v9  ;;  %v738_v8 = vsub.f32 %v10266_v35, %v737_v7  ;;  %v12484_v26 = vand.u32 4294901760, %v12483_v27 }
  0xe9   : > { %v10345_v32 = vpack.c.bf16 %v733_v28, %v721_v45  ;;  %v10347_v54 = vpack.c.bf16 %v737_v7, %v725_v9  ;;  %v744_v12 = vsub.f32 %v10275_v6, %v743_v14  ;;  %v756_v47 = vsub.f32 %v10280_v25, %v755_v33  ;;  %v12486_v45 = vld [vmem:[#allocation66_spill] sm:$0xff]  ;;  %7033 = vmatpush1.bf16.msra.mxu1 %v10243_v62  ;;  %v12494_v62 = vld [vmem:[#allocation76_spill] sm:$0xff] }
  0xea   : > { %v10341_v30 = vsub.f32 %v12483_v27, %v12484_v26  ;;  %v750_v51 = vsub.f32 %v10285_v41, %v749_v57  ;;  %v762_v63 = vsub.f32 %v10290_v21, %v761_v52  ;;  %v768_v17 = vsub.f32 %v10295_v2, %v767_v22  ;;  %7225 = vmatpush1.bf16.msra.mxu0 %v10231_v49  ;;  %v12492_v49 = vld [vmem:[#allocation74_spill] sm:$0xff] }
  0xeb   : > { %12485 = vst [vmem:[#allocation61_spill] sm:$0xff] %v10347_v54  ;;  %v780_v26 = vsub.f32 %v10300_v16, %v779_v20  ;;  %v774_v27 = vsub.f32 %v10305_v58, %v773_v24  ;;  %v786_v37 = vsub.f32 %v10310_v34, %v785_v55  ;;  %v12487_v28 = vand.u32 4294901760, %v12486_v45  ;;  %v12490_v58 = vld [vmem:[#allocation69_spill] sm:$0xff]  ;;  %7035 = vmatprep.subr.bf16.mxu1 %v10249_v40 }
  0xec   : > { %v727_v7 = vand.u32 4294901760, %v726_v15  ;;  %v12489_v2 = vand.u32 4294901760, %v12488_v42  ;;  %v12491_v21 = vand.u32 4294901760, %v12490_v58  ;;  %7227 = vmatprep.subr.bf16.mxu0 %v10245_v61  ;;  %v12493_v15 = vand.u32 4294901760, %v12492_v49  ;;  %v12610_v61 = vld [vmem:[#allocation55_spill] sm:$0xff] }
  0xed   : > { %v10360_v9 = vsub.f32 %v12486_v45, %v12487_v28  ;;  %v739_v45 = vand.u32 4294901760, %v738_v8  ;;  %v745_v28 = vand.u32 4294901760, %v744_v12  ;;  %v12495_v41 = vand.u32 4294901760, %v12494_v62  ;;  %7037 = vmatpush1.bf16.msra.mxu1 %v10256_v29 }
  0xee   : > { %v10368_v16 = vsub.f32 %v12488_v42, %v12489_v2  ;;  %v10373_v34 = vsub.f32 %v12490_v58, %v12491_v21  ;;  %v10380_v44 = vsub.f32 %v12492_v49, %v12493_v15  ;;  %v757_v2 = vand.u32 4294901760, %v756_v47  ;;  %7229 = vmatpush1.bf16.msra.mxu0 %v10247_v46  ;;  %7039 = vmatprep.subr.bf16.mxu1 %v10314_v60  ;;  %v12609_v46 = vld [vmem:[#allocation54_spill] sm:$0xff] }
  0xef   : > { %v10385_v42 = vsub.f32 %v12494_v62, %v12495_v41  ;;  %v751_v25 = vand.u32 4294901760, %v750_v51  ;;  %v763_v21 = vand.u32 4294901760, %v762_v63  ;;  %v769_v58 = vand.u32 4294901760, %v768_v17  ;;  %7231 = vmatprep.subr.bf16.mxu0 %v10251_v19  ;;  %v12498_v41 = vld [vmem:[#allocation79_spill] sm:$0xff]  ;;  %v12608_v19 = vld [vmem:[#allocation53_spill] sm:$0xff] }
  0xf0   : > { %v781_v6 = vand.u32 4294901760, %v780_v26  ;;  %v775_v40 = vand.u32 4294901760, %v774_v27  ;;  %v787_v35 = vand.u32 4294901760, %v786_v37  ;;  %v12014_v8 = vand.u32 4294901760, %v10360_v9 }
  0xf1   : > { %v10390_v49 = vpack.c.bf16 %v755_v33, %v743_v14  ;;  %v12497_v12 = vand.u32 4294901760, %v10341_v30  ;;  %v12013_v47 = vand.u32 4294901760, %v10368_v16  ;;  %v10401_v63 = vpack.c.bf16 %v739_v45, %v727_v7  ;;  %7041 = vmatpush1.bf16.msra.mxu1 %v10329_v53 }
  0xf2   : > { %v12012_v51 = vand.u32 4294901760, %v10380_v44  ;;  %v12499_v14 = vand.u32 4294901760, %v12498_v41  ;;  %v10410_v26 = vpack.c.bf16 %v757_v2, %v745_v28  ;;  %v10412_v27 = vpack.c.bf16 %v763_v21, %v751_v25  ;;  %7233 = vmatpush1.bf16.msra.mxu0 %v10316_v13  ;;  %7043 = vmatprep.subr.bf16.mxu1 %v10345_v32 }
  0xf3   : > { %12496 = vst [vmem:[#allocation66_spill] sm:$0xff] %v10390_v49  ;;  %v10395_v62 = vsub.f32 %v10341_v30, %v12497_v12  ;;  %v10414_v15 = vpack.c.bf16 %v761_v52, %v749_v57  ;;  %v10416_v12 = vpack.c.bf16 %v779_v20, %v767_v22  ;;  %v10418_v17 = vpack.c.bf16 %v781_v6, %v769_v58  ;;  %v12509_v58 = vld [vmem:[#allocation113_spill] sm:$0xff] }
  0xf4   : > { %v10408_v33 = vsub.f32 %v12498_v41, %v12499_v14  ;;  %v10420_v7 = vpack.c.bf16 %v787_v35, %v775_v40  ;;  %v10422_v45 = vpack.c.bf16 %v785_v55, %v773_v24  ;;  %v804_v37 = vsub.f32 %v10360_v9, %v12014_v8  ;;  %v12504_v24 = vld [vmem:[#allocation80_spill] sm:$0xff]  ;;  %7235 = vmatprep.subr.bf16.mxu0 %v10322_v50  ;;  %v12542_v8 = vld [vmem:[#allocation135_spill] sm:$0xff] }
  0xf5   : > { %12500 = vst [vmem:[#allocation68_spill] sm:$0xff] %v10414_v15  ;;  %12501 = vst [vmem:[#allocation69_spill] sm:$0xff] %v10416_v12  ;;  %v793_v25 = vand.u32 4294901760, %v10395_v62  ;;  %v798_v57 = vsub.f32 %v10368_v16, %v12013_v47  ;;  %v12503_v6 = vand.u32 4294901760, %v10373_v34  ;;  %v12505_v35 = vand.u32 4294901760, %v12504_v24  ;;  %7045 = vmatpush1.bf16.msra.mxu1 %v10401_v63 }
  0xf6   : > { %12502 = vst [vmem:[#allocation74_spill] sm:$0xff] %v10422_v45  ;;  %v816_v22 = vsub.f32 %v10380_v44, %v12012_v51  ;;  %v12506_v20 = vand.u32 4294901760, %v10385_v42  ;;  %v821_v28 = vand.u32 4294901760, %v10408_v33  ;;  %v10450_v2 = vpack.c.bf16 %v9958_v39, %v9953_v56  ;;  %v12515_v39 = vld [vmem:[#allocation27_spill] sm:$0xff]  ;;  %7237 = vmatpush1.bf16.msra.mxu0 %v10347_v54  ;;  %7047 = vmatprep.subr.bf16.mxu1 %v10410_v26 }
  0xf7   : > { %v810_v40 = vsub.f32 %v10373_v34, %v12503_v6  ;;  %v832_v52 = vsub.f32 %v12504_v24, %v12505_v35  ;;  %v10454_v21 = vpack.c.bf16 %v9970_v3, %v9965_v36  ;;  %v10458_v62 = vpack.c.bf16 %v12509_v58, %v9975_v38  ;;  %v12513_v6 = vld [vmem:[#allocation22_spill] sm:$0xff]  ;;  %v12516_v24 = vld [vmem:[#allocation28_spill] sm:$0xff]  ;;  %v12518_v3 = vld [vmem:[#allocation29_spill] sm:$0xff]  ;;  %7239 = vmatprep.subr.bf16.mxu0 %v10390_v49 }
  0xf8   : > { %v828_v55 = vsub.f32 %v10385_v42, %v12506_v20  ;;  %12507 = vst [vmem:[#allocation76_spill] sm:$0xff] %v10450_v2  ;;  %v10462_v41 = vpack.c.bf16 %v10020_v11, %v10010_v59  ;;  %v10466_v14 = vpack.c.bf16 %v10037_v0, %v10029_v5  ;;  %v10470_v56 = vpack.c.bf16 %v12513_v6, %v10046_v4  ;;  %v12519_v35 = vld [vmem:[#allocation124_spill] sm:$0xff]  ;;  %v12521_v20 = vld [vmem:[#allocation125_spill] sm:$0xff]  ;;  %v12522_v58 = vld [vmem:[#allocation30_spill] sm:$0xff] }
  0xf9   : > { %12508 = vst [vmem:[#allocation79_spill] sm:$0xff] %v10454_v21  ;;  %12510 = vst [vmem:[#allocation80_spill] sm:$0xff] %v10458_v62  ;;  %v10474_v36 = vpack.c.bf16 %v12516_v24, %v12515_v39  ;;  %v10478_v38 = vpack.c.bf16 %v12519_v35, %v12518_v3  ;;  %v10482_v11 = vpack.c.bf16 %v12522_v58, %v12521_v20  ;;  %v833_v5 = vand.u32 4294901760, %v832_v52  ;;  %v12524_v59 = vld [vmem:[#allocation31_spill] sm:$0xff]  ;;  %v12525_v4 = vld [vmem:[#allocation32_spill] sm:$0xff] }
  0xfa   : > { %12511 = vst [vmem:[#allocation113_spill] sm:$0xff] %v10462_v41  ;;  %12512 = vst [vmem:[#allocation138_spill] sm:$0xff] %v10466_v14  ;;  %v10488_v0 = vpack.c.bf16 %v12525_v4, %v12524_v59  ;;  %v12527_v6 = vld [vmem:[#allocation33_spill] sm:$0xff]  ;;  %v10496_v3 = vpack.c.bf16 %v10183_v43, %v10172_v23  ;;  %v805_v35 = vand.u32 4294901760, %v804_v37  ;;  %v10502_v20 = vpack.c.bf16 %v10205_v31, %v10193_v1  ;;  %v12533_v59 = vld [vmem:[#allocation46_spill] sm:$0xff] }
  0xfb   : > { %12514 = vst [vmem:[#allocation22_spill] sm:$0xff] %v10470_v56  ;;  %12517 = vst [vmem:[#allocation27_spill] sm:$0xff] %v10474_v36  ;;  %v12528_v39 = vld [vmem:[#allocation37_spill] sm:$0xff]  ;;  %v10506_v58 = vpack.c.bf16 %v10225_v48, %v10220_v18  ;;  %v10510_v4 = vpack.c.bf16 %v12533_v59, %v10261_v10  ;;  %v12539_v51 = vld [vmem:[#allocation51_spill] sm:$0xff]  ;;  %v10530_v18 = vpack.c.bf16 %v10360_v9, %v10341_v30  ;;  %7049 = vmatpush1.bf16.msra.mxu1 %v10412_v27 }
  0xfc   : > { %12520 = vst [vmem:[#allocation28_spill] sm:$0xff] %v10478_v38  ;;  %12523 = vst [vmem:[#allocation29_spill] sm:$0xff] %v10482_v11  ;;  %v10492_v24 = vpack.c.bf16 %v12528_v39, %v12527_v6  ;;  %v12535_v6 = vld [vmem:[#allocation47_spill] sm:$0xff]  ;;  %v12536_v43 = vld [vmem:[#allocation49_spill] sm:$0xff]  ;;  %v10534_v10 = vpack.c.bf16 %v10373_v34, %v10368_v16  ;;  %v10541_v59 = vpack.c.bf16 %v832_v52, %v10408_v33  ;;  %7241 = vmatpush1.bf16.msra.mxu0 %v10414_v15 }
  0xfd   : > { %12526 = vst [vmem:[#allocation124_spill] sm:$0xff] %v10488_v0  ;;  %12530 = vst [vmem:[#allocation30_spill] sm:$0xff] %v10496_v3  ;;  %v10514_v23 = vpack.c.bf16 %v12536_v43, %v12535_v6  ;;  %v12538_v39 = vld [vmem:[#allocation50_spill] sm:$0xff]  ;;  %v12541_v37 = vld [vmem:[#allocation52_spill] sm:$0xff]  ;;  %v822_v6 = vsub.f32 %v10408_v33, %v821_v28  ;;  %v834_v43 = vsub.f32 %v832_v52, %v833_v5  ;;  %7051 = vmatprep.subr.bf16.mxu1 %v10418_v17 }
  0xfe   : > { %12529 = vst [vmem:[#allocation125_spill] sm:$0xff] %v10492_v24  ;;  %12531 = vst [vmem:[#allocation31_spill] sm:$0xff] %v10502_v20  ;;  %v10518_v47 = vpack.c.bf16 %v12539_v51, %v12538_v39  ;;  %v10522_v1 = vpack.c.bf16 %v12542_v8, %v12541_v37  ;;  %v12544_v31 = vld [vmem:[#allocation59_spill] sm:$0xff]  ;;  %v12545_v49 = vld [vmem:[#allocation60_spill] sm:$0xff]  ;;  %v10538_v51 = vpack.c.bf16 %v10385_v42, %v10380_v44  ;;  %v799_v8 = vand.u32 4294901760, %v798_v57 }
  0xff   : > { %12532 = vst [vmem:[#allocation32_spill] sm:$0xff] %v10506_v58  ;;  %12534 = vst [vmem:[#allocation33_spill] sm:$0xff] %v10510_v4  ;;  %v10526_v48 = vpack.c.bf16 %v12545_v49, %v12544_v31  ;;  %v811_v49 = vand.u32 4294901760, %v810_v40  ;;  %7243 = vmatprep.subr.bf16.mxu0 %v10416_v12  ;;  %v10548_v39 = vpack.c.bf16 %v805_v35, %v793_v25  ;;  %v12551_v37 = vand.u32 4294901760, %v10341_v30  ;;  %v12606_v12 = vld [vmem:[#allocation44_spill] sm:$0xff] }
 0x100   : > { %12537 = vst [vmem:[#allocation37_spill] sm:$0xff] %v10514_v23  ;;  %12540 = vst [vmem:[#allocation46_spill] sm:$0xff] %v10518_v47  ;;  %v12552_v31 = vand.u32 4294901760, %v10360_v9  ;;  %v817_v50 = vand.u32 4294901760, %v816_v22  ;;  %v829_v13 = vand.u32 4294901760, %v828_v55  ;;  %7053 = vmatpush1.bf16.msra.mxu1 %v10420_v7  ;;  %7245 = vmatpush1.bf16.msra.mxu0 %v10422_v45  ;;  %v12554_v57 = vand.u32 4294901760, %v10368_v16 }
 0x101   : > { %12543 = vst [vmem:[#allocation47_spill] sm:$0xff] %v10522_v1  ;;  %12546 = vst [vmem:[#allocation49_spill] sm:$0xff] %v10526_v48  ;;  %v10558_v33 = vpack.c.bf16 %v811_v49, %v799_v8  ;;  %v12555_v40 = vand.u32 4294901760, %v10373_v34  ;;  %v823_v52 = vand.u32 4294901760, %v822_v6  ;;  %v835_v30 = vand.u32 4294901760, %v834_v43  ;;  %7055 = vmatprep.subr.bf16.mxu1 %v10548_v39  ;;  %v12571_v6 = vld [vmem:[#allocation82_spill] sm:$0xff] }
 0x102   : > { %12547 = vst [vmem:[#allocation50_spill] sm:$0xff] %v10530_v18  ;;  %12548 = vst [vmem:[#allocation51_spill] sm:$0xff] %v10534_v10  ;;  %v10554_v54 = vpack.c.bf16 %v12552_v31, %v12551_v37  ;;  %v10568_v9 = vpack.c.bf16 %v829_v13, %v817_v50  ;;  %v12558_v22 = vand.u32 4294901760, %v10380_v44  ;;  %v12559_v55 = vand.u32 4294901760, %v10385_v42  ;;  %v12563_v13 = vld [vmem:[#allocation71_spill] sm:$0xff]  ;;  %v12564_v50 = vld [vmem:[#allocation72_spill] sm:$0xff] }
 0x103   : > { %12549 = vst [vmem:[#allocation52_spill] sm:$0xff] %v10538_v51  ;;  %12550 = vst [vmem:[#allocation135_spill] sm:$0xff] %v10541_v59  ;;  %v10564_v25 = vpack.c.bf16 %v12555_v40, %v12554_v57  ;;  %v10578_v16 = vpack.c.bf16 %v835_v30, %v823_v52  ;;  %v10580_v34 = vpack.c.bf16 %v833_v5, %v821_v28  ;;  %v12566_v44 = vld [vmem:[#allocation77_spill] sm:$0xff]  ;;  %v12567_v42 = vld [vmem:[#allocation78_spill] sm:$0xff] }
 0x104   : > { %12553 = vst [vmem:[#allocation59_spill] sm:$0xff] %v10554_v54  ;;  %7247 = vmatprep.subr.bf16.mxu0 %v10554_v54  ;;  %12557 = vst [vmem:[#allocation139_spill] sm:$0xff] %v10568_v9  ;;  %v10574_v35 = vpack.c.bf16 %v12559_v55, %v12558_v22  ;;  %7057 = vmatpush1.bf16.msra.mxu1 %v10558_v33  ;;  %v10586_v8 = vpack.c.bf16 %v12564_v50, %v12563_v13  ;;  %v12569_v28 = vld [vmem:[#allocation13_spill] sm:$0xff]  ;;  %v12573_v37 = vld [vmem:[#allocation75_spill] sm:$0xff] }
 0x105   : > { %12556 = vst [vmem:[#allocation60_spill] sm:$0xff] %v10564_v25  ;;  %7249 = vmatpush1.bf16.msra.mxu0 %v10564_v25  ;;  %12561 = vst [vmem:[#allocation141_spill] sm:$0xff] %v10578_v16  ;;  %7059 = vmatprep.subr.bf16.mxu1 %v10568_v9  ;;  %v10592_v49 = vpack.c.bf16 %v12567_v42, %v12566_v44  ;;  %v12570_v5 = vld [vmem:[#allocation81_spill] sm:$0xff]  ;;  %v12574_v31 = vld [vmem:[#allocation14_spill] sm:$0xff] }
 0x106   : > { %12560 = vst [vmem:[#allocation140_spill] sm:$0xff] %v10574_v35  ;;  %12562 = vst [vmem:[#allocation142_spill] sm:$0xff] %v10580_v34  ;;  %7251 = vmatprep.subr.bf16.mxu0 %v10574_v35  ;;  %v10598_v43 = vpack.c.bf16 %v12571_v6, %v12570_v5  ;;  %v12575_v57 = vld [vmem:[#allocation88_spill] sm:$0xff]  ;;  %v12576_v40 = vld [vmem:[#allocation89_spill] sm:$0xff] }
 0x107   : > { %12565 = vst [vmem:[#allocation71_spill] sm:$0xff] %v10586_v8  ;;  %12568 = vst [vmem:[#allocation72_spill] sm:$0xff] %v10592_v49  ;;  %v10606_v52 = vpack.c.bf16 %v12576_v40, %v12575_v57  ;;  %v12578_v30 = vld [vmem:[#allocation15_spill] sm:$0xff]  ;;  %v12579_v22 = vld [vmem:[#allocation90_spill] sm:$0xff] }
 0x108   : > { %7061 = vmatpush1.bf16.msra.mxu1 %v10578_v16  ;;  %12572 = vst [vmem:[#allocation77_spill] sm:$0xff] %v10598_v43  ;;  %v12580_v55 = vld [vmem:[#allocation92_spill] sm:$0xff]  ;;  %v12582_v50 = vld [vmem:[#allocation70_spill] sm:$0xff]  ;;  %v12585_v5 = vld [vmem:[#allocation93_spill] sm:$0xff] }
 0x109   : > { %7253 = vmatpush1.bf16.msra.mxu0 %v10580_v34  ;;  %7063 = vmatprep.subr.bf16.mxu1 %v10586_v8  ;;  %12577 = vst [vmem:[#allocation78_spill] sm:$0xff] %v10606_v52  ;;  %v10612_v13 = vpack.c.bf16 %v12580_v55, %v12579_v22  ;;  %v12583_v44 = vld [vmem:[#allocation62_spill] sm:$0xff]  ;;  %v12584_v42 = vld [vmem:[#allocation16_spill] sm:$0xff]  ;;  %v12588_v40 = vld [vmem:[#allocation17_spill] sm:$0xff] }
 0x10a   : > { %7255 = vmatprep.subr.bf16.mxu0 %v12569_v28  ;;  %v12586_v6 = vld [vmem:[#allocation94_spill] sm:$0xff]  ;;  %v12589_v34 = vld [vmem:[#allocation97_spill] sm:$0xff]  ;;  %v12590_v35 = vld [vmem:[#allocation99_spill] sm:$0xff] }
 0x10b   : > { %840 = vmatmul.mubr.f32.vlgmr.msra.gmra.mrb[0].mxu1 %v12573_v37  ;;  %12581 = vst [vmem:[#allocation13_spill] sm:$0xff] %v10612_v13  ;;  %v10620_v57 = vpack.c.bf16 %v12586_v6, %v12585_v5  ;;  %v10626_v22 = vpack.c.bf16 %v12590_v35, %v12589_v34  ;;  %v12592_v55 = vld [vmem:[#allocation18_spill] sm:$0xff]  ;;  %v12596_v5 = vld [vmem:[#allocation19_spill] sm:$0xff]  ;;  %v12597_v6 = vld [vmem:[#allocation108_spill] sm:$0xff] }
 0x10c   : > { %1449 = vmatmul.mubr.f32.vlgmr.msra.gmra.mrb[0].mxu0 %v12573_v37  ;;  %7065 = vmatpush1.bf16.msra.mxu1 %v10592_v49  ;;  %v12598_v54 = vld [vmem:[#allocation109_spill] sm:$0xff]  ;;  %v12601_v34 = vld [vmem:[#allocation26_spill] sm:$0xff]  ;;  %v12607_v15 = vld [vmem:[#allocation48_spill] sm:$0xff] }
 0x10d   : > { %7257 = vmatpush1.bf16.msra.mxu0 %v12574_v31  ;;  %7067 = vmatprep.subr.bf16.mxu1 %v10598_v43  ;;  %12587 = vst [vmem:[#allocation81_spill] sm:$0xff] %v10620_v57  ;;  %12591 = vst [vmem:[#allocation82_spill] sm:$0xff] %v10626_v22  ;;  %v10638_v45 = vpack.c.bf16 %v12598_v54, %v12597_v6  ;;  %v12600_v35 = vld [vmem:[#allocation21_spill] sm:$0xff]  ;;  %v12604_v54 = vld [vmem:[#allocation36_spill] sm:$0xff] }
 0x10e   : > { %7259 = vmatprep.subr.bf16.mxu0 %v12578_v30  ;;  %1040 = vmatprep.mubr.f32.mxu1 %v12582_v50  ;;  %v12593_v50 = vld [vmem:[#allocation101_spill] sm:$0xff]  ;;  %v12605_v6 = vld [vmem:[#allocation40_spill] sm:$0xff] }
 0x10f   : > { %1584 = vmatprep.mubr.f32.mxu0 %v12583_v44  ;;  %v12594_v44 = vld [vmem:[#allocation103_spill] sm:$0xff]  ;;  %12599 = vst [vmem:[#allocation14_spill] sm:$0xff] %v10638_v45 }
 0x110   : > { %7069 = vmatpush1.bf16.msra.mxu1 %v10606_v52  ;;  %v10632_v25 = vpack.c.bf16 %v12594_v44, %v12593_v50  ;;  %v12602_v50 = vld [vmem:[#allocation34_spill] sm:$0xff]  ;;  %v12603_v44 = vld [vmem:[#allocation35_spill] sm:$0xff] }
 0x111   : > { %7261 = vmatpush1.bf16.msra.mxu0 %v12584_v42  ;;  %7071 = vmatprep.subr.bf16.mxu1 %v10612_v13  ;;  %v12627_v13 = vld [vmem:[#allocation86_spill] sm:$0xff] }
 0x112   : > { %7263 = vmatprep.subr.bf16.mxu0 %v12588_v40  ;;  %12595 = vst [vmem:[#allocation75_spill] sm:$0xff] %v10632_v25 }
 0x114   : > { %7073 = vmatpush1.bf16.msra.mxu1 %v10620_v57  ;;  %v12624_v57 = vld [vmem:[#allocation87_spill] sm:$0xff] }
 0x115   : > { %7265 = vmatpush1.bf16.msra.mxu0 %v12592_v55  ;;  %7075 = vmatprep.subr.bf16.mxu1 %v10626_v22  ;;  %v12623_v22 = vld [vmem:[#allocation85_spill] sm:$0xff] }
 0x116   : > { %7267 = vmatprep.subr.bf16.mxu0 %v12596_v5 }
 0x118   : > { %7077 = vmatpush1.bf16.msra.mxu1 %v10632_v25 }
 0x119   : > { %7269 = vmatpush1.bf16.msra.mxu0 %v12600_v35  ;;  %7079 = vmatprep.subr.bf16.mxu1 %v10638_v45  ;;  %v12621_v45 = vld [vmem:[#allocation83_spill] sm:$0xff] }
 0x11a   : > { %7271 = vmatprep.subr.bf16.mxu0 %v12601_v34 }
 0x11c   : > { %7081 = vmatpush1.bf16.msra.mxu1 %v10450_v2 }
 0x11d   : > { %7273 = vmatpush1.bf16.msra.mxu0 %v12602_v50  ;;  %7083 = vmatprep.subr.bf16.mxu1 %v10454_v21  ;;  %v12619_v21 = vld [vmem:[#allocation67_spill] sm:$0xff] }
 0x11e   : > { %7275 = vmatprep.subr.bf16.mxu0 %v12603_v44 }
 0x120   : > { %7085 = vmatpush1.bf16.msra.mxu1 %v10458_v62 }
 0x121   : > { %7277 = vmatpush1.bf16.msra.mxu0 %v12604_v54  ;;  %7087 = vmatprep.subr.bf16.mxu1 %v10462_v41  ;;  %v10678_v41 = vld [vmem:[%s207_s7] sm:$0xff] }
 0x122   : > { %7279 = vmatprep.subr.bf16.mxu0 %v12605_v6  ;;  %12615 = vst [vmem:[#allocation89_spill] sm:$0xff] %v10678_v41 }
 0x124   : > { %7089 = vmatpush1.bf16.msra.mxu1 %v10466_v14  ;;  %v12611_v14 = vld [vmem:[#allocation56_spill] sm:$0xff] }
 0x125   : > { %7281 = vmatpush1.bf16.msra.mxu0 %v12606_v12  ;;  %7091 = vmatprep.subr.bf16.mxu1 %v10470_v56  ;;  %v12612_v56 = vld [vmem:[#allocation57_spill] sm:$0xff] }
 0x126   : > { %7283 = vmatprep.subr.bf16.mxu0 %v12607_v15 }
 0x128   : > { %7093 = vmatpush1.bf16.msra.mxu1 %v10474_v36  ;;  %v12613_v36 = vld [vmem:[#allocation58_spill] sm:$0xff] }
 0x129   : > { %7285 = vmatpush1.bf16.msra.mxu0 %v12608_v19  ;;  %7095 = vmatprep.subr.bf16.mxu1 %v10478_v38  ;;  %v10670_v38 = vld [vmem:[%s198_s25] sm:$0xff] }
 0x12a   : > { %7287 = vmatprep.subr.bf16.mxu0 %v12609_v46  ;;  %12614 = vst [vmem:[#allocation88_spill] sm:$0xff] %v10670_v38 }
 0x12c   : > { %7097 = vmatpush1.bf16.msra.mxu1 %v10482_v11  ;;  %v10674_v11 = vmul.f32 %v10670_v38, %v10670_v38  ;;  %v12618_v38 = vld [vmem:[#allocation65_spill] sm:$0xff] }
 0x12d   : > { %7289 = vmatpush1.bf16.msra.mxu0 %v12610_v61  ;;  %7099 = vmatprep.subr.bf16.mxu1 %v10488_v0  ;;  %v12616_v0 = vld [vmem:[#allocation63_spill] sm:$0xff] }
 0x12e   : > { %7291 = vmatprep.subr.bf16.mxu0 %v12611_v14  ;;  %v2881_v62 = vcombine.high %v10674_v11, %v10674_v11 }
 0x130   : > { %7101 = vmatpush1.bf16.msra.mxu1 %v10492_v24  ;;  %v12617_v24 = vld [vmem:[#allocation64_spill] sm:$0xff]  ;;  %v10694_v2 = vand.u32 4294901760, %v2881_v62 }
 0x131   : > { %7293 = vmatpush1.bf16.msra.mxu0 %v12612_v56  ;;  %7103 = vmatprep.subr.bf16.mxu1 %v10496_v3  ;;  %v1593_v3 = vcombine.high %v10678_v41, %v10678_v41 }
 0x132   : > { %7295 = vmatprep.subr.bf16.mxu0 %v12613_v36  ;;  %v10704_v25 = vsub.f32 %v2881_v62, %v10694_v2  ;;  %v12625_v62 = vld [vmem:[#allocation91_spill] sm:$0xff] }
 0x134   : > { %7105 = vmatpush1.bf16.msra.mxu1 %v10502_v20  ;;  %v10692_v20 = vand.u32 4294901760, %v1593_v3 }
 0x135   : > { %7297 = vmatpush1.bf16.msra.mxu0 %v12616_v0  ;;  %7107 = vmatprep.subr.bf16.mxu1 %v10506_v58  ;;  %v12620_v58 = vld [vmem:[#allocation73_spill] sm:$0xff] }
 0x136   : > { %7299 = vmatprep.subr.bf16.mxu0 %v12617_v24 }
 0x138   : > { %7109 = vmatpush1.bf16.msra.mxu1 %v10510_v4  ;;  %v10701_v4 = vsub.f32 %v1593_v3, %v10692_v20 }
 0x139   : > { %7301 = vmatpush1.bf16.msra.mxu0 %v12618_v38  ;;  %7111 = vmatprep.subr.bf16.mxu1 %v10514_v23  ;;  %v12622_v23 = vld [vmem:[#allocation84_spill] sm:$0xff] }
 0x13a   : > { %7303 = vmatprep.subr.bf16.mxu0 %v12619_v21 }
 0x13c   : > { %7113 = vmatpush1.bf16.msra.mxu1 %v10518_v47  ;;  %v12099_v47 = vand.u32 4294901760, %v10701_v4 }
 0x13d   : > { %7305 = vmatpush1.bf16.msra.mxu0 %v12620_v58  ;;  %7115 = vmatprep.subr.bf16.mxu1 %v10522_v1  ;;  %v12098_v1 = vand.u32 4294901760, %v10704_v25 }
 0x13e   : > { %7307 = vmatprep.subr.bf16.mxu0 %v12621_v45  ;;  %v1726_v3 = vsub.f32 %v10701_v4, %v12099_v47 }
 0x140   : > { %7117 = vmatpush1.bf16.msra.mxu1 %v10526_v48  ;;  %v12626_v48 = vld [vmem:[#allocation95_spill] sm:$0xff] }
 0x141   : > { %7309 = vmatpush1.bf16.msra.mxu0 %v12622_v23  ;;  %7119 = vmatprep.subr.bf16.mxu1 %v10530_v18  ;;  %v3014_v18 = vsub.f32 %v10704_v25, %v12098_v1 }
 0x142   : > { %7311 = vmatprep.subr.bf16.mxu0 %v12623_v22 }
 0x144   : > { %7121 = vmatpush1.bf16.msra.mxu1 %v10534_v10  ;;  %v1727_v10 = vand.u32 4294901760, %v1726_v3 }
 0x145   : > { %7313 = vmatpush1.bf16.msra.mxu0 %v12624_v57  ;;  %7123 = vmatprep.subr.bf16.mxu1 %v10538_v51  ;;  %v3015_v51 = vand.u32 4294901760, %v3014_v18  ;;  %v10773_v18 = vand.u32 4294901760, %v10674_v11 }
 0x146   : > { %7315 = vmatprep.subr.bf16.mxu0 %v12625_v62 }
 0x148   : > { %7125 = vmatpush1.bf16.msra.mxu1 %v10541_v59 }
 0x149   : > { %7317 = vmatpush1.bf16.msra.mxu0 %v12626_v48  ;;  %7319 = vmatprep.subr.bf16.mxu1 %v12569_v28 }
 0x14a   : > { %7703 = vmatprep.subr.bf16.mxu0 %v12569_v28 }
 0x14b   : > { %1043 = vmatmul.mubr.f32.vlgmr.msra.gmra.mrb[0].mxu1 %v12627_v13 }
 0x14c   : > { %1586 = vmatmul.mubr.f32.vlgmr.msra.gmra.mrb[0].mxu0 %v12573_v37  ;;  %7321 = vmatpush1.bf16.msra.mxu1 %v12574_v31  ;;  %v10788_v37 = vsub.f32 %v10674_v11, %v10773_v18 }
 0x14d   : > { %7705 = vmatpush1.bf16.msra.mxu0 %v12574_v31  ;;  %7323 = vmatprep.subr.bf16.mxu1 %v12578_v30 }
 0x14e   : > { %7707 = vmatprep.subr.bf16.mxu0 %v12578_v30  ;;  %1728 = vmatprep.mubr.f32.mxu1 %v1727_v10  ;;  %v10776_v10 = vand.u32 4294901760, %v10678_v41  ;;  %v12103_v3 = vand.u32 4294901760, %v10788_v37 }
 0x14f   : > { %3016 = vmatprep.mubr.f32.mxu0 %v3015_v51 }
 0x150   : > { %7325 = vmatpush1.bf16.msra.mxu1 %v12584_v42  ;;  %v10784_v51 = vsub.f32 %v10678_v41, %v10776_v10  ;;  %v3020_v1 = vsub.f32 %v10788_v37, %v12103_v3  ;;  %v12629_v3 = vld [vmem:[#allocation102_spill] sm:$0xff] }
 0x151   : > { %7709 = vmatpush1.bf16.msra.mxu0 %v12584_v42  ;;  %7327 = vmatprep.subr.bf16.mxu1 %v12588_v40 }
 0x152   : > { %7711 = vmatprep.subr.bf16.mxu0 %v12588_v40  ;;  %v12104_v13 = vand.u32 4294901760, %v10784_v51  ;;  %v3021_v41 = vand.u32 4294901760, %v3020_v1  ;;  %v12631_v1 = vld [vmem:[#allocation111_spill] sm:$0xff] }
 0x154   : > { %7329 = vmatpush1.bf16.msra.mxu1 %v12592_v55  ;;  %v1732_v11 = vsub.f32 %v10784_v51, %v12104_v13  ;;  %v12630_v13 = vld [vmem:[#allocation104_spill] sm:$0xff] }
 0x155   : > { %7713 = vmatpush1.bf16.msra.mxu0 %v12592_v55  ;;  %7331 = vmatprep.subr.bf16.mxu1 %v12596_v5 }
 0x156   : > { %7715 = vmatprep.subr.bf16.mxu0 %v12596_v5  ;;  %v1733_v47 = vand.u32 4294901760, %v1732_v11  ;;  %v12632_v11 = vld [vmem:[#allocation112_spill] sm:$0xff] }
 0x158   : > { %7333 = vmatpush1.bf16.msra.mxu1 %v12600_v35 }
 0x159   : > { %7717 = vmatpush1.bf16.msra.mxu0 %v12600_v35  ;;  %7335 = vmatprep.subr.bf16.mxu1 %v12601_v34 }
 0x15a   : > { %7719 = vmatprep.subr.bf16.mxu0 %v12601_v34 }
 0x15c   : > { %7337 = vmatpush1.bf16.msra.mxu1 %v12602_v50 }
 0x15d   : > { %7721 = vmatpush1.bf16.msra.mxu0 %v12602_v50  ;;  %7339 = vmatprep.subr.bf16.mxu1 %v12603_v44 }
 0x15e   : > { %7723 = vmatprep.subr.bf16.mxu0 %v12603_v44 }
 0x160   : > { %7341 = vmatpush1.bf16.msra.mxu1 %v12604_v54 }
 0x161   : > { %7725 = vmatpush1.bf16.msra.mxu0 %v12604_v54  ;;  %7343 = vmatprep.subr.bf16.mxu1 %v12605_v6 }
 0x162   : > { %7727 = vmatprep.subr.bf16.mxu0 %v12605_v6 }
 0x164   : > { %7345 = vmatpush1.bf16.msra.mxu1 %v12606_v12 }
 0x165   : > { %7729 = vmatpush1.bf16.msra.mxu0 %v12606_v12  ;;  %7347 = vmatprep.subr.bf16.mxu1 %v12607_v15 }
 0x166   : > { %7731 = vmatprep.subr.bf16.mxu0 %v12607_v15 }
 0x168   : > { %7349 = vmatpush1.bf16.msra.mxu1 %v12608_v19 }
 0x169   : > { %7733 = vmatpush1.bf16.msra.mxu0 %v12608_v19  ;;  %7351 = vmatprep.subr.bf16.mxu1 %v12609_v46 }
 0x16a   : > { %7735 = vmatprep.subr.bf16.mxu0 %v12609_v46 }
 0x16c   : > { %7353 = vmatpush1.bf16.msra.mxu1 %v12610_v61 }
 0x16d   : > { %7737 = vmatpush1.bf16.msra.mxu0 %v12610_v61  ;;  %7355 = vmatprep.subr.bf16.mxu1 %v12611_v14 }
 0x16e   : > { %7739 = vmatprep.subr.bf16.mxu0 %v12611_v14 }
 0x170   : > { %7357 = vmatpush1.bf16.msra.mxu1 %v12612_v56 }
 0x171   : > { %7741 = vmatpush1.bf16.msra.mxu0 %v12612_v56  ;;  %7359 = vmatprep.subr.bf16.mxu1 %v12613_v36 }
 0x172   : > { %7743 = vmatprep.subr.bf16.mxu0 %v12613_v36 }
 0x174   : > { %7361 = vmatpush1.bf16.msra.mxu1 %v12616_v0 }
 0x175   : > { %7745 = vmatpush1.bf16.msra.mxu0 %v12616_v0  ;;  %7363 = vmatprep.subr.bf16.mxu1 %v12617_v24 }
 0x176   : > { %7747 = vmatprep.subr.bf16.mxu0 %v12617_v24 }
 0x178   : > { %7365 = vmatpush1.bf16.msra.mxu1 %v12618_v38 }
 0x179   : > { %7749 = vmatpush1.bf16.msra.mxu0 %v12618_v38  ;;  %7367 = vmatprep.subr.bf16.mxu1 %v12619_v21 }
 0x17a   : > { %7751 = vmatprep.subr.bf16.mxu0 %v12619_v21 }
 0x17c   : > { %7369 = vmatpush1.bf16.msra.mxu1 %v12620_v58 }
 0x17d   : > { %7753 = vmatpush1.bf16.msra.mxu0 %v12620_v58  ;;  %7371 = vmatprep.subr.bf16.mxu1 %v12621_v45 }
 0x17e   : > { %7755 = vmatprep.subr.bf16.mxu0 %v12621_v45 }
 0x180   : > { %7373 = vmatpush1.bf16.msra.mxu1 %v12622_v23 }
 0x181   : > { %7757 = vmatpush1.bf16.msra.mxu0 %v12622_v23  ;;  %7375 = vmatprep.subr.bf16.mxu1 %v12623_v22 }
 0x182   : > { %7759 = vmatprep.subr.bf16.mxu0 %v12623_v22  ;;  %v12628_v22 = vld [vmem:[#allocation100_spill] sm:$0xff] }
 0x184   : > { %7377 = vmatpush1.bf16.msra.mxu1 %v12624_v57 }
 0x185   : > { %7761 = vmatpush1.bf16.msra.mxu0 %v12624_v57  ;;  %7379 = vmatprep.subr.bf16.mxu1 %v12625_v62 }
 0x186   : > { %7763 = vmatprep.subr.bf16.mxu0 %v12625_v62 }
 0x188   : > { %7381 = vmatpush1.bf16.msra.mxu1 %v12626_v48 }
 0x189   : > { %7765 = vmatpush1.bf16.msra.mxu0 %v12626_v48  ;;  %7383 = vmatprep.subr.bf16.mxu1 %v12628_v22 }
 0x18a   : > { %7767 = vmatprep.subr.bf16.mxu0 %v12628_v22 }
 0x18b   : > { %1734 = vmatmul.mubr.f32.vlgmr.msra.gmra.mrb[2].mxu1 %v1733_v47  ;;  %v12633_v47 = vld [vmem:[#allocation114_spill] sm:$0xff] }
 0x18c   : > { %3022 = vmatmul.mubr.f32.vlgmr.msra.gmra.mrb[2].mxu0 %v3021_v41  ;;  %7385 = vmatpush1.bf16.msra.mxu1 %v12629_v3  ;;  %v12634_v41 = vld [vmem:[#allocation20_spill] sm:$0xff] }
 0x18d   : > { %7769 = vmatpush1.bf16.msra.mxu0 %v12629_v3  ;;  %7387 = vmatprep.subr.bf16.mxu1 %v12630_v13  ;;  %v12636_v3 = vld [vmem:[#allocation25_spill] sm:$0xff] }
 0x18e   : > { %7771 = vmatprep.subr.bf16.mxu0 %v12630_v13  ;;  %2125 = vmatprep.mubr.f32.mxu1 %v10692_v20  ;;  %v12635_v13 = vld [vmem:[#allocation23_spill] sm:$0xff] }
 0x18f   : > { %3413 = vmatprep.mubr.f32.mxu0 %v10694_v2 }
 0x190   : > { %7389 = vmatpush1.bf16.msra.mxu1 %v12631_v1 }
 0x191   : > { %7773 = vmatpush1.bf16.msra.mxu0 %v12631_v1  ;;  %7391 = vmatprep.subr.bf16.mxu1 %v12632_v11  ;;  %v12637_v1 = vld [vmem:[#allocation118_spill] sm:$0xff] }
 0x192   : > { %7775 = vmatprep.subr.bf16.mxu0 %v12632_v11  ;;  %v12638_v11 = vld [vmem:[#allocation121_spill] sm:$0xff] }
 0x194   : > { %7393 = vmatpush1.bf16.msra.mxu1 %v12633_v47 }
 0x195   : > { %7777 = vmatpush1.bf16.msra.mxu0 %v12633_v47  ;;  %7395 = vmatprep.subr.bf16.mxu1 %v12634_v41  ;;  %v12639_v47 = vld [vmem:[#allocation123_spill] sm:$0xff] }
 0x196   : > { %7779 = vmatprep.subr.bf16.mxu0 %v12634_v41  ;;  %v12640_v41 = vld [vmem:[#allocation127_spill] sm:$0xff] }
 0x198   : > { %7397 = vmatpush1.bf16.msra.mxu1 %v12635_v13 }
 0x199   : > { %7781 = vmatpush1.bf16.msra.mxu0 %v12635_v13  ;;  %7399 = vmatprep.subr.bf16.mxu1 %v12636_v3  ;;  %v12641_v13 = vld [vmem:[#allocation129_spill] sm:$0xff] }
 0x19a   : > { %7783 = vmatprep.subr.bf16.mxu0 %v12636_v3  ;;  %v12642_v3 = vld [vmem:[#allocation38_spill] sm:$0xff] }
 0x19c   : > { %7401 = vmatpush1.bf16.msra.mxu1 %v12637_v1 }
 0x19d   : > { %7785 = vmatpush1.bf16.msra.mxu0 %v12637_v1  ;;  %7403 = vmatprep.subr.bf16.mxu1 %v12638_v11  ;;  %v12643_v1 = vld [vmem:[#allocation43_spill] sm:$0xff] }
 0x19e   : > { %7787 = vmatprep.subr.bf16.mxu0 %v12638_v11  ;;  %v12644_v11 = vld [vmem:[#allocation45_spill] sm:$0xff] }
 0x1a0   : > { %7405 = vmatpush1.bf16.msra.mxu1 %v12639_v47 }
 0x1a1   : > { %7789 = vmatpush1.bf16.msra.mxu0 %v12639_v47  ;;  %7407 = vmatprep.subr.bf16.mxu1 %v12640_v41  ;;  %v12645_v47 = vld [vmem:[#allocation130_spill] sm:$0xff] }
 0x1a2   : > { %7791 = vmatprep.subr.bf16.mxu0 %v12640_v41  ;;  %v12646_v41 = vld [vmem:[#allocation133_spill] sm:$0xff] }
 0x1a4   : > { %7409 = vmatpush1.bf16.msra.mxu1 %v12641_v13 }
 0x1a5   : > { %7793 = vmatpush1.bf16.msra.mxu0 %v12641_v13  ;;  %7411 = vmatprep.subr.bf16.mxu1 %v12642_v3 }
 0x1a6   : > { %7795 = vmatprep.subr.bf16.mxu0 %v12642_v3 }
 0x1a8   : > { %7413 = vmatpush1.bf16.msra.mxu1 %v12643_v1 }
 0x1a9   : > { %7797 = vmatpush1.bf16.msra.mxu0 %v12643_v1  ;;  %7415 = vmatprep.subr.bf16.mxu1 %v12644_v11 }
 0x1aa   : > { %7799 = vmatprep.subr.bf16.mxu0 %v12644_v11 }
 0x1ac   : > { %7417 = vmatpush1.bf16.msra.mxu1 %v12645_v47 }
 0x1ad   : > { %7801 = vmatpush1.bf16.msra.mxu0 %v12645_v47  ;;  %7419 = vmatprep.subr.bf16.mxu1 %v12646_v41 }
 0x1ae   : > { %7803 = vmatprep.subr.bf16.mxu0 %v12646_v41 }
 0x1b0   : > { %7421 = vmatpush1.bf16.msra.mxu1 %v10256_v29 }
 0x1b1   : > { %7805 = vmatpush1.bf16.msra.mxu0 %v10256_v29  ;;  %7423 = vmatprep.subr.bf16.mxu1 %v10314_v60 }
 0x1b2   : > { %7807 = vmatprep.subr.bf16.mxu0 %v10314_v60 }
 0x1b4   : > { %7425 = vmatpush1.bf16.msra.mxu1 %v10329_v53 }
 0x1b5   : > { %7809 = vmatpush1.bf16.msra.mxu0 %v10329_v53  ;;  %7427 = vmatprep.subr.bf16.mxu1 %v10345_v32 }
 0x1b6   : > { %7811 = vmatprep.subr.bf16.mxu0 %v10345_v32 }
 0x1b8   : > { %7429 = vmatpush1.bf16.msra.mxu1 %v10401_v63 }
 0x1b9   : > { %7813 = vmatpush1.bf16.msra.mxu0 %v10401_v63  ;;  %7431 = vmatprep.subr.bf16.mxu1 %v10410_v26 }
 0x1ba   : > { %7815 = vmatprep.subr.bf16.mxu0 %v10410_v26 }
 0x1bc   : > { %7433 = vmatpush1.bf16.msra.mxu1 %v10412_v27 }
 0x1bd   : > { %7817 = vmatpush1.bf16.msra.mxu0 %v10412_v27  ;;  %7435 = vmatprep.subr.bf16.mxu1 %v10418_v17 }
 0x1be   : > { %7819 = vmatprep.subr.bf16.mxu0 %v10418_v17 }
 0x1c0   : > { %7437 = vmatpush1.bf16.msra.mxu1 %v10420_v7 }
 0x1c1   : > { %7821 = vmatpush1.bf16.msra.mxu0 %v10420_v7  ;;  %7439 = vmatprep.subr.bf16.mxu1 %v10548_v39 }
 0x1c2   : > { %7823 = vmatprep.subr.bf16.mxu0 %v10548_v39 }
 0x1c4   : > { %7441 = vmatpush1.bf16.msra.mxu1 %v10558_v33 }
 0x1c5   : > { %7825 = vmatpush1.bf16.msra.mxu0 %v10558_v33  ;;  %7443 = vmatprep.subr.bf16.mxu1 %v10568_v9 }
 0x1c6   : > { %7827 = vmatprep.subr.bf16.mxu0 %v10568_v9  ;;  %v12651_v9 = vld [vmem:[#allocation14_spill] sm:$0xff] }
 0x1c8   : > { %7445 = vmatpush1.bf16.msra.mxu1 %v10578_v16 }
 0x1c9   : > { %7829 = vmatpush1.bf16.msra.mxu0 %v10578_v16  ;;  %7447 = vmatprep.subr.bf16.mxu1 %v10586_v8  ;;  %v12648_v16 = vld [vmem:[#allocation81_spill] sm:$0xff] }
 0x1ca   : > { %7831 = vmatprep.subr.bf16.mxu0 %v10586_v8  ;;  %v12647_v8 = vld [vmem:[#allocation13_spill] sm:$0xff] }
 0x1cb   : > { %2127 = vmatmul.mubr.f32.vlgmr.msra.gmra.mrb[2].mxu1 %v10776_v10 }
 0x1cc   : > { %3415 = vmatmul.mubr.f32.vlgmr.msra.gmra.mrb[2].mxu0 %v10773_v18  ;;  %7449 = vmatpush1.bf16.msra.mxu1 %v10592_v49 }
 0x1cd   : > { %7833 = vmatpush1.bf16.msra.mxu0 %v10592_v49  ;;  %7451 = vmatprep.subr.bf16.mxu1 %v10598_v43  ;;  %v12649_v49 = vld [vmem:[#allocation82_spill] sm:$0xff] }
 0x1ce   : > { %7835 = vmatprep.subr.bf16.mxu0 %v10598_v43  ;;  %2327 = vmatprep.mubr.f32.mxu1 %v10701_v4  ;;  %v12650_v43 = vld [vmem:[#allocation75_spill] sm:$0xff] }
 0x1cf   : > { %3615 = vmatprep.mubr.f32.mxu0 %v10704_v25 }
 0x1d0   : > { %7453 = vmatpush1.bf16.msra.mxu1 %v10606_v52 }
 0x1d1   : > { %7837 = vmatpush1.bf16.msra.mxu0 %v10606_v52  ;;  %7455 = vmatprep.subr.bf16.mxu1 %v12647_v8  ;;  %v12652_v52 = vld [vmem:[#allocation76_spill] sm:$0xff] }
 0x1d2   : > { %7839 = vmatprep.subr.bf16.mxu0 %v12647_v8  ;;  %v12653_v8 = vld [vmem:[#allocation79_spill] sm:$0xff] }
 0x1d4   : > { %7457 = vmatpush1.bf16.msra.mxu1 %v12648_v16 }
 0x1d5   : > { %7841 = vmatpush1.bf16.msra.mxu0 %v12648_v16  ;;  %7459 = vmatprep.subr.bf16.mxu1 %v12649_v49  ;;  %v12654_v16 = vld [vmem:[#allocation80_spill] sm:$0xff] }
 0x1d6   : > { %7843 = vmatprep.subr.bf16.mxu0 %v12649_v49  ;;  %v12655_v49 = vld [vmem:[#allocation113_spill] sm:$0xff] }
 0x1d8   : > { %7461 = vmatpush1.bf16.msra.mxu1 %v12650_v43 }
 0x1d9   : > { %7845 = vmatpush1.bf16.msra.mxu0 %v12650_v43  ;;  %7463 = vmatprep.subr.bf16.mxu1 %v12651_v9  ;;  %v12656_v43 = vld [vmem:[#allocation138_spill] sm:$0xff] }
 0x1da   : > { %7847 = vmatprep.subr.bf16.mxu0 %v12651_v9  ;;  %v12657_v9 = vld [vmem:[#allocation22_spill] sm:$0xff] }
 0x1dc   : > { %7465 = vmatpush1.bf16.msra.mxu1 %v12652_v52 }
 0x1dd   : > { %7849 = vmatpush1.bf16.msra.mxu0 %v12652_v52  ;;  %7467 = vmatprep.subr.bf16.mxu1 %v12653_v8  ;;  %v12658_v52 = vld [vmem:[#allocation27_spill] sm:$0xff] }
 0x1de   : > { %7851 = vmatprep.subr.bf16.mxu0 %v12653_v8  ;;  %v12659_v8 = vld [vmem:[#allocation28_spill] sm:$0xff] }
 0x1e0   : > { %7469 = vmatpush1.bf16.msra.mxu1 %v12654_v16 }
 0x1e1   : > { %7853 = vmatpush1.bf16.msra.mxu0 %v12654_v16  ;;  %7471 = vmatprep.subr.bf16.mxu1 %v12655_v49  ;;  %v12660_v16 = vld [vmem:[#allocation29_spill] sm:$0xff] }
 0x1e2   : > { %7855 = vmatprep.subr.bf16.mxu0 %v12655_v49  ;;  %v12661_v49 = vld [vmem:[#allocation124_spill] sm:$0xff] }
 0x1e4   : > { %7473 = vmatpush1.bf16.msra.mxu1 %v12656_v43 }
 0x1e5   : > { %7857 = vmatpush1.bf16.msra.mxu0 %v12656_v43  ;;  %7475 = vmatprep.subr.bf16.mxu1 %v12657_v9  ;;  %v12662_v43 = vld [vmem:[#allocation125_spill] sm:$0xff] }
 0x1e6   : > { %7859 = vmatprep.subr.bf16.mxu0 %v12657_v9  ;;  %v12663_v9 = vld [vmem:[#allocation30_spill] sm:$0xff] }
 0x1e8   : > { %7477 = vmatpush1.bf16.msra.mxu1 %v12658_v52 }
 0x1e9   : > { %7861 = vmatpush1.bf16.msra.mxu0 %v12658_v52  ;;  %7479 = vmatprep.subr.bf16.mxu1 %v12659_v8  ;;  %v12664_v52 = vld [vmem:[#allocation31_spill] sm:$0xff] }
 0x1ea   : > { %7863 = vmatprep.subr.bf16.mxu0 %v12659_v8  ;;  %v12665_v8 = vld [vmem:[#allocation32_spill] sm:$0xff] }
 0x1ec   : > { %7481 = vmatpush1.bf16.msra.mxu1 %v12660_v16 }
 0x1ed   : > { %7865 = vmatpush1.bf16.msra.mxu0 %v12660_v16  ;;  %7483 = vmatprep.subr.bf16.mxu1 %v12661_v49  ;;  %v12666_v16 = vld [vmem:[#allocation33_spill] sm:$0xff] }
 0x1ee   : > { %7867 = vmatprep.subr.bf16.mxu0 %v12661_v49  ;;  %v12667_v49 = vld [vmem:[#allocation37_spill] sm:$0xff] }
 0x1f0   : > { %7485 = vmatpush1.bf16.msra.mxu1 %v12662_v43 }
 0x1f1   : > { %7869 = vmatpush1.bf16.msra.mxu0 %v12662_v43  ;;  %7487 = vmatprep.subr.bf16.mxu1 %v12663_v9  ;;  %v12668_v43 = vld [vmem:[#allocation46_spill] sm:$0xff] }
 0x1f2   : > { %7871 = vmatprep.subr.bf16.mxu0 %v12663_v9  ;;  %v12669_v9 = vld [vmem:[#allocation47_spill] sm:$0xff] }
 0x1f4   : > { %7489 = vmatpush1.bf16.msra.mxu1 %v12664_v52 }
 0x1f5   : > { %7873 = vmatpush1.bf16.msra.mxu0 %v12664_v52  ;;  %7491 = vmatprep.subr.bf16.mxu1 %v12665_v8  ;;  %v12670_v52 = vld [vmem:[#allocation49_spill] sm:$0xff] }
 0x1f6   : > { %7875 = vmatprep.subr.bf16.mxu0 %v12665_v8  ;;  %v12671_v8 = vld [vmem:[#allocation50_spill] sm:$0xff] }
 0x1f8   : > { %7493 = vmatpush1.bf16.msra.mxu1 %v12666_v16 }
 0x1f9   : > { %7877 = vmatpush1.bf16.msra.mxu0 %v12666_v16  ;;  %7495 = vmatprep.subr.bf16.mxu1 %v12667_v49  ;;  %v12672_v16 = vld [vmem:[#allocation51_spill] sm:$0xff] }
 0x1fa   : > { %7879 = vmatprep.subr.bf16.mxu0 %v12667_v49  ;;  %v12673_v49 = vld [vmem:[#allocation52_spill] sm:$0xff] }
 0x1fc   : > { %7497 = vmatpush1.bf16.msra.mxu1 %v12668_v43 }
 0x1fd   : > { %7881 = vmatpush1.bf16.msra.mxu0 %v12668_v43  ;;  %7499 = vmatprep.subr.bf16.mxu1 %v12669_v9 }
 0x1fe   : > { %7883 = vmatprep.subr.bf16.mxu0 %v12669_v9 }
 0x200   : > { %7501 = vmatpush1.bf16.msra.mxu1 %v12670_v52 }
 0x201   : > { %7885 = vmatpush1.bf16.msra.mxu0 %v12670_v52  ;;  %7503 = vmatprep.subr.bf16.mxu1 %v12671_v8  ;;  %v12684_v52 = vld [vmem:[#allocation106_spill] sm:$0xff] }
 0x202   : > { %7887 = vmatprep.subr.bf16.mxu0 %v12671_v8 }
 0x204   : > { %7505 = vmatpush1.bf16.msra.mxu1 %v12672_v16 }
 0x205   : > { %7889 = vmatpush1.bf16.msra.mxu0 %v12672_v16  ;;  %7507 = vmatprep.subr.bf16.mxu1 %v12673_v49 }
 0x206   : > { %7891 = vmatprep.subr.bf16.mxu0 %v12673_v49  ;;  %v12674_v49 = vand.u32 4294901760, %v10701_v4 }
 0x208   : > { %7509 = vmatpush1.bf16.msra.mxu1 %v10541_v59 }
 0x209   : > { %7893 = vmatpush1.bf16.msra.mxu0 %v10541_v59  ;;  %7511 = vmatprep.subr.bf16.mxu1 %v12569_v28  ;;  %v12675_v59 = vand.u32 4294901760, %v10704_v25 }
 0x20a   : > { %7895 = vmatprep.subr.bf16.mxu0 %v12569_v28 }
 0x20b   : > { %2330 = vmatmul.mubr.f32.vlgmr.msra.gmra.mrb[2].mxu1 %v10784_v51 }
 0x20c   : > { %3618 = vmatmul.mubr.f32.vlgmr.msra.gmra.mrb[2].mxu0 %v10788_v37  ;;  %7513 = vmatpush1.bf16.msra.mxu1 %v12574_v31 }
 0x20d   : > { %7897 = vmatpush1.bf16.msra.mxu0 %v12574_v31  ;;  %7515 = vmatprep.subr.bf16.mxu1 %v12578_v30 }
 0x20e   : > { %7899 = vmatprep.subr.bf16.mxu0 %v12578_v30  ;;  %2467 = vmatprep.mubr.f32.mxu1 %v12674_v49 }
 0x20f   : > { %3755 = vmatprep.mubr.f32.mxu0 %v12675_v59 }
 0x210   : > { %7517 = vmatpush1.bf16.msra.mxu1 %v12584_v42 }
 0x211   : > { %7901 = vmatpush1.bf16.msra.mxu0 %v12584_v42  ;;  %7519 = vmatprep.subr.bf16.mxu1 %v12588_v40 }
 0x212   : > { %7903 = vmatprep.subr.bf16.mxu0 %v12588_v40 }
 0x214   : > { %7521 = vmatpush1.bf16.msra.mxu1 %v12592_v55 }
 0x215   : > { %7905 = vmatpush1.bf16.msra.mxu0 %v12592_v55  ;;  %7523 = vmatprep.subr.bf16.mxu1 %v12596_v5 }
 0x216   : > { %7907 = vmatprep.subr.bf16.mxu0 %v12596_v5 }
 0x218   : > { %7525 = vmatpush1.bf16.msra.mxu1 %v12600_v35 }
 0x219   : > { %7909 = vmatpush1.bf16.msra.mxu0 %v12600_v35  ;;  %7527 = vmatprep.subr.bf16.mxu1 %v12601_v34 }
 0x21a   : > { %7911 = vmatprep.subr.bf16.mxu0 %v12601_v34 }
 0x21c   : > { %7529 = vmatpush1.bf16.msra.mxu1 %v12602_v50 }
 0x21d   : > { %7913 = vmatpush1.bf16.msra.mxu0 %v12602_v50  ;;  %7531 = vmatprep.subr.bf16.mxu1 %v12603_v44 }
 0x21e   : > { %7915 = vmatprep.subr.bf16.mxu0 %v12603_v44  ;;  %v1044_v4 = vpop.f32.mrb[0].mxu1 }
 0x21f   : > { %v1587_v59 = vpop.f32.mrb[0].mxu0  ;;  %v1046_v49 = vpop.f32.mrb[1].mxu1 }
 0x220   : > { %v10974_v25 = vadd.f32 %v1587_v59, %v1044_v4  ;;  %v1589_v16 = vpop.f32.mrb[1].mxu0  ;;  %7533 = vmatpush1.bf16.msra.mxu1 %v12604_v54  ;;  %v12679_v4 = vld [vmem:[#allocation96_spill] sm:$0xff]  ;;  %v12680_v59 = vand.u32 4294901760, %v10784_v51  ;;  %v12685_v51 = vld [vmem:[#allocation107_spill] sm:$0xff] }
 0x221   : > { %v10976_v8 = vadd.f32 %v1589_v16, %v1046_v49  ;;  %7917 = vmatpush1.bf16.msra.mxu0 %v12604_v54  ;;  %7535 = vmatprep.subr.bf16.mxu1 %v12605_v6  ;;  %v12678_v16 = vld [vmem:[#allocation85_spill] sm:$0xff]  ;;  %v12681_v49 = vand.u32 4294901760, %v10788_v37  ;;  %v12686_v37 = vld [vmem:[#allocation110_spill] sm:$0xff] }
 0x222   : > { %12676 = vst [vmem:[#allocation15_spill] sm:$0xff] %v10974_v25  ;;  %7919 = vmatprep.subr.bf16.mxu0 %v12605_v6  ;;  %v12683_v25 = vld [vmem:[#allocation105_spill] sm:$0xff] }
 0x223   : > { %12677 = vst [vmem:[#allocation90_spill] sm:$0xff] %v10976_v8  ;;  %v12682_v8 = vld [vmem:[#allocation98_spill] sm:$0xff] }
 0x224   : > { %7537 = vmatpush1.bf16.msra.mxu1 %v12606_v12 }
 0x225   : > { %7921 = vmatpush1.bf16.msra.mxu0 %v12606_v12  ;;  %7539 = vmatprep.subr.bf16.mxu1 %v12607_v15 }
 0x226   : > { %7923 = vmatprep.subr.bf16.mxu0 %v12607_v15 }
 0x228   : > { %7541 = vmatpush1.bf16.msra.mxu1 %v12608_v19 }
 0x229   : > { %7925 = vmatpush1.bf16.msra.mxu0 %v12608_v19  ;;  %7543 = vmatprep.subr.bf16.mxu1 %v12609_v46 }
 0x22a   : > { %7927 = vmatprep.subr.bf16.mxu0 %v12609_v46 }
 0x22c   : > { %7545 = vmatpush1.bf16.msra.mxu1 %v12610_v61 }
 0x22d   : > { %7929 = vmatpush1.bf16.msra.mxu0 %v12610_v61  ;;  %7547 = vmatprep.subr.bf16.mxu1 %v12611_v14 }
 0x22e   : > { %7931 = vmatprep.subr.bf16.mxu0 %v12611_v14 }
 0x230   : > { %7549 = vmatpush1.bf16.msra.mxu1 %v12612_v56 }
 0x231   : > { %7933 = vmatpush1.bf16.msra.mxu0 %v12612_v56  ;;  %7551 = vmatprep.subr.bf16.mxu1 %v12613_v36 }
 0x232   : > { %7935 = vmatprep.subr.bf16.mxu0 %v12613_v36 }
 0x234   : > { %7553 = vmatpush1.bf16.msra.mxu1 %v12616_v0 }
 0x235   : > { %7937 = vmatpush1.bf16.msra.mxu0 %v12616_v0  ;;  %7555 = vmatprep.subr.bf16.mxu1 %v12617_v24 }
 0x236   : > { %7939 = vmatprep.subr.bf16.mxu0 %v12617_v24 }
 0x238   : > { %7557 = vmatpush1.bf16.msra.mxu1 %v12618_v38 }
 0x239   : > { %7941 = vmatpush1.bf16.msra.mxu0 %v12618_v38  ;;  %7559 = vmatprep.subr.bf16.mxu1 %v12619_v21 }
 0x23a   : > { %7943 = vmatprep.subr.bf16.mxu0 %v12619_v21 }
 0x23c   : > { %7561 = vmatpush1.bf16.msra.mxu1 %v12620_v58 }
 0x23d   : > { %7945 = vmatpush1.bf16.msra.mxu0 %v12620_v58  ;;  %7563 = vmatprep.subr.bf16.mxu1 %v12621_v45 }
 0x23e   : > { %7947 = vmatprep.subr.bf16.mxu0 %v12621_v45 }
 0x240   : > { %7565 = vmatpush1.bf16.msra.mxu1 %v12622_v23 }
 0x241   : > { %7949 = vmatpush1.bf16.msra.mxu0 %v12622_v23  ;;  %7567 = vmatprep.subr.bf16.mxu1 %v12678_v16 }
 0x242   : > { %7951 = vmatprep.subr.bf16.mxu0 %v12678_v16 }
 0x244   : > { %7569 = vmatpush1.bf16.msra.mxu1 %v12624_v57 }
 0x245   : > { %7953 = vmatpush1.bf16.msra.mxu0 %v12624_v57  ;;  %7571 = vmatprep.subr.bf16.mxu1 %v12625_v62 }
 0x246   : > { %7955 = vmatprep.subr.bf16.mxu0 %v12625_v62 }
 0x248   : > { %7573 = vmatpush1.bf16.msra.mxu1 %v12626_v48 }
 0x249   : > { %7957 = vmatpush1.bf16.msra.mxu0 %v12626_v48  ;;  %7575 = vmatprep.subr.bf16.mxu1 %v12679_v4 }
 0x24a   : > { %7959 = vmatprep.subr.bf16.mxu0 %v12679_v4 }
 0x24b   : > { %2471 = vmatmul.mubr.f32.vlgmr.msra.gmra.mrb[2].mxu1 %v12680_v59  ;;  %v12687_v59 = vld [vmem:[#allocation115_spill] sm:$0xff] }
 0x24c   : > { %3759 = vmatmul.mubr.f32.vlgmr.msra.gmra.mrb[2].mxu0 %v12681_v49  ;;  %7577 = vmatpush1.bf16.msra.mxu1 %v12682_v8  ;;  %v12688_v49 = vld [vmem:[#allocation116_spill] sm:$0xff] }
 0x24d   : > { %7961 = vmatpush1.bf16.msra.mxu0 %v12682_v8  ;;  %7579 = vmatprep.subr.bf16.mxu1 %v12683_v25 }
 0x24e   : > { %7963 = vmatprep.subr.bf16.mxu0 %v12683_v25  ;;  %2734 = vmatprep.mubr.f32.mxu1 %v10692_v20  ;;  %v12689_v25 = vld [vmem:[#allocation117_spill] sm:$0xff] }
 0x24f   : > { %4022 = vmatprep.mubr.f32.mxu0 %v10694_v2 }
 0x250   : > { %7581 = vmatpush1.bf16.msra.mxu1 %v12684_v52 }
 0x251   : > { %7965 = vmatpush1.bf16.msra.mxu0 %v12684_v52  ;;  %7583 = vmatprep.subr.bf16.mxu1 %v12685_v51  ;;  %v12690_v52 = vld [vmem:[#allocation24_spill] sm:$0xff] }
 0x252   : > { %7967 = vmatprep.subr.bf16.mxu0 %v12685_v51  ;;  %v12691_v51 = vld [vmem:[#allocation119_spill] sm:$0xff] }
 0x254   : > { %7585 = vmatpush1.bf16.msra.mxu1 %v12686_v37 }
 0x255   : > { %7969 = vmatpush1.bf16.msra.mxu0 %v12686_v37  ;;  %7587 = vmatprep.subr.bf16.mxu1 %v12687_v59  ;;  %v12692_v37 = vld [vmem:[#allocation120_spill] sm:$0xff] }
 0x256   : > { %7971 = vmatprep.subr.bf16.mxu0 %v12687_v59  ;;  %v12693_v59 = vld [vmem:[#allocation122_spill] sm:$0xff] }
 0x258   : > { %7589 = vmatpush1.bf16.msra.mxu1 %v12688_v49 }
 0x259   : > { %7973 = vmatpush1.bf16.msra.mxu0 %v12688_v49  ;;  %7591 = vmatprep.subr.bf16.mxu1 %v12689_v25  ;;  %v12694_v49 = vld [vmem:[#allocation126_spill] sm:$0xff] }
 0x25a   : > { %7975 = vmatprep.subr.bf16.mxu0 %v12689_v25  ;;  %v12695_v25 = vld [vmem:[#allocation128_spill] sm:$0xff] }
 0x25c   : > { %7593 = vmatpush1.bf16.msra.mxu1 %v12690_v52 }
 0x25d   : > { %7977 = vmatpush1.bf16.msra.mxu0 %v12690_v52  ;;  %7595 = vmatprep.subr.bf16.mxu1 %v12691_v51  ;;  %v12696_v52 = vld [vmem:[#allocation39_spill] sm:$0xff] }
 0x25e   : > { %7979 = vmatprep.subr.bf16.mxu0 %v12691_v51  ;;  %v12697_v51 = vld [vmem:[#allocation41_spill] sm:$0xff] }
 0x260   : > { %7597 = vmatpush1.bf16.msra.mxu1 %v12692_v37 }
 0x261   : > { %7981 = vmatpush1.bf16.msra.mxu0 %v12692_v37  ;;  %7599 = vmatprep.subr.bf16.mxu1 %v12693_v59  ;;  %v12698_v37 = vld [vmem:[#allocation42_spill] sm:$0xff] }
 0x262   : > { %7983 = vmatprep.subr.bf16.mxu0 %v12693_v59  ;;  %v12699_v59 = vld [vmem:[#allocation131_spill] sm:$0xff] }
 0x264   : > { %7601 = vmatpush1.bf16.msra.mxu1 %v12694_v49 }
 0x265   : > { %7985 = vmatpush1.bf16.msra.mxu0 %v12694_v49  ;;  %7603 = vmatprep.subr.bf16.mxu1 %v12695_v25  ;;  %v12700_v49 = vld [vmem:[#allocation132_spill] sm:$0xff] }
 0x266   : > { %7987 = vmatprep.subr.bf16.mxu0 %v12695_v25  ;;  %v12701_v25 = vld [vmem:[#allocation134_spill] sm:$0xff] }
 0x268   : > { %7605 = vmatpush1.bf16.msra.mxu1 %v12696_v52 }
 0x269   : > { %7989 = vmatpush1.bf16.msra.mxu0 %v12696_v52  ;;  %7607 = vmatprep.subr.bf16.mxu1 %v12697_v51  ;;  %v12702_v52 = vld [vmem:[#allocation136_spill] sm:$0xff] }
 0x26a   : > { %7991 = vmatprep.subr.bf16.mxu0 %v12697_v51  ;;  %v12703_v51 = vld [vmem:[#allocation137_spill] sm:$0xff] }
 0x26c   : > { %7609 = vmatpush1.bf16.msra.mxu1 %v12698_v37 }
 0x26d   : > { %7993 = vmatpush1.bf16.msra.mxu0 %v12698_v37  ;;  %7611 = vmatprep.subr.bf16.mxu1 %v12699_v59  ;;  %v12704_v37 = vld [vmem:[#allocation61_spill] sm:$0xff] }
 0x26e   : > { %7995 = vmatprep.subr.bf16.mxu0 %v12699_v59  ;;  %v12705_v59 = vld [vmem:[#allocation66_spill] sm:$0xff] }
 0x270   : > { %7613 = vmatpush1.bf16.msra.mxu1 %v12700_v49 }
 0x271   : > { %7997 = vmatpush1.bf16.msra.mxu0 %v12700_v49  ;;  %7615 = vmatprep.subr.bf16.mxu1 %v12701_v25  ;;  %v12706_v49 = vld [vmem:[#allocation68_spill] sm:$0xff] }
 0x272   : > { %7999 = vmatprep.subr.bf16.mxu0 %v12701_v25  ;;  %v12707_v25 = vld [vmem:[#allocation69_spill] sm:$0xff] }
 0x274   : > { %7617 = vmatpush1.bf16.msra.mxu1 %v12702_v52 }
 0x275   : > { %8001 = vmatpush1.bf16.msra.mxu0 %v12702_v52  ;;  %7619 = vmatprep.subr.bf16.mxu1 %v12703_v51  ;;  %v12708_v52 = vld [vmem:[#allocation74_spill] sm:$0xff] }
 0x276   : > { %8003 = vmatprep.subr.bf16.mxu0 %v12703_v51  ;;  %v12709_v51 = vld [vmem:[#allocation59_spill] sm:$0xff] }
 0x278   : > { %7621 = vmatpush1.bf16.msra.mxu1 %v12704_v37 }
 0x279   : > { %8005 = vmatpush1.bf16.msra.mxu0 %v12704_v37  ;;  %7623 = vmatprep.subr.bf16.mxu1 %v12705_v59  ;;  %v12710_v37 = vld [vmem:[#allocation60_spill] sm:$0xff] }
 0x27a   : > { %8007 = vmatprep.subr.bf16.mxu0 %v12705_v59  ;;  %v12711_v59 = vld [vmem:[#allocation140_spill] sm:$0xff] }
 0x27c   : > { %7625 = vmatpush1.bf16.msra.mxu1 %v12706_v49 }
 0x27d   : > { %8009 = vmatpush1.bf16.msra.mxu0 %v12706_v49  ;;  %7627 = vmatprep.subr.bf16.mxu1 %v12707_v25  ;;  %v12712_v49 = vld [vmem:[#allocation142_spill] sm:$0xff] }
 0x27e   : > { %8011 = vmatprep.subr.bf16.mxu0 %v12707_v25 }
 0x280   : > { %7629 = vmatpush1.bf16.msra.mxu1 %v12708_v52 }
 0x281   : > { %8013 = vmatpush1.bf16.msra.mxu0 %v12708_v52  ;;  %7631 = vmatprep.subr.bf16.mxu1 %v12709_v51 }
 0x282   : > { %8015 = vmatprep.subr.bf16.mxu0 %v12709_v51 }
 0x284   : > { %7633 = vmatpush1.bf16.msra.mxu1 %v12710_v37 }
 0x285   : > { %8017 = vmatpush1.bf16.msra.mxu0 %v12710_v37  ;;  %7635 = vmatprep.subr.bf16.mxu1 %v12711_v59 }
 0x286   : > { %8019 = vmatprep.subr.bf16.mxu0 %v12711_v59 }
 0x288   : > { %7637 = vmatpush1.bf16.msra.mxu1 %v12712_v49 }
 0x289   : > { %8021 = vmatpush1.bf16.msra.mxu0 %v12712_v49  ;;  %7639 = vmatprep.subr.bf16.mxu1 %v12569_v28  ;;  %v12714_v49 = vld [vmem:[#allocation88_spill] sm:$0xff] }
 0x28a   : > { %8023 = vmatprep.subr.bf16.mxu0 %v12569_v28 }
 0x28b   : > { %2736 = vmatmul.mubr.f32.vlgmr.msra.gmra.mrb[2].mxu1 %v10776_v10 }
 0x28c   : > { %4024 = vmatmul.mubr.f32.vlgmr.msra.gmra.mrb[2].mxu0 %v10773_v18  ;;  %7641 = vmatpush1.bf16.msra.mxu1 %v12574_v31 }
 0x28d   : > { %8025 = vmatpush1.bf16.msra.mxu0 %v12574_v31  ;;  %7643 = vmatprep.subr.bf16.mxu1 %v12578_v30 }
 0x28e   : > { %8027 = vmatprep.subr.bf16.mxu0 %v12578_v30  ;;  %2871 = vmatprep.mubr.f32.mxu1 %v10692_v20 }
 0x28f   : > { %4159 = vmatprep.mubr.f32.mxu0 %v10694_v2  ;;  %v12713_v2 = vld [vmem:[#allocation89_spill] sm:$0xff] }
 0x290   : > { %7645 = vmatpush1.bf16.msra.mxu1 %v12584_v42  ;;  %v11138_v20 = vmul.f32 %v12713_v2, %v12713_v2  ;;  %v11142_v59 = vmul.f32 %v12714_v49, %v12713_v2 }
 0x291   : > { %8029 = vmatpush1.bf16.msra.mxu0 %v12584_v42  ;;  %7647 = vmatprep.subr.bf16.mxu1 %v12588_v40 }
 0x292   : > { %8031 = vmatprep.subr.bf16.mxu0 %v12588_v40  ;;  %v4169_v37 = vcombine.high %v11138_v20, %v11138_v20  ;;  %v5457_v51 = vcombine.high %v11142_v59, %v11142_v59 }
 0x294   : > { %7649 = vmatpush1.bf16.msra.mxu1 %v12592_v55  ;;  %v11156_v49 = vand.u32 4294901760, %v4169_v37  ;;  %v11158_v2 = vand.u32 4294901760, %v5457_v51 }
 0x295   : > { %8033 = vmatpush1.bf16.msra.mxu0 %v12592_v55  ;;  %7651 = vmatprep.subr.bf16.mxu1 %v12596_v5 }
 0x296   : > { %8035 = vmatprep.subr.bf16.mxu0 %v12596_v5  ;;  %v11165_v52 = vsub.f32 %v4169_v37, %v11156_v49  ;;  %v11168_v25 = vsub.f32 %v5457_v51, %v11158_v2 }
 0x298   : > { %7653 = vmatpush1.bf16.msra.mxu1 %v12600_v35  ;;  %v12193_v8 = vand.u32 4294901760, %v11165_v52  ;;  %v12192_v4 = vand.u32 4294901760, %v11168_v25 }
 0x299   : > { %8037 = vmatpush1.bf16.msra.mxu0 %v12600_v35  ;;  %7655 = vmatprep.subr.bf16.mxu1 %v12601_v34 }
 0x29a   : > { %8039 = vmatprep.subr.bf16.mxu0 %v12601_v34  ;;  %v4302_v51 = vsub.f32 %v11165_v52, %v12193_v8  ;;  %v5590_v37 = vsub.f32 %v11168_v25, %v12192_v4 }
 0x29c   : > { %7657 = vmatpush1.bf16.msra.mxu1 %v12602_v50  ;;  %v4303_v9 = vand.u32 4294901760, %v4302_v51  ;;  %v5591_v43 = vand.u32 4294901760, %v5590_v37 }
 0x29d   : > { %8041 = vmatpush1.bf16.msra.mxu0 %v12602_v50  ;;  %7659 = vmatprep.subr.bf16.mxu1 %v12603_v44 }
 0x29e   : > { %8043 = vmatprep.subr.bf16.mxu0 %v12603_v44 }
 0x2a0   : > { %7661 = vmatpush1.bf16.msra.mxu1 %v12604_v54 }
 0x2a1   : > { %8045 = vmatpush1.bf16.msra.mxu0 %v12604_v54  ;;  %7663 = vmatprep.subr.bf16.mxu1 %v12605_v6 }
 0x2a2   : > { %8047 = vmatprep.subr.bf16.mxu0 %v12605_v6 }
 0x2a4   : > { %7665 = vmatpush1.bf16.msra.mxu1 %v12606_v12 }
 0x2a5   : > { %8049 = vmatpush1.bf16.msra.mxu0 %v12606_v12  ;;  %7667 = vmatprep.subr.bf16.mxu1 %v12607_v15 }
 0x2a6   : > { %8051 = vmatprep.subr.bf16.mxu0 %v12607_v15 }
 0x2a8   : > { %7669 = vmatpush1.bf16.msra.mxu1 %v12608_v19 }
 0x2a9   : > { %8053 = vmatpush1.bf16.msra.mxu0 %v12608_v19  ;;  %7671 = vmatprep.subr.bf16.mxu1 %v12609_v46 }
 0x2aa   : > { %8055 = vmatprep.subr.bf16.mxu0 %v12609_v46 }
 0x2ac   : > { %7673 = vmatpush1.bf16.msra.mxu1 %v12610_v61 }
 0x2ad   : > { %8057 = vmatpush1.bf16.msra.mxu0 %v12610_v61  ;;  %7675 = vmatprep.subr.bf16.mxu1 %v12611_v14 }
 0x2ae   : > { %8059 = vmatprep.subr.bf16.mxu0 %v12611_v14 }
 0x2b0   : > { %7677 = vmatpush1.bf16.msra.mxu1 %v12612_v56 }
 0x2b1   : > { %8061 = vmatpush1.bf16.msra.mxu0 %v12612_v56  ;;  %7679 = vmatprep.subr.bf16.mxu1 %v12613_v36 }
 0x2b2   : > { %8063 = vmatprep.subr.bf16.mxu0 %v12613_v36 }
 0x2b4   : > { %7681 = vmatpush1.bf16.msra.mxu1 %v12616_v0 }
 0x2b5   : > { %8065 = vmatpush1.bf16.msra.mxu0 %v12616_v0  ;;  %7683 = vmatprep.subr.bf16.mxu1 %v12617_v24 }
 0x2b6   : > { %8067 = vmatprep.subr.bf16.mxu0 %v12617_v24 }
 0x2b8   : > { %7685 = vmatpush1.bf16.msra.mxu1 %v12618_v38 }
 0x2b9   : > { %8069 = vmatpush1.bf16.msra.mxu0 %v12618_v38  ;;  %7687 = vmatprep.subr.bf16.mxu1 %v12619_v21 }
 0x2ba   : > { %8071 = vmatprep.subr.bf16.mxu0 %v12619_v21 }
 0x2bc   : > { %7689 = vmatpush1.bf16.msra.mxu1 %v12620_v58 }
 0x2bd   : > { %8073 = vmatpush1.bf16.msra.mxu0 %v12620_v58  ;;  %7691 = vmatprep.subr.bf16.mxu1 %v12621_v45 }
 0x2be   : > { %8075 = vmatprep.subr.bf16.mxu0 %v12621_v45 }
 0x2c0   : > { %7693 = vmatpush1.bf16.msra.mxu1 %v12622_v23 }
 0x2c1   : > { %8077 = vmatpush1.bf16.msra.mxu0 %v12622_v23  ;;  %7695 = vmatprep.subr.bf16.mxu1 %v12678_v16 }
 0x2c2   : > { %8079 = vmatprep.subr.bf16.mxu0 %v12678_v16 }
 0x2c4   : > { %7697 = vmatpush1.bf16.msra.mxu1 %v12624_v57 }
 0x2c5   : > { %8081 = vmatpush1.bf16.msra.mxu0 %v12624_v57  ;;  %7699 = vmatprep.subr.bf16.mxu1 %v12625_v62 }
 0x2c6   : > { %8083 = vmatprep.subr.bf16.mxu0 %v12625_v62 }
 0x2c8   : > { %7701 = vmatpush1.bf16.msra.mxu1 %v12626_v48 }
 0x2c9   : > { %8085 = vmatpush1.bf16.msra.mxu0 %v12626_v48  ;;  %8087 = vmatprep.subr.bf16.mxu1 %v12569_v28 }
 0x2ca   : > { %8471 = vmatprep.subr.bf16.mxu0 %v12569_v28 }
 0x2cb   : > { %2873 = vmatmul.mubr.f32.vlgmr.msra.gmra.mrb[2].mxu1 %v10776_v10 }
 0x2cc   : > { %4161 = vmatmul.mubr.f32.vlgmr.msra.gmra.mrb[2].mxu0 %v10773_v18  ;;  %8089 = vmatpush1.bf16.msra.mxu1 %v12574_v31 }
 0x2cd   : > { %8473 = vmatpush1.bf16.msra.mxu0 %v12574_v31  ;;  %8091 = vmatprep.subr.bf16.mxu1 %v12578_v30 }
 0x2ce   : > { %8475 = vmatprep.subr.bf16.mxu0 %v12578_v30  ;;  %4304 = vmatprep.mubr.f32.mxu1 %v4303_v9  ;;  %v11237_v9 = vand.u32 4294901760, %v11138_v20 }
 0x2cf   : > { %5592 = vmatprep.mubr.f32.mxu0 %v5591_v43  ;;  %v11240_v43 = vand.u32 4294901760, %v11142_v59 }
 0x2d0   : > { %8093 = vmatpush1.bf16.msra.mxu1 %v12584_v42  ;;  %v11248_v18 = vsub.f32 %v11138_v20, %v11237_v9 }
 0x2d1   : > { %8477 = vmatpush1.bf16.msra.mxu0 %v12584_v42  ;;  %8095 = vmatprep.subr.bf16.mxu1 %v12588_v40  ;;  %v11252_v10 = vsub.f32 %v11142_v59, %v11240_v43 }
 0x2d2   : > { %8479 = vmatprep.subr.bf16.mxu0 %v12588_v40  ;;  %v12195_v51 = vand.u32 4294901760, %v11248_v18 }
 0x2d3   : > { %v12194_v37 = vand.u32 4294901760, %v11252_v10 }
 0x2d4   : > { %8097 = vmatpush1.bf16.msra.mxu1 %v12592_v55  ;;  %v4308_v59 = vsub.f32 %v11248_v18, %v12195_v51  ;;  %v12716_v51 = vld [vmem:[#allocation104_spill] sm:$0xff] }
 0x2d5   : > { %8481 = vmatpush1.bf16.msra.mxu0 %v12592_v55  ;;  %8099 = vmatprep.subr.bf16.mxu1 %v12596_v5  ;;  %v5596_v20 = vsub.f32 %v11252_v10, %v12194_v37  ;;  %v12715_v37 = vld [vmem:[#allocation102_spill] sm:$0xff] }
 0x2d6   : > { %8483 = vmatprep.subr.bf16.mxu0 %v12596_v5  ;;  %v4309_v4 = vand.u32 4294901760, %v4308_v59  ;;  %v12717_v59 = vld [vmem:[#allocation111_spill] sm:$0xff] }
 0x2d7   : > { %v5597_v8 = vand.u32 4294901760, %v5596_v20  ;;  %v12718_v20 = vld [vmem:[#allocation112_spill] sm:$0xff] }
 0x2d8   : > { %8101 = vmatpush1.bf16.msra.mxu1 %v12600_v35 }
 0x2d9   : > { %8485 = vmatpush1.bf16.msra.mxu0 %v12600_v35  ;;  %8103 = vmatprep.subr.bf16.mxu1 %v12601_v34 }
 0x2da   : > { %8487 = vmatprep.subr.bf16.mxu0 %v12601_v34 }
 0x2dc   : > { %8105 = vmatpush1.bf16.msra.mxu1 %v12602_v50 }
 0x2dd   : > { %8489 = vmatpush1.bf16.msra.mxu0 %v12602_v50  ;;  %8107 = vmatprep.subr.bf16.mxu1 %v12603_v44 }
 0x2de   : > { %8491 = vmatprep.subr.bf16.mxu0 %v12603_v44 }
 0x2e0   : > { %8109 = vmatpush1.bf16.msra.mxu1 %v12604_v54 }
 0x2e1   : > { %8493 = vmatpush1.bf16.msra.mxu0 %v12604_v54  ;;  %8111 = vmatprep.subr.bf16.mxu1 %v12605_v6 }
 0x2e2   : > { %8495 = vmatprep.subr.bf16.mxu0 %v12605_v6 }
 0x2e4   : > { %8113 = vmatpush1.bf16.msra.mxu1 %v12606_v12 }
 0x2e5   : > { %8497 = vmatpush1.bf16.msra.mxu0 %v12606_v12  ;;  %8115 = vmatprep.subr.bf16.mxu1 %v12607_v15 }
 0x2e6   : > { %8499 = vmatprep.subr.bf16.mxu0 %v12607_v15 }
 0x2e8   : > { %8117 = vmatpush1.bf16.msra.mxu1 %v12608_v19 }
 0x2e9   : > { %8501 = vmatpush1.bf16.msra.mxu0 %v12608_v19  ;;  %8119 = vmatprep.subr.bf16.mxu1 %v12609_v46 }
 0x2ea   : > { %8503 = vmatprep.subr.bf16.mxu0 %v12609_v46 }
 0x2ec   : > { %8121 = vmatpush1.bf16.msra.mxu1 %v12610_v61 }
 0x2ed   : > { %8505 = vmatpush1.bf16.msra.mxu0 %v12610_v61  ;;  %8123 = vmatprep.subr.bf16.mxu1 %v12611_v14 }
 0x2ee   : > { %8507 = vmatprep.subr.bf16.mxu0 %v12611_v14 }
 0x2f0   : > { %8125 = vmatpush1.bf16.msra.mxu1 %v12612_v56 }
 0x2f1   : > { %8509 = vmatpush1.bf16.msra.mxu0 %v12612_v56  ;;  %8127 = vmatprep.subr.bf16.mxu1 %v12613_v36 }
 0x2f2   : > { %8511 = vmatprep.subr.bf16.mxu0 %v12613_v36 }
 0x2f4   : > { %8129 = vmatpush1.bf16.msra.mxu1 %v12616_v0 }
 0x2f5   : > { %8513 = vmatpush1.bf16.msra.mxu0 %v12616_v0  ;;  %8131 = vmatprep.subr.bf16.mxu1 %v12617_v24 }
 0x2f6   : > { %8515 = vmatprep.subr.bf16.mxu0 %v12617_v24 }
 0x2f8   : > { %8133 = vmatpush1.bf16.msra.mxu1 %v12618_v38 }
 0x2f9   : > { %8517 = vmatpush1.bf16.msra.mxu0 %v12618_v38  ;;  %8135 = vmatprep.subr.bf16.mxu1 %v12619_v21 }
 0x2fa   : > { %8519 = vmatprep.subr.bf16.mxu0 %v12619_v21 }
 0x2fc   : > { %8137 = vmatpush1.bf16.msra.mxu1 %v12620_v58 }
 0x2fd   : > { %8521 = vmatpush1.bf16.msra.mxu0 %v12620_v58  ;;  %8139 = vmatprep.subr.bf16.mxu1 %v12621_v45 }
 0x2fe   : > { %8523 = vmatprep.subr.bf16.mxu0 %v12621_v45 }
 0x300   : > { %8141 = vmatpush1.bf16.msra.mxu1 %v12622_v23 }
 0x301   : > { %8525 = vmatpush1.bf16.msra.mxu0 %v12622_v23  ;;  %8143 = vmatprep.subr.bf16.mxu1 %v12678_v16 }
 0x302   : > { %8527 = vmatprep.subr.bf16.mxu0 %v12678_v16 }
 0x304   : > { %8145 = vmatpush1.bf16.msra.mxu1 %v12624_v57 }
 0x305   : > { %8529 = vmatpush1.bf16.msra.mxu0 %v12624_v57  ;;  %8147 = vmatprep.subr.bf16.mxu1 %v12625_v62 }
 0x306   : > { %8531 = vmatprep.subr.bf16.mxu0 %v12625_v62 }
 0x308   : > { %8149 = vmatpush1.bf16.msra.mxu1 %v12626_v48 }
 0x309   : > { %8533 = vmatpush1.bf16.msra.mxu0 %v12626_v48  ;;  %8151 = vmatprep.subr.bf16.mxu1 %v12628_v22 }
 0x30a   : > { %8535 = vmatprep.subr.bf16.mxu0 %v12628_v22  ;;  %v12720_v22 = vld [vmem:[#allocation20_spill] sm:$0xff] }
 0x30b   : > { %4310 = vmatmul.mubr.f32.vlgmr.msra.gmra.mrb[4].mxu1 %v4309_v4  ;;  %v12721_v4 = vld [vmem:[#allocation23_spill] sm:$0xff] }
 0x30c   : > { %5598 = vmatmul.mubr.f32.vlgmr.msra.gmra.mrb[4].mxu0 %v5597_v8  ;;  %8153 = vmatpush1.bf16.msra.mxu1 %v12715_v37  ;;  %v12719_v8 = vld [vmem:[#allocation114_spill] sm:$0xff] }
 0x30d   : > { %8537 = vmatpush1.bf16.msra.mxu0 %v12715_v37  ;;  %8155 = vmatprep.subr.bf16.mxu1 %v12716_v51  ;;  %v12723_v37 = vld [vmem:[#allocation118_spill] sm:$0xff] }
 0x30e   : > { %8539 = vmatprep.subr.bf16.mxu0 %v12716_v51  ;;  %4701 = vmatprep.mubr.f32.mxu1 %v11156_v49  ;;  %v12722_v51 = vld [vmem:[#allocation25_spill] sm:$0xff] }
 0x30f   : > { %5989 = vmatprep.mubr.f32.mxu0 %v11158_v2 }
 0x310   : > { %8157 = vmatpush1.bf16.msra.mxu1 %v12717_v59 }
 0x311   : > { %8541 = vmatpush1.bf16.msra.mxu0 %v12717_v59  ;;  %8159 = vmatprep.subr.bf16.mxu1 %v12718_v20  ;;  %v12724_v59 = vld [vmem:[#allocation121_spill] sm:$0xff] }
 0x312   : > { %8543 = vmatprep.subr.bf16.mxu0 %v12718_v20  ;;  %v12725_v20 = vld [vmem:[#allocation123_spill] sm:$0xff] }
 0x314   : > { %8161 = vmatpush1.bf16.msra.mxu1 %v12719_v8 }
 0x315   : > { %8545 = vmatpush1.bf16.msra.mxu0 %v12719_v8  ;;  %8163 = vmatprep.subr.bf16.mxu1 %v12720_v22  ;;  %v12726_v8 = vld [vmem:[#allocation127_spill] sm:$0xff] }
 0x316   : > { %8547 = vmatprep.subr.bf16.mxu0 %v12720_v22  ;;  %v12744_v22 = vld [vmem:[#allocation27_spill] sm:$0xff] }
 0x318   : > { %8165 = vmatpush1.bf16.msra.mxu1 %v12721_v4 }
 0x319   : > { %8549 = vmatpush1.bf16.msra.mxu0 %v12721_v4  ;;  %8167 = vmatprep.subr.bf16.mxu1 %v12722_v51  ;;  %v12745_v4 = vld [vmem:[#allocation28_spill] sm:$0xff] }
 0x31a   : > { %8551 = vmatprep.subr.bf16.mxu0 %v12722_v51  ;;  %v12746_v51 = vld [vmem:[#allocation29_spill] sm:$0xff] }
 0x31c   : > { %8169 = vmatpush1.bf16.msra.mxu1 %v12723_v37 }
 0x31d   : > { %8553 = vmatpush1.bf16.msra.mxu0 %v12723_v37  ;;  %8171 = vmatprep.subr.bf16.mxu1 %v12724_v59  ;;  %v12747_v37 = vld [vmem:[#allocation124_spill] sm:$0xff] }
 0x31e   : > { %8555 = vmatprep.subr.bf16.mxu0 %v12724_v59  ;;  %v12748_v59 = vld [vmem:[#allocation125_spill] sm:$0xff] }
 0x320   : > { %8173 = vmatpush1.bf16.msra.mxu1 %v12725_v20 }
 0x321   : > { %8557 = vmatpush1.bf16.msra.mxu0 %v12725_v20  ;;  %8175 = vmatprep.subr.bf16.mxu1 %v12726_v8  ;;  %v12749_v20 = vld [vmem:[#allocation30_spill] sm:$0xff] }
 0x322   : > { %8559 = vmatprep.subr.bf16.mxu0 %v12726_v8  ;;  %v12750_v8 = vld [vmem:[#allocation31_spill] sm:$0xff] }
 0x324   : > { %8177 = vmatpush1.bf16.msra.mxu1 %v12641_v13 }
 0x325   : > { %8561 = vmatpush1.bf16.msra.mxu0 %v12641_v13  ;;  %8179 = vmatprep.subr.bf16.mxu1 %v12642_v3  ;;  %v12738_v13 = vld [vmem:[#allocation76_spill] sm:$0xff] }
 0x326   : > { %8563 = vmatprep.subr.bf16.mxu0 %v12642_v3  ;;  %v12739_v3 = vld [vmem:[#allocation79_spill] sm:$0xff] }
 0x328   : > { %8181 = vmatpush1.bf16.msra.mxu1 %v12643_v1 }
 0x329   : > { %8565 = vmatpush1.bf16.msra.mxu0 %v12643_v1  ;;  %8183 = vmatprep.subr.bf16.mxu1 %v12644_v11  ;;  %v12740_v1 = vld [vmem:[#allocation80_spill] sm:$0xff] }
 0x32a   : > { %8567 = vmatprep.subr.bf16.mxu0 %v12644_v11  ;;  %v12741_v11 = vld [vmem:[#allocation113_spill] sm:$0xff] }
 0x32c   : > { %8185 = vmatpush1.bf16.msra.mxu1 %v12645_v47 }
 0x32d   : > { %8569 = vmatpush1.bf16.msra.mxu0 %v12645_v47  ;;  %8187 = vmatprep.subr.bf16.mxu1 %v12646_v41  ;;  %v12742_v47 = vld [vmem:[#allocation138_spill] sm:$0xff] }
 0x32e   : > { %8571 = vmatprep.subr.bf16.mxu0 %v12646_v41  ;;  %v12743_v41 = vld [vmem:[#allocation22_spill] sm:$0xff] }
 0x330   : > { %8189 = vmatpush1.bf16.msra.mxu1 %v10256_v29 }
 0x331   : > { %8573 = vmatpush1.bf16.msra.mxu0 %v10256_v29  ;;  %8191 = vmatprep.subr.bf16.mxu1 %v10314_v60  ;;  %v12727_v29 = vld [vmem:[#allocation139_spill] sm:$0xff] }
 0x332   : > { %8575 = vmatprep.subr.bf16.mxu0 %v10314_v60  ;;  %v12728_v60 = vld [vmem:[#allocation141_spill] sm:$0xff] }
 0x334   : > { %8193 = vmatpush1.bf16.msra.mxu1 %v10329_v53 }
 0x335   : > { %8577 = vmatpush1.bf16.msra.mxu0 %v10329_v53  ;;  %8195 = vmatprep.subr.bf16.mxu1 %v10345_v32  ;;  %v12729_v53 = vld [vmem:[#allocation71_spill] sm:$0xff] }
 0x336   : > { %8579 = vmatprep.subr.bf16.mxu0 %v10345_v32  ;;  %v12730_v32 = vld [vmem:[#allocation72_spill] sm:$0xff] }
 0x338   : > { %8197 = vmatpush1.bf16.msra.mxu1 %v10401_v63 }
 0x339   : > { %8581 = vmatpush1.bf16.msra.mxu0 %v10401_v63  ;;  %8199 = vmatprep.subr.bf16.mxu1 %v10410_v26  ;;  %v12732_v63 = vld [vmem:[#allocation78_spill] sm:$0xff] }
 0x33a   : > { %8583 = vmatprep.subr.bf16.mxu0 %v10410_v26  ;;  %v12733_v26 = vld [vmem:[#allocation13_spill] sm:$0xff] }
 0x33c   : > { %8201 = vmatpush1.bf16.msra.mxu1 %v10412_v27 }
 0x33d   : > { %8585 = vmatpush1.bf16.msra.mxu0 %v10412_v27  ;;  %8203 = vmatprep.subr.bf16.mxu1 %v10418_v17  ;;  %v12734_v27 = vld [vmem:[#allocation81_spill] sm:$0xff] }
 0x33e   : > { %8587 = vmatprep.subr.bf16.mxu0 %v10418_v17  ;;  %v12731_v17 = vld [vmem:[#allocation77_spill] sm:$0xff] }
 0x340   : > { %8205 = vmatpush1.bf16.msra.mxu1 %v10420_v7 }
 0x341   : > { %8589 = vmatpush1.bf16.msra.mxu0 %v10420_v7  ;;  %8207 = vmatprep.subr.bf16.mxu1 %v10548_v39  ;;  %v12735_v7 = vld [vmem:[#allocation82_spill] sm:$0xff] }
 0x342   : > { %8591 = vmatprep.subr.bf16.mxu0 %v10548_v39  ;;  %v12736_v39 = vld [vmem:[#allocation75_spill] sm:$0xff] }
 0x344   : > { %8209 = vmatpush1.bf16.msra.mxu1 %v10558_v33 }
 0x345   : > { %8593 = vmatpush1.bf16.msra.mxu0 %v10558_v33  ;;  %8211 = vmatprep.subr.bf16.mxu1 %v12727_v29  ;;  %v12737_v33 = vld [vmem:[#allocation14_spill] sm:$0xff] }
 0x346   : > { %8595 = vmatprep.subr.bf16.mxu0 %v12727_v29  ;;  %v12751_v29 = vld [vmem:[#allocation32_spill] sm:$0xff] }
 0x348   : > { %8213 = vmatpush1.bf16.msra.mxu1 %v12728_v60 }
 0x349   : > { %8597 = vmatpush1.bf16.msra.mxu0 %v12728_v60  ;;  %8215 = vmatprep.subr.bf16.mxu1 %v12729_v53  ;;  %v12752_v60 = vld [vmem:[#allocation33_spill] sm:$0xff] }
 0x34a   : > { %8599 = vmatprep.subr.bf16.mxu0 %v12729_v53  ;;  %v12753_v53 = vld [vmem:[#allocation37_spill] sm:$0xff] }
 0x34b   : > { %4703 = vmatmul.mubr.f32.vlgmr.msra.gmra.mrb[4].mxu1 %v11237_v9 }
 0x34c   : > { %5991 = vmatmul.mubr.f32.vlgmr.msra.gmra.mrb[4].mxu0 %v11240_v43  ;;  %8217 = vmatpush1.bf16.msra.mxu1 %v12730_v32 }
 0x34d   : > { %8601 = vmatpush1.bf16.msra.mxu0 %v12730_v32  ;;  %8219 = vmatprep.subr.bf16.mxu1 %v12731_v17  ;;  %v12754_v32 = vld [vmem:[#allocation46_spill] sm:$0xff] }
 0x34e   : > { %8603 = vmatprep.subr.bf16.mxu0 %v12731_v17  ;;  %4903 = vmatprep.mubr.f32.mxu1 %v11165_v52  ;;  %v12755_v17 = vld [vmem:[#allocation47_spill] sm:$0xff] }
 0x34f   : > { %6191 = vmatprep.mubr.f32.mxu0 %v11168_v25 }
 0x350   : > { %8221 = vmatpush1.bf16.msra.mxu1 %v12732_v63 }
 0x351   : > { %8605 = vmatpush1.bf16.msra.mxu0 %v12732_v63  ;;  %8223 = vmatprep.subr.bf16.mxu1 %v12733_v26  ;;  %v12756_v63 = vld [vmem:[#allocation49_spill] sm:$0xff] }
 0x352   : > { %8607 = vmatprep.subr.bf16.mxu0 %v12733_v26  ;;  %v12757_v26 = vld [vmem:[#allocation50_spill] sm:$0xff] }
 0x354   : > { %8225 = vmatpush1.bf16.msra.mxu1 %v12734_v27 }
 0x355   : > { %8609 = vmatpush1.bf16.msra.mxu0 %v12734_v27  ;;  %8227 = vmatprep.subr.bf16.mxu1 %v12735_v7  ;;  %v12758_v27 = vld [vmem:[#allocation51_spill] sm:$0xff] }
 0x356   : > { %8611 = vmatprep.subr.bf16.mxu0 %v12735_v7  ;;  %v12759_v7 = vld [vmem:[#allocation52_spill] sm:$0xff] }
 0x358   : > { %8229 = vmatpush1.bf16.msra.mxu1 %v12736_v39 }
 0x359   : > { %8613 = vmatpush1.bf16.msra.mxu0 %v12736_v39  ;;  %8231 = vmatprep.subr.bf16.mxu1 %v12737_v33  ;;  %v12760_v39 = vld [vmem:[#allocation135_spill] sm:$0xff] }
 0x35a   : > { %8615 = vmatprep.subr.bf16.mxu0 %v12737_v33  ;;  %v12761_v33 = vand.u32 4294901760, %v11165_v52  ;;  %v12763_v52 = vld [vmem:[#allocation15_spill] sm:$0xff] }
 0x35c   : > { %8233 = vmatpush1.bf16.msra.mxu1 %v12738_v13 }
 0x35d   : > { %8617 = vmatpush1.bf16.msra.mxu0 %v12738_v13  ;;  %8235 = vmatprep.subr.bf16.mxu1 %v12739_v3  ;;  %v12762_v13 = vand.u32 4294901760, %v11168_v25  ;;  %v6755_v25 = vmul.f32 2.0, %v12763_v52 }
 0x35e   : > { %8619 = vmatprep.subr.bf16.mxu0 %v12739_v3  ;;  %v11439_v3 = vmul.f32 %v12763_v52, %v12763_v52 }
 0x360   : > { %8237 = vmatpush1.bf16.msra.mxu1 %v12740_v1 }
 0x361   : > { %8621 = vmatpush1.bf16.msra.mxu0 %v12740_v1  ;;  %8239 = vmatprep.subr.bf16.mxu1 %v12741_v11  ;;  %v12764_v1 = vld [vmem:[#allocation90_spill] sm:$0xff] }
 0x362   : > { %8623 = vmatprep.subr.bf16.mxu0 %v12741_v11  ;;  %v6756_v11 = vmul.f32 2.0, %v12764_v1 }
 0x364   : > { %8241 = vmatpush1.bf16.msra.mxu1 %v12742_v47 }
 0x365   : > { %8625 = vmatpush1.bf16.msra.mxu0 %v12742_v47  ;;  %8243 = vmatprep.subr.bf16.mxu1 %v12743_v41 }
 0x366   : > { %8627 = vmatprep.subr.bf16.mxu0 %v12743_v41 }
 0x368   : > { %8245 = vmatpush1.bf16.msra.mxu1 %v12744_v22 }
 0x369   : > { %8629 = vmatpush1.bf16.msra.mxu0 %v12744_v22  ;;  %8247 = vmatprep.subr.bf16.mxu1 %v12745_v4  ;;  %v11448_v22 = vmul.f32 %v12764_v1, %v12764_v1 }
 0x36a   : > { %8631 = vmatprep.subr.bf16.mxu0 %v12745_v4 }
 0x36c   : > { %8249 = vmatpush1.bf16.msra.mxu1 %v12746_v51 }
 0x36d   : > { %8633 = vmatpush1.bf16.msra.mxu0 %v12746_v51  ;;  %8251 = vmatprep.subr.bf16.mxu1 %v12747_v37 }
 0x36e   : > { %8635 = vmatprep.subr.bf16.mxu0 %v12747_v37 }
 0x370   : > { %8253 = vmatpush1.bf16.msra.mxu1 %v12748_v59 }
 0x371   : > { %8637 = vmatpush1.bf16.msra.mxu0 %v12748_v59  ;;  %8255 = vmatprep.subr.bf16.mxu1 %v12749_v20 }
 0x372   : > { %8639 = vmatprep.subr.bf16.mxu0 %v12749_v20 }
 0x374   : > { %8257 = vmatpush1.bf16.msra.mxu1 %v12750_v8 }
 0x375   : > { %8641 = vmatpush1.bf16.msra.mxu0 %v12750_v8  ;;  %8259 = vmatprep.subr.bf16.mxu1 %v12751_v29 }
 0x376   : > { %8643 = vmatprep.subr.bf16.mxu0 %v12751_v29 }
 0x378   : > { %8261 = vmatpush1.bf16.msra.mxu1 %v12752_v60 }
 0x379   : > { %8645 = vmatpush1.bf16.msra.mxu0 %v12752_v60  ;;  %8263 = vmatprep.subr.bf16.mxu1 %v12753_v53 }
 0x37a   : > { %8647 = vmatprep.subr.bf16.mxu0 %v12753_v53 }
 0x37c   : > { %8265 = vmatpush1.bf16.msra.mxu1 %v12754_v32 }
 0x37d   : > { %8649 = vmatpush1.bf16.msra.mxu0 %v12754_v32  ;;  %8267 = vmatprep.subr.bf16.mxu1 %v12755_v17 }
 0x37e   : > { %8651 = vmatprep.subr.bf16.mxu0 %v12755_v17 }
 0x380   : > { %8269 = vmatpush1.bf16.msra.mxu1 %v12756_v63 }
 0x381   : > { %8653 = vmatpush1.bf16.msra.mxu0 %v12756_v63  ;;  %8271 = vmatprep.subr.bf16.mxu1 %v12757_v26 }
 0x382   : > { %8655 = vmatprep.subr.bf16.mxu0 %v12757_v26  ;;  %v12765_v26 = vld [vmem:[#allocation96_spill] sm:$0xff] }
 0x384   : > { %8273 = vmatpush1.bf16.msra.mxu1 %v12758_v27 }
 0x385   : > { %8657 = vmatpush1.bf16.msra.mxu0 %v12758_v27  ;;  %8275 = vmatprep.subr.bf16.mxu1 %v12759_v7  ;;  %v12766_v27 = vand.u32 4294901760, %v11248_v18 }
 0x386   : > { %8659 = vmatprep.subr.bf16.mxu0 %v12759_v7  ;;  %v12767_v7 = vand.u32 4294901760, %v11252_v10 }
 0x388   : > { %8277 = vmatpush1.bf16.msra.mxu1 %v12760_v39 }
 0x389   : > { %8661 = vmatpush1.bf16.msra.mxu0 %v12760_v39  ;;  %8279 = vmatprep.subr.bf16.mxu1 %v12569_v28  ;;  %v12768_v39 = vld [vmem:[#allocation98_spill] sm:$0xff] }
 0x38a   : > { %8663 = vmatprep.subr.bf16.mxu0 %v12569_v28 }
 0x38b   : > { %4906 = vmatmul.mubr.f32.vlgmr.msra.gmra.mrb[4].mxu1 %v11248_v18  ;;  %v12771_v18 = vld [vmem:[#allocation107_spill] sm:$0xff] }
 0x38c   : > { %6194 = vmatmul.mubr.f32.vlgmr.msra.gmra.mrb[4].mxu0 %v11252_v10  ;;  %8281 = vmatpush1.bf16.msra.mxu1 %v12574_v31  ;;  %v12772_v10 = vld [vmem:[#allocation110_spill] sm:$0xff] }
 0x38d   : > { %8665 = vmatpush1.bf16.msra.mxu0 %v12574_v31  ;;  %8283 = vmatprep.subr.bf16.mxu1 %v12578_v30 }
 0x38e   : > { %8667 = vmatprep.subr.bf16.mxu0 %v12578_v30  ;;  %5043 = vmatprep.mubr.f32.mxu1 %v12761_v33  ;;  %v12769_v33 = vld [vmem:[#allocation105_spill] sm:$0xff] }
 0x38f   : > { %6331 = vmatprep.mubr.f32.mxu0 %v12762_v13  ;;  %v12770_v13 = vld [vmem:[#allocation106_spill] sm:$0xff] }
 0x390   : > { %8285 = vmatpush1.bf16.msra.mxu1 %v12584_v42 }
 0x391   : > { %8669 = vmatpush1.bf16.msra.mxu0 %v12584_v42  ;;  %8287 = vmatprep.subr.bf16.mxu1 %v12588_v40 }
 0x392   : > { %8671 = vmatprep.subr.bf16.mxu0 %v12588_v40 }
 0x394   : > { %8289 = vmatpush1.bf16.msra.mxu1 %v12592_v55 }
 0x395   : > { %8673 = vmatpush1.bf16.msra.mxu0 %v12592_v55  ;;  %8291 = vmatprep.subr.bf16.mxu1 %v12596_v5 }
 0x396   : > { %8675 = vmatprep.subr.bf16.mxu0 %v12596_v5 }
 0x398   : > { %8293 = vmatpush1.bf16.msra.mxu1 %v12600_v35 }
 0x399   : > { %8677 = vmatpush1.bf16.msra.mxu0 %v12600_v35  ;;  %8295 = vmatprep.subr.bf16.mxu1 %v12601_v34 }
 0x39a   : > { %8679 = vmatprep.subr.bf16.mxu0 %v12601_v34 }
 0x39c   : > { %8297 = vmatpush1.bf16.msra.mxu1 %v12602_v50 }
 0x39d   : > { %8681 = vmatpush1.bf16.msra.mxu0 %v12602_v50  ;;  %8299 = vmatprep.subr.bf16.mxu1 %v12603_v44 }
 0x39e   : > { %8683 = vmatprep.subr.bf16.mxu0 %v12603_v44  ;;  %v2874_v47 = vpop.f32.mrb[2].mxu1 }
 0x39f   : > { %v11444_v41 = vpop.f32.mrb[2].mxu0  ;;  %v11450_v4 = vmul.f32 %v6755_v25, %v2874_v47  ;;  %v2876_v37 = vpop.f32.mrb[3].mxu1  ;;  %v11456_v20 = vmul.f32 %v2874_v47, %v2874_v47  ;;  %v11459_v8 = vmul.f32 %v12763_v52, %v2874_v47  ;;  %v12773_v52 = vld [vmem:[#allocation115_spill] sm:$0xff]  ;;  %v12774_v25 = vld [vmem:[#allocation116_spill] sm:$0xff] }
 0x3a0   : > { %v6745_v51 = vsub.f32 %v11444_v41, %v11439_v3  ;;  %v11454_v59 = vpop.f32.mrb[3].mxu0  ;;  %v11461_v29 = vmul.f32 %v6756_v11, %v2876_v37  ;;  %8301 = vmatpush1.bf16.msra.mxu1 %v12604_v54  ;;  %v11467_v53 = vmul.f32 %v2876_v37, %v2876_v37  ;;  %v11476_v17 = vmul.f32 %v12764_v1, %v2876_v37  ;;  %v12775_v1 = vld [vmem:[#allocation117_spill] sm:$0xff]  ;;  %v12776_v11 = vld [vmem:[#allocation24_spill] sm:$0xff]  ;;  %v12777_v47 = vld [vmem:[#allocation119_spill] sm:$0xff] }
 0x3a1   : > { %v6746_v60 = vsub.f32 %v11454_v59, %v11448_v22  ;;  %8685 = vmatpush1.bf16.msra.mxu0 %v12604_v54  ;;  %8303 = vmatprep.subr.bf16.mxu1 %v12605_v6  ;;  %v11473_v32 = vadd.f32 %v11456_v20, %v11439_v3  ;;  %v12778_v37 = vld [vmem:[#allocation120_spill] sm:$0xff] }
 0x3a2   : > { %8687 = vmatprep.subr.bf16.mxu0 %v12605_v6  ;;  %v11480_v63 = vadd.f32 %v11467_v53, %v11448_v22 }
 0x3a4   : > { %8305 = vmatpush1.bf16.msra.mxu1 %v12606_v12 }
 0x3a5   : > { %8689 = vmatpush1.bf16.msra.mxu0 %v12606_v12  ;;  %8307 = vmatprep.subr.bf16.mxu1 %v12607_v15 }
 0x3a6   : > { %8691 = vmatprep.subr.bf16.mxu0 %v12607_v15 }
 0x3a8   : > { %8309 = vmatpush1.bf16.msra.mxu1 %v12608_v19 }
 0x3a9   : > { %8693 = vmatpush1.bf16.msra.mxu0 %v12608_v19  ;;  %8311 = vmatprep.subr.bf16.mxu1 %v12609_v46 }
 0x3aa   : > { %8695 = vmatprep.subr.bf16.mxu0 %v12609_v46 }
 0x3ac   : > { %8313 = vmatpush1.bf16.msra.mxu1 %v12610_v61 }
 0x3ad   : > { %8697 = vmatpush1.bf16.msra.mxu0 %v12610_v61  ;;  %8315 = vmatprep.subr.bf16.mxu1 %v12611_v14 }
 0x3ae   : > { %8699 = vmatprep.subr.bf16.mxu0 %v12611_v14 }
 0x3b0   : > { %8317 = vmatpush1.bf16.msra.mxu1 %v12612_v56 }
 0x3b1   : > { %8701 = vmatpush1.bf16.msra.mxu0 %v12612_v56  ;;  %8319 = vmatprep.subr.bf16.mxu1 %v12613_v36 }
 0x3b2   : > { %8703 = vmatprep.subr.bf16.mxu0 %v12613_v36 }
 0x3b4   : > { %8321 = vmatpush1.bf16.msra.mxu1 %v12616_v0 }
 0x3b5   : > { %8705 = vmatpush1.bf16.msra.mxu0 %v12616_v0  ;;  %8323 = vmatprep.subr.bf16.mxu1 %v12617_v24 }
 0x3b6   : > { %8707 = vmatprep.subr.bf16.mxu0 %v12617_v24 }
 0x3b8   : > { %8325 = vmatpush1.bf16.msra.mxu1 %v12618_v38 }
 0x3b9   : > { %8709 = vmatpush1.bf16.msra.mxu0 %v12618_v38  ;;  %8327 = vmatprep.subr.bf16.mxu1 %v12619_v21 }
 0x3ba   : > { %8711 = vmatprep.subr.bf16.mxu0 %v12619_v21 }
 0x3bc   : > { %8329 = vmatpush1.bf16.msra.mxu1 %v12620_v58 }
 0x3bd   : > { %8713 = vmatpush1.bf16.msra.mxu0 %v12620_v58  ;;  %8331 = vmatprep.subr.bf16.mxu1 %v12621_v45 }
 0x3be   : > { %8715 = vmatprep.subr.bf16.mxu0 %v12621_v45 }
 0x3c0   : > { %8333 = vmatpush1.bf16.msra.mxu1 %v12622_v23 }
 0x3c1   : > { %8717 = vmatpush1.bf16.msra.mxu0 %v12622_v23  ;;  %8335 = vmatprep.subr.bf16.mxu1 %v12678_v16 }
 0x3c2   : > { %8719 = vmatprep.subr.bf16.mxu0 %v12678_v16 }
 0x3c4   : > { %8337 = vmatpush1.bf16.msra.mxu1 %v12624_v57 }
 0x3c5   : > { %8721 = vmatpush1.bf16.msra.mxu0 %v12624_v57  ;;  %8339 = vmatprep.subr.bf16.mxu1 %v12625_v62 }
 0x3c6   : > { %8723 = vmatprep.subr.bf16.mxu0 %v12625_v62 }
 0x3c8   : > { %8341 = vmatpush1.bf16.msra.mxu1 %v12626_v48 }
 0x3c9   : > { %8725 = vmatpush1.bf16.msra.mxu0 %v12626_v48  ;;  %8343 = vmatprep.subr.bf16.mxu1 %v12765_v26 }
 0x3ca   : > { %8727 = vmatprep.subr.bf16.mxu0 %v12765_v26  ;;  %v12779_v26 = vld [vmem:[#allocation122_spill] sm:$0xff] }
 0x3cb   : > { %5047 = vmatmul.mubr.f32.vlgmr.msra.gmra.mrb[4].mxu1 %v12766_v27  ;;  %v12780_v27 = vld [vmem:[#allocation126_spill] sm:$0xff] }
 0x3cc   : > { %6335 = vmatmul.mubr.f32.vlgmr.msra.gmra.mrb[4].mxu0 %v12767_v7  ;;  %8345 = vmatpush1.bf16.msra.mxu1 %v12768_v39  ;;  %v12781_v7 = vld [vmem:[#allocation128_spill] sm:$0xff] }
 0x3cd   : > { %8729 = vmatpush1.bf16.msra.mxu0 %v12768_v39  ;;  %8347 = vmatprep.subr.bf16.mxu1 %v12769_v33  ;;  %v12782_v39 = vld [vmem:[#allocation39_spill] sm:$0xff] }
 0x3ce   : > { %8731 = vmatprep.subr.bf16.mxu0 %v12769_v33  ;;  %5310 = vmatprep.mubr.f32.mxu1 %v11156_v49  ;;  %v12783_v33 = vld [vmem:[#allocation41_spill] sm:$0xff] }
 0x3cf   : > { %6598 = vmatprep.mubr.f32.mxu0 %v11158_v2 }
 0x3d0   : > { %8349 = vmatpush1.bf16.msra.mxu1 %v12770_v13 }
 0x3d1   : > { %8733 = vmatpush1.bf16.msra.mxu0 %v12770_v13  ;;  %8351 = vmatprep.subr.bf16.mxu1 %v12771_v18  ;;  %v12784_v13 = vld [vmem:[#allocation42_spill] sm:$0xff] }
 0x3d2   : > { %8735 = vmatprep.subr.bf16.mxu0 %v12771_v18  ;;  %v12785_v18 = vld [vmem:[#allocation131_spill] sm:$0xff] }
 0x3d4   : > { %8353 = vmatpush1.bf16.msra.mxu1 %v12772_v10 }
 0x3d5   : > { %8737 = vmatpush1.bf16.msra.mxu0 %v12772_v10  ;;  %8355 = vmatprep.subr.bf16.mxu1 %v12773_v52  ;;  %v12786_v10 = vld [vmem:[#allocation132_spill] sm:$0xff] }
 0x3d6   : > { %8739 = vmatprep.subr.bf16.mxu0 %v12773_v52  ;;  %v12787_v52 = vld [vmem:[#allocation134_spill] sm:$0xff] }
 0x3d8   : > { %8357 = vmatpush1.bf16.msra.mxu1 %v12774_v25 }
 0x3d9   : > { %8741 = vmatpush1.bf16.msra.mxu0 %v12774_v25  ;;  %8359 = vmatprep.subr.bf16.mxu1 %v12775_v1  ;;  %v12788_v25 = vld [vmem:[#allocation136_spill] sm:$0xff] }
 0x3da   : > { %8743 = vmatprep.subr.bf16.mxu0 %v12775_v1  ;;  %v12789_v1 = vld [vmem:[#allocation137_spill] sm:$0xff] }
 0x3dc   : > { %8361 = vmatpush1.bf16.msra.mxu1 %v12776_v11 }
 0x3dd   : > { %8745 = vmatpush1.bf16.msra.mxu0 %v12776_v11  ;;  %8363 = vmatprep.subr.bf16.mxu1 %v12777_v47  ;;  %v12790_v11 = vld [vmem:[#allocation61_spill] sm:$0xff] }
 0x3de   : > { %8747 = vmatprep.subr.bf16.mxu0 %v12777_v47  ;;  %v12791_v47 = vld [vmem:[#allocation66_spill] sm:$0xff] }
 0x3e0   : > { %8365 = vmatpush1.bf16.msra.mxu1 %v12778_v37 }
 0x3e1   : > { %8749 = vmatpush1.bf16.msra.mxu0 %v12778_v37  ;;  %8367 = vmatprep.subr.bf16.mxu1 %v12779_v26  ;;  %v12792_v37 = vld [vmem:[#allocation68_spill] sm:$0xff] }
 0x3e2   : > { %8751 = vmatprep.subr.bf16.mxu0 %v12779_v26  ;;  %v12793_v26 = vld [vmem:[#allocation69_spill] sm:$0xff] }
 0x3e4   : > { %8369 = vmatpush1.bf16.msra.mxu1 %v12780_v27 }
 0x3e5   : > { %8753 = vmatpush1.bf16.msra.mxu0 %v12780_v27  ;;  %8371 = vmatprep.subr.bf16.mxu1 %v12781_v7  ;;  %v12794_v27 = vld [vmem:[#allocation74_spill] sm:$0xff] }
 0x3e6   : > { %8755 = vmatprep.subr.bf16.mxu0 %v12781_v7  ;;  %v12795_v7 = vld [vmem:[#allocation59_spill] sm:$0xff] }
 0x3e8   : > { %8373 = vmatpush1.bf16.msra.mxu1 %v12782_v39 }
 0x3e9   : > { %8757 = vmatpush1.bf16.msra.mxu0 %v12782_v39  ;;  %8375 = vmatprep.subr.bf16.mxu1 %v12783_v33  ;;  %v12796_v39 = vld [vmem:[#allocation60_spill] sm:$0xff] }
 0x3ea   : > { %8759 = vmatprep.subr.bf16.mxu0 %v12783_v33  ;;  %v12797_v33 = vld [vmem:[#allocation140_spill] sm:$0xff] }
 0x3ec   : > { %8377 = vmatpush1.bf16.msra.mxu1 %v12784_v13 }
 0x3ed   : > { %8761 = vmatpush1.bf16.msra.mxu0 %v12784_v13  ;;  %8379 = vmatprep.subr.bf16.mxu1 %v12785_v18  ;;  %v12798_v13 = vld [vmem:[#allocation142_spill] sm:$0xff] }
 0x3ee   : > { %8763 = vmatprep.subr.bf16.mxu0 %v12785_v18 }
 0x3f0   : > { %8381 = vmatpush1.bf16.msra.mxu1 %v12786_v10 }
 0x3f1   : > { %8765 = vmatpush1.bf16.msra.mxu0 %v12786_v10  ;;  %8383 = vmatprep.subr.bf16.mxu1 %v12787_v52 }
 0x3f2   : > { %8767 = vmatprep.subr.bf16.mxu0 %v12787_v52 }
 0x3f4   : > { %8385 = vmatpush1.bf16.msra.mxu1 %v12788_v25 }
 0x3f5   : > { %8769 = vmatpush1.bf16.msra.mxu0 %v12788_v25  ;;  %8387 = vmatprep.subr.bf16.mxu1 %v12789_v1 }
 0x3f6   : > { %8771 = vmatprep.subr.bf16.mxu0 %v12789_v1 }
 0x3f8   : > { %8389 = vmatpush1.bf16.msra.mxu1 %v12790_v11 }
 0x3f9   : > { %8773 = vmatpush1.bf16.msra.mxu0 %v12790_v11  ;;  %8391 = vmatprep.subr.bf16.mxu1 %v12791_v47 }
 0x3fa   : > { %8775 = vmatprep.subr.bf16.mxu0 %v12791_v47 }
 0x3fc   : > { %8393 = vmatpush1.bf16.msra.mxu1 %v12792_v37 }
 0x3fd   : > { %8777 = vmatpush1.bf16.msra.mxu0 %v12792_v37  ;;  %8395 = vmatprep.subr.bf16.mxu1 %v12793_v26 }
 0x3fe   : > { %8779 = vmatprep.subr.bf16.mxu0 %v12793_v26 }
 0x400   : > { %8397 = vmatpush1.bf16.msra.mxu1 %v12794_v27 }
 0x401   : > { %8781 = vmatpush1.bf16.msra.mxu0 %v12794_v27  ;;  %8399 = vmatprep.subr.bf16.mxu1 %v12795_v7 }
 0x402   : > { %8783 = vmatprep.subr.bf16.mxu0 %v12795_v7 }
 0x404   : > { %8401 = vmatpush1.bf16.msra.mxu1 %v12796_v39 }
 0x405   : > { %8785 = vmatpush1.bf16.msra.mxu0 %v12796_v39  ;;  %8403 = vmatprep.subr.bf16.mxu1 %v12797_v33 }
 0x406   : > { %8787 = vmatprep.subr.bf16.mxu0 %v12797_v33 }
 0x408   : > { %8405 = vmatpush1.bf16.msra.mxu1 %v12798_v13 }
 0x409   : > { %8789 = vmatpush1.bf16.msra.mxu0 %v12798_v13  ;;  %8407 = vmatprep.subr.bf16.mxu1 %v12569_v28 }
 0x40a   : > { %8791 = vmatprep.subr.bf16.mxu0 %v12569_v28 }
 0x40b   : > { %5312 = vmatmul.mubr.f32.vlgmr.msra.gmra.mrb[4].mxu1 %v11237_v9 }
 0x40c   : > { %6600 = vmatmul.mubr.f32.vlgmr.msra.gmra.mrb[4].mxu0 %v11240_v43  ;;  %8409 = vmatpush1.bf16.msra.mxu1 %v12574_v31 }
 0x40d   : > { %8793 = vmatpush1.bf16.msra.mxu0 %v12574_v31  ;;  %8411 = vmatprep.subr.bf16.mxu1 %v12578_v30  ;;  %v6770_v31 = vadd.f32 0.0001, %v11480_v63 }
 0x40e   : > { %8795 = vmatprep.subr.bf16.mxu0 %v12578_v30  ;;  %5447 = vmatprep.mubr.f32.mxu1 %v11156_v49 }
 0x40f   : > { %6735 = vmatprep.mubr.f32.mxu0 %v11158_v2 }
 0x410   : > { %8413 = vmatpush1.bf16.msra.mxu1 %v12584_v42 }
 0x411   : > { %8797 = vmatpush1.bf16.msra.mxu0 %v12584_v42  ;;  %8415 = vmatprep.subr.bf16.mxu1 %v12588_v40 }
 0x412   : > { %8799 = vmatprep.subr.bf16.mxu0 %v12588_v40 }
 0x414   : > { %8417 = vmatpush1.bf16.msra.mxu1 %v12592_v55 }
 0x415   : > { %8801 = vmatpush1.bf16.msra.mxu0 %v12592_v55  ;;  %8419 = vmatprep.subr.bf16.mxu1 %v12596_v5 }
 0x416   : > { %8803 = vmatprep.subr.bf16.mxu0 %v12596_v5 }
 0x418   : > { %8421 = vmatpush1.bf16.msra.mxu1 %v12600_v35 }
 0x419   : > { %8805 = vmatpush1.bf16.msra.mxu0 %v12600_v35  ;;  %8423 = vmatprep.subr.bf16.mxu1 %v12601_v34 }
 0x41a   : > { %8807 = vmatprep.subr.bf16.mxu0 %v12601_v34 }
 0x41c   : > { %8425 = vmatpush1.bf16.msra.mxu1 %v12602_v50 }
 0x41d   : > { %8809 = vmatpush1.bf16.msra.mxu0 %v12602_v50  ;;  %8427 = vmatprep.subr.bf16.mxu1 %v12603_v44 }
 0x41e   : > { %8811 = vmatprep.subr.bf16.mxu0 %v12603_v44 }
 0x420   : > { %8429 = vmatpush1.bf16.msra.mxu1 %v12604_v54 }
 0x421   : > { %8813 = vmatpush1.bf16.msra.mxu0 %v12604_v54  ;;  %8431 = vmatprep.subr.bf16.mxu1 %v12605_v6 }
 0x422   : > { %8815 = vmatprep.subr.bf16.mxu0 %v12605_v6 }
 0x424   : > { %8433 = vmatpush1.bf16.msra.mxu1 %v12606_v12 }
 0x425   : > { %8817 = vmatpush1.bf16.msra.mxu0 %v12606_v12  ;;  %8435 = vmatprep.subr.bf16.mxu1 %v12607_v15 }
 0x426   : > { %8819 = vmatprep.subr.bf16.mxu0 %v12607_v15 }
 0x428   : > { %8437 = vmatpush1.bf16.msra.mxu1 %v12608_v19 }
 0x429   : > { %8821 = vmatpush1.bf16.msra.mxu0 %v12608_v19  ;;  %8439 = vmatprep.subr.bf16.mxu1 %v12609_v46 }
 0x42a   : > { %8823 = vmatprep.subr.bf16.mxu0 %v12609_v46 }
 0x42c   : > { %8441 = vmatpush1.bf16.msra.mxu1 %v12610_v61 }
 0x42d   : > { %8825 = vmatpush1.bf16.msra.mxu0 %v12610_v61  ;;  %8443 = vmatprep.subr.bf16.mxu1 %v12611_v14 }
 0x42e   : > { %8827 = vmatprep.subr.bf16.mxu0 %v12611_v14 }
 0x430   : > { %8445 = vmatpush1.bf16.msra.mxu1 %v12612_v56 }
 0x431   : > { %8829 = vmatpush1.bf16.msra.mxu0 %v12612_v56  ;;  %8447 = vmatprep.subr.bf16.mxu1 %v12613_v36 }
 0x432   : > { %8831 = vmatprep.subr.bf16.mxu0 %v12613_v36 }
 0x434   : > { %8449 = vmatpush1.bf16.msra.mxu1 %v12616_v0 }
 0x435   : > { %8833 = vmatpush1.bf16.msra.mxu0 %v12616_v0  ;;  %8451 = vmatprep.subr.bf16.mxu1 %v12617_v24  ;;  %v6760_v0 = vadd.f32 0.0001, %v11461_v29 }
 0x436   : > { %8835 = vmatprep.subr.bf16.mxu0 %v12617_v24 }
 0x438   : > { %8453 = vmatpush1.bf16.msra.mxu1 %v12618_v38 }
 0x439   : > { %8837 = vmatpush1.bf16.msra.mxu0 %v12618_v38  ;;  %8455 = vmatprep.subr.bf16.mxu1 %v12619_v21  ;;  %v6759_v38 = vadd.f32 0.0001, %v11450_v4 }
 0x43a   : > { %8839 = vmatprep.subr.bf16.mxu0 %v12619_v21 }
 0x43c   : > { %8457 = vmatpush1.bf16.msra.mxu1 %v12620_v58 }
 0x43d   : > { %8841 = vmatpush1.bf16.msra.mxu0 %v12620_v58  ;;  %8459 = vmatprep.subr.bf16.mxu1 %v12621_v45 }
 0x43e   : > { %8843 = vmatprep.subr.bf16.mxu0 %v12621_v45 }
 0x440   : > { %8461 = vmatpush1.bf16.msra.mxu1 %v12622_v23 }
 0x441   : > { %8845 = vmatpush1.bf16.msra.mxu0 %v12622_v23  ;;  %8463 = vmatprep.subr.bf16.mxu1 %v12678_v16  ;;  %v6769_v23 = vadd.f32 0.0001, %v11473_v32 }
 0x442   : > { %8847 = vmatprep.subr.bf16.mxu0 %v12678_v16 }
 0x444   : > { %8465 = vmatpush1.bf16.msra.mxu1 %v12624_v57 }
 0x445   : > { %8849 = vmatpush1.bf16.msra.mxu0 %v12624_v57  ;;  %8467 = vmatprep.subr.bf16.mxu1 %v12625_v62 }
 0x446   : > { %8851 = vmatprep.subr.bf16.mxu0 %v12625_v62 }
 0x448   : > { %8469 = vmatpush1.bf16.msra.mxu1 %v12626_v48 }
 0x449   : > { %8853 = vmatpush1.bf16.msra.mxu0 %v12626_v48 }
 0x44b   : > { %5449 = vmatmul.mubr.f32.vlgmr.msra.gmra.mrb[4].mxu1 %v11237_v9 }
 0x44c   : > { %6737 = vmatmul.mubr.f32.vlgmr.msra.gmra.mrb[4].mxu0 %v11240_v43 }
 0x51e   : > { %v5450_v61 = vpop.f32.mrb[4].mxu1 }
 0x51f   : > { %v6738_v46 = vpop.f32.mrb[4].mxu0  ;;  %v6749_v19 = vsub.f32 %v5450_v61, %v11456_v20  ;;  %v5452_v12 = vpop.f32.mrb[5].mxu1 }
 0x520   : > { %v6753_v15 = vsub.f32 %v6738_v46, %v11459_v8  ;;  %v6740_v45 = vpop.f32.mrb[5].mxu0  ;;  %v6750_v21 = vsub.f32 %v5452_v12, %v11467_v53 }
 0x521   : > { %v6754_v14 = vsub.f32 %v6740_v45, %v11476_v17  ;;  %v6771_v56 = vadd.f32 %v6749_v19, %v6745_v51 }
 0x522   : > { %v6761_v36 = vmul.f32 2.0, %v6753_v15  ;;  %v6772_v24 = vadd.f32 %v6750_v21, %v6746_v60 }
 0x523   : > { %v6762_v58 = vmul.f32 2.0, %v6754_v14  ;;  %v6773_v48 = vadd.f32 0.0009, %v6771_v56 }
 0x524   : > { %v6763_v28 = vadd.f32 0.0009, %v6761_v36  ;;  %v6774_v30 = vadd.f32 0.0009, %v6772_v24 }
 0x525   : > { %v6764_v42 = vadd.f32 0.0009, %v6762_v58  ;;  %v6775_v57 = vmul.f32 %v6773_v48, %v6769_v23 }
 0x526   : > { %v6765_v40 = vmul.f32 %v6763_v28, %v6759_v38  ;;  %v6776_v55 = vmul.f32 %v6774_v30, %v6770_v31 }
 0x527   : > { %v6766_v5 = vmul.f32 %v6764_v42, %v6760_v0  ;;  %8970 = vrcp.f32 %v6775_v57 }
 0x528   : > { %8972 = vrcp.f32 %v6776_v55 }
 0x531   : > { %v8971_v35 = vpop.eup %8970 }
 0x532   : > { %v8973_v34 = vpop.eup %8972  ;;  %v6778_v50 = vmul.f32 %v8971_v35, %v6765_v40 }
 0x533   : > { %v6780_v44 = vmul.f32 %v8973_v34, %v6766_v5 }
 0x534   : > { %v6781_v54 = vsub.f32 1.0, %v6778_v50 }
 0x535   : > { %v6782_v6 = vsub.f32 1.0, %v6780_v44 }
 0x536   : > { %v6783_v62 = vmul.f32 0.5, %v6781_v54 }
 0x537   : > { %v6784_v16 = vmul.f32 0.5, %v6782_v6 }
 0x538   : > { %v6785_v49 = vmax.f32 %v6783_v62, 0.0 }
 0x539   : > { %v6786_v2 = vmax.f32 %v6784_v16, 0.0 }
 0x53a   : > { %v6787_v9 = vmin.f32 %v6785_v49, 1.0 }
 0x53b   : > { %v6788_v43 = vmin.f32 %v6786_v2, 1.0 }
 0x53d   : > { %v6791_v3 = vcombine.low %v6787_v9, %v6788_v43 }
 0x53f   : > { %6793 = vst [vmem:[%s238_s11] sm:$0xff] %v6791_v3 }
 0x540   : > { %9076 = shalt.err (!%p9073_p1)
}
 0x541   : > { %s9077_s8 = scalar_lea.hbm %s11679_s5, 128  ;;  %s9081_s30 = scalar_lea.hbm %s11726_s3, 256 }
 0x542   : > { %p9078_p6 = scmp.ne.s32.totalorder %s11679_s5, %s9077_s8  ;;  %p9082_p12 = scmp.lt.u32.totalorder %s11679_s5, %s11726_s3 }
 0x543   : > { %p9083_p11 = scmp.lt.u32.totalorder %s9081_s30, %s9077_s8  ;;  %p9085_p10 = scmp.lt.u32.totalorder %s9077_s8, %s11679_s5 }
 0x544   : > { %p9079_p8 = pnand %p9078_p6, %p12799_p13 }
 0x545   : > { %p9084_p0 = por %p9083_p11, %p9082_p12 }
 0x546   : > { %p9080_p4 = pneg %p9079_p8 }
 0x547   : > { %p9086_p3 = por %p9085_p10, %p9084_p0 }
 0x549   : > { %p9087_p7 = pnand %p9086_p3, %p9080_p4 }
 0x54b   : > { %9090 = shalt.err (!%p9087_p7)
}
 0x54c   : > { %8912 = dma.vmem_to_hbm [thread:$0]  (%p12799_p13), %s11681_s23, 128, %s11679_s5, %s6795_s6  }
 0x54d PF: > { %s6821_s4 = sand.u32 1, %s9125_s12   ;;  %p12800_p9 = scmp.ne.s32.totalorder %s12197_s19, 0 }
 0x54e   : > { %p12801_p2 = scmp.ge.s32.totalorder %s9137_s15, 2  ;;  %s6822_s7 = scalar_lea.sflag [#allocation4], %s6821_s4 }
 0x550   : > { %p8926_p5 = pnand %p12801_p2, %p12800_p9 }
 0x552   : > { %9120 = dma.done.wait (!%p8926_p5), %s6822_s7, 128  }
 0x553   : > { %9122 = vsyncadd (!%p8926_p5), %s6822_s7, 4294967168  ;;  %p19_p1 = scmp.ge.s32.totalorder %s9221_s24, 4   ;;  %s12802_s12 = smov %s9129_s13 }
 0x554   : > { %s12803_s13 = smov %s9133_s14  ;;  %s12804_s14 = smov %s9252_s17 }
 0x555   : > { %s12805_s15 = smov %s9221_s24  ;;  %21 = sbr.rel (!%p19_p1) target bundleno = 7 (0x7), region = 94 }
 0x55c   :  { %6827 = vsyncpa [#allocation3], 1 }
 0x55d   :  { %6829 = vsyncpa [#allocation3 + $0x1], 1 }
 0x55e   :  { %6830 = vsyncpa [#allocation6], 1 }
 0x55f   :  { %6832 = vsyncpa [#allocation6 + $0x1], 1 }
 0x560   :  { %6833 = vsyncpa [#allocation4], 1 }
 0x561   :  { %6835 = vsyncpa [#allocation4 + $0x1], 1 }

</bundles_post_ra>
